<compile_context>
chip_gen: v5e
topology: v5e:2x2
jax: 0.10.0
libtpu: 0.0.40
codegen_flags: <defaults>
</compile_context>

<pallas_src>
import numpy as np

import jax
import jax.numpy as jnp
from jax.experimental import pallas as pl
from jax.experimental.pallas import tpu as pltpu

# ---------------- module configuration (small, consistent with the nn.Module) ----
DIM = 32                      # dim
INPUT_RESOLUTION = (8, 8)     # input_resolution
NUM_HEADS = 4                 # num_heads
WINDOW_SIZE = 4               # window_size
SHIFT_SIZE = 2                # shift_size (SW-MSA -> exercises the attention mask)
MLP_RATIO = 4.0
BATCH = 2

HEAD_DIM = DIM // NUM_HEADS
SCALE = HEAD_DIM ** -0.5      # qk_scale = None -> head_dim ** -0.5
MLP_HIDDEN = int(DIM * MLP_RATIO)
EPS = 1e-5                    # nn.LayerNorm default eps
N_TOK = WINDOW_SIZE * WINDOW_SIZE
N_WIN = (INPUT_RESOLUTION[0] // WINDOW_SIZE) * (INPUT_RESOLUTION[1] // WINDOW_SIZE)
L_WIN = N_WIN * N_TOK         # tokens per image in window-permuted order (= H*W)
NEG_BIG = -1e9                # off-window-block bias (exp underflows to exactly 0)


# ---------------- shared in-kernel math ------------------------------------------
def _layernorm(x, gamma, beta):
    # PyTorch LayerNorm: biased variance, eps inside sqrt.
    mean = jnp.mean(x, axis=-1, keepdims=True)
    var = jnp.mean(jnp.square(x - mean), axis=-1, keepdims=True)
    return (x - mean) / jnp.sqrt(var + EPS) * gamma + beta


def _erf(x):
    # Abramowitz & Stegun 7.1.26: |error| < ~3e-6 over the FULL range; uses exp (EUP).
    ax = jnp.abs(x)
    t = 1.0 / (1.0 + 0.3275911 * ax)
    poly = t * (0.254829592 + t * (-0.284496736 + t * (1.421413741
                + t * (-1.453152027 + t * 1.061405429))))
    y = 1.0 - poly * jnp.exp(-(ax * ax))
    return jnp.where(x >= 0, y, -y)


def _gelu_exact(x):
    # nn.GELU() default == exact (erf) GELU.
    return x * 0.5 * (1.0 + _erf(x * 0.7071067811865476))


# ---------------- fused Pallas kernel (one batch image per grid step) -------------
def _swin_block_kernel(x_ref, g1_ref, b1_ref, wqkv_ref, bqkv_ref,
                       wproj_ref, bproj_ref, bias_ref, g2_ref, b2_ref,
                       w1_ref, b1f_ref, w2_ref, b2f_ref, o_ref):
    x = x_ref[0]                                                         # (64, 32) permuted tokens

    # ---- norm1 (commutes with the token permutation) ----
    xn = _layernorm(x, g1_ref[...], b1_ref[...])

    # ---- QKV for all windows of this image at once ----
    qkv = jnp.dot(xn, wqkv_ref[...],
                  preferred_element_type=jnp.float32) + bqkv_ref[...]    # (64, 96)

    # ---- block-diagonal window attention ----
    heads = []
    for h in range(NUM_HEADS):
        lo = h * HEAD_DIM
        q = qkv[:, lo:lo + HEAD_DIM] * SCALE                             # (64, 8)
        k = qkv[:, DIM + lo:DIM + lo + HEAD_DIM]                         # (64, 8)
        v = qkv[:, 2 * DIM + lo:2 * DIM + lo + HEAD_DIM]                 # (64, 8)
        s = jax.lax.dot_general(q, k, (((1,), (1,)), ((), ())),
                                preferred_element_type=jnp.float32)      # (64, 64)
        s = s + bias_ref[h]                            # rel-pos + shift mask (+ -1e9 off-block)
        s = s - jnp.max(s, axis=-1, keepdims=True)
        p = jnp.exp(s)
        p = p * pl.reciprocal(jnp.sum(p, axis=-1, keepdims=True), approx=True)
        heads.append(jnp.dot(p, v, preferred_element_type=jnp.float32))  # (64, 8)

    attn = jnp.concatenate(heads, axis=-1)                               # (64, 32)
    attn = jnp.dot(attn, wproj_ref[...],
                   preferred_element_type=jnp.float32) + bproj_ref[...]  # (64, 32)

    # ---- residual 1 + norm2 + MLP + residual 2 ----
    y = x + attn
    h1 = _layernorm(y, g2_ref[...], b2_ref[...])
    h1 = jnp.dot(h1, w1_ref[...], preferred_element_type=jnp.float32) + b1f_ref[...]  # (64, 128)
    h1 = _gelu_exact(h1)
    h1 = jnp.dot(h1, w2_ref[...], preferred_element_type=jnp.float32) + b2f_ref[...]  # (64, 32)
    o_ref[0] = y + h1


# ---------------- plain-JAX glue ---------------------------------------------------
def window_partition(x, ws):
    B, H, W, C = x.shape
    x = x.reshape(B, H // ws, ws, W // ws, ws, C)
    return x.transpose(0, 1, 3, 2, 4, 5).reshape(-1, ws, ws, C)


def window_reverse(windows, ws, H, W):
    B = windows.shape[0] // (H * W // ws // ws)
    x = windows.reshape(B, H // ws, W // ws, ws, ws, -1)
    return x.transpose(0, 1, 3, 2, 4, 5).reshape(B, H, W, -1)


def build_params(key):
    H, W = INPUT_RESOLUTION
    ws, ss = WINDOW_SIZE, SHIFT_SIZE
    keys = jax.random.split(key, 5)
    p = {}
    p["g1"] = jnp.ones((DIM,), jnp.float32)
    p["b1"] = jnp.zeros((DIM,), jnp.float32)
    p["qkv_w"] = 0.02 * jax.random.normal(keys[0], (3 * DIM, DIM), jnp.float32)
    p["qkv_b"] = jnp.zeros((3 * DIM,), jnp.float32)
    p["proj_w"] = 0.02 * jax.random.normal(keys[1], (DIM, DIM), jnp.float32)
    p["proj_b"] = jnp.zeros((DIM,), jnp.float32)
    p["rel_table"] = 0.02 * jax.random.normal(
        keys[2], ((2 * ws - 1) * (2 * ws - 1), NUM_HEADS), jnp.float32)
    p["g2"] = jnp.ones((DIM,), jnp.float32)
    p["b2"] = jnp.zeros((DIM,), jnp.float32)
    p["fc1_w"] = 0.02 * jax.random.normal(keys[3], (MLP_HIDDEN, DIM), jnp.float32)
    p["fc1_b"] = jnp.zeros((MLP_HIDDEN,), jnp.float32)
    p["fc2_w"] = 0.02 * jax.random.normal(keys[4], (DIM, MLP_HIDDEN), jnp.float32)
    p["fc2_b"] = jnp.zeros((DIM,), jnp.float32)

    # relative position index (static, numpy), exactly as WindowAttention.__init__
    coords = np.stack(np.meshgrid(np.arange(ws), np.arange(ws), indexing="ij"))
    cf = coords.reshape(2, -1)
    rel = (cf[:, :, None] - cf[:, None, :]).transpose(1, 2, 0)
    rel[:, :, 0] += ws - 1
    rel[:, :, 1] += ws - 1
    rel[:, :, 0] *= 2 * ws - 1
    p["rel_index"] = jnp.asarray(rel.sum(-1), jnp.int32)                 # (N, N)

    # shifted-window attention mask, exactly as the module's __init__ builds it
    if ss > 0:
        img_mask = np.zeros((1, H, W, 1), np.float32)
        cnt = 0
        for hs in (slice(0, -ws), slice(-ws, -ss), slice(-ss, None)):
            for wsl in (slice(0, -ws), slice(-ws, -ss), slice(-ss, None)):
                img_mask[:, hs, wsl, :] = cnt
                cnt += 1
        mw = np.asarray(window_partition(jnp.asarray(img_mask), ws)).reshape(-1, N_TOK)
        am = mw[:, None, :] - mw[:, :, None]
        am = np.where(am != 0, np.float32(-100.0), np.float32(0.0)).astype(np.float32)
        p["attn_mask"] = jnp.asarray(am)                                 # (nW, N, N)
    else:
        p["attn_mask"] = jnp.zeros((N_WIN, N_TOK, N_TOK), jnp.float32)

    # Precompute the full block-diagonal bias: rel-pos + shift mask on diagonal
    # window blocks, NEG_BIG elsewhere -> full-row softmax == per-window softmax.
    rel_bias = p["rel_table"][p["rel_index"].reshape(-1)]
    rel_bias = rel_bias.reshape(N_TOK, N_TOK, NUM_HEADS).transpose(2, 0, 1)   # (nH, N, N)
    win_bias = rel_bias[None] + p["attn_mask"][:, None]                        # (nW, nH, N, N)
    full = jnp.full((NUM_HEADS, L_WIN, L_WIN), jnp.float32(NEG_BIG))
    for w in range(N_WIN):
        full = full.at[:, w * N_TOK:(w + 1) * N_TOK,
                       w * N_TOK:(w + 1) * N_TOK].set(win_bias[w])
    p["attn_bias_full"] = full                                           # (nH, 64, 64)
    return p


def swin_block_forward(x, params):
    H, W = INPUT_RESOLUTION
    B, L, C = x.shape
    assert L == H * W and C == DIM, "input feature has wrong size"
    ws, ss = WINDOW_SIZE, SHIFT_SIZE

    # ---- token permutation (cyclic shift + window partition) on the RAW input;
    #      every per-token op (LN, MLP, residuals) commutes with it. ----
    x4 = x.reshape(B, H, W, C)
    if ss > 0:
        x4 = jnp.roll(x4, shift=(-ss, -ss), axis=(1, 2))
    xp = window_partition(x4, ws).reshape(B, L_WIN, C)                   # (B, 64, 32)

    # ---- single fused kernel: one batch image per grid step ----
    out_p = pl.pallas_call(
        _swin_block_kernel,
        out_shape=jax.ShapeDtypeStruct((B, L_WIN, C), jnp.float32),
        grid=(B,),
        in_specs=[
            pl.BlockSpec((1, L_WIN, C), lambda b: (b, 0, 0)),            # permuted tokens
            pl.BlockSpec((1, C), lambda b: (0, 0)),                      # gamma1
            pl.BlockSpec((1, C), lambda b: (0, 0)),                      # beta1
            pl.BlockSpec((C, 3 * C), lambda b: (0, 0)),                  # Wqkv^T
            pl.BlockSpec((1, 3 * C), lambda b: (0, 0)),                  # bqkv
            pl.BlockSpec((C, C), lambda b: (0, 0)),                      # Wproj^T
            pl.BlockSpec((1, C), lambda b: (0, 0)),                      # bproj
            pl.BlockSpec((NUM_HEADS, L_WIN, L_WIN), lambda b: (0, 0, 0)),  # block-diag bias
            pl.BlockSpec((1, C), lambda b: (0, 0)),                      # gamma2
            pl.BlockSpec((1, C), lambda b: (0, 0)),                      # beta2
            pl.BlockSpec((C, MLP_HIDDEN), lambda b: (0, 0)),             # fc1 W^T
            pl.BlockSpec((1, MLP_HIDDEN), lambda b: (0, 0)),             # fc1 b
            pl.BlockSpec((MLP_HIDDEN, C), lambda b: (0, 0)),             # fc2 W^T
            pl.BlockSpec((1, C), lambda b: (0, 0)),                      # fc2 b
        ],
        out_specs=pl.BlockSpec((1, L_WIN, C), lambda b: (b, 0, 0)),
        compiler_params=pltpu.CompilerParams(dimension_semantics=("parallel",)),
    )(xp,
      params["g1"].reshape(1, C), params["b1"].reshape(1, C),
      params["qkv_w"].T, params["qkv_b"].reshape(1, 3 * C),
      params["proj_w"].T, params["proj_b"].reshape(1, C),
      params["attn_bias_full"],
      params["g2"].reshape(1, C), params["b2"].reshape(1, C),
      params["fc1_w"].T, params["fc1_b"].reshape(1, MLP_HIDDEN),
      params["fc2_w"].T, params["fc2_b"].reshape(1, C))

    # ---- inverse token permutation (window reverse + reverse shift) ----
    out4 = window_reverse(out_p.reshape(B * N_WIN, ws, ws, C), ws, H, W)
    if ss > 0:
        out4 = jnp.roll(out4, shift=(ss, ss), axis=(1, 2))
    return out4.reshape(B, L, C)


# ---------------- pure-JAX reference for correctness check -------------------------
def reference_forward(x, params):
    H, W = INPUT_RESOLUTION
    B, L, C = x.shape
    ws, ss = WINDOW_SIZE, SHIFT_SIZE
    N = N_TOK

    def ln(v, g, b):
        m = v.mean(-1, keepdims=True)
        var = ((v - m) ** 2).mean(-1, keepdims=True)
        return (v - m) / jnp.sqrt(var + EPS) * g + b

    shortcut = x
    xn = ln(x, params["g1"], params["b1"]).reshape(B, H, W, C)
    if ss > 0:
        xn = jnp.roll(xn, (-ss, -ss), axis=(1, 2))
    xw = window_partition(xn, ws).reshape(-1, N, C)
    B_ = xw.shape[0]

    qkv = xw @ params["qkv_w"].T + params["qkv_b"]
    qkv = qkv.reshape(B_, N, 3, NUM_HEADS, HEAD_DIM).transpose(2, 0, 3, 1, 4)
    q, k, v = qkv[0], qkv[1], qkv[2]
    attn = (q * SCALE) @ k.transpose(0, 1, 3, 2)
    rel_bias = params["rel_table"][params["rel_index"].reshape(-1)]
    rel_bias = rel_bias.reshape(N, N, NUM_HEADS).transpose(2, 0, 1)
    attn = attn + rel_bias[None]
    nW = params["attn_mask"].shape[0]
    attn = attn.reshape(B_ // nW, nW, NUM_HEADS, N, N) + params["attn_mask"][None, :, None]
    attn = attn.reshape(B_, NUM_HEADS, N, N)
    attn = jax.nn.softmax(attn, axis=-1)
    out = (attn @ v).transpose(0, 2, 1, 3).reshape(B_, N, C)
    out = out @ params["proj_w"].T + params["proj_b"]

    shifted = window_reverse(out.reshape(-1, ws, ws, C), ws, H, W)
    if ss > 0:
        shifted = jnp.roll(shifted, (ss, ss), axis=(1, 2))
    y = shortcut + shifted.reshape(B, L, C)
    h = ln(y, params["g2"], params["b2"])
    h = jax.nn.gelu(h @ params["fc1_w"].T + params["fc1_b"], approximate=False)
    h = h @ params["fc2_w"].T + params["fc2_b"]
    return y + h


if __name__ == "__main__":
    key = jax.random.PRNGKey(0)
    pkey, xkey = jax.random.split(key)
    params = build_params(pkey)

    H, W = INPUT_RESOLUTION
    x = jax.random.normal(xkey, (BATCH, H * W, DIM), jnp.float32)

    fwd = jax.jit(swin_block_forward)
    out = jax.block_until_ready(fwd(x, params))
    ref = jax.block_until_ready(reference_forward(x, params))

    assert out.shape == (BATCH, H * W, DIM)
    # Tolerance covers the approximate softmax reciprocal (EUP vrcp) and the
    # full-range erf approximation; observed error is well below this.
    np.testing.assert_allclose(np.asarray(out), np.asarray(ref), rtol=2e-4, atol=2e-4)
    print("KERNEL_OK")
</pallas_src>

<mosaic_0001>
module attributes {stable_mosaic.version = 11 : i64} {
  func.func @_swin_block_kernel(%arg0: i32, %arg1: memref<1x64x32xf32, #tpu.memory_space<vmem>>, %arg2: memref<1x32xf32, #tpu.memory_space<vmem>>, %arg3: memref<1x32xf32, #tpu.memory_space<vmem>>, %arg4: memref<32x96xf32, #tpu.memory_space<vmem>>, %arg5: memref<1x96xf32, #tpu.memory_space<vmem>>, %arg6: memref<32x32xf32, #tpu.memory_space<vmem>>, %arg7: memref<1x32xf32, #tpu.memory_space<vmem>>, %arg8: memref<4x64x64xf32, #tpu.memory_space<vmem>>, %arg9: memref<1x32xf32, #tpu.memory_space<vmem>>, %arg10: memref<1x32xf32, #tpu.memory_space<vmem>>, %arg11: memref<32x128xf32, #tpu.memory_space<vmem>>, %arg12: memref<1x128xf32, #tpu.memory_space<vmem>>, %arg13: memref<128x32xf32, #tpu.memory_space<vmem>>, %arg14: memref<1x32xf32, #tpu.memory_space<vmem>>, %arg15: memref<1x64x32xf32, #tpu.memory_space<vmem>>) attributes {dimension_semantics = [#tpu.dimension_semantics<parallel>], iteration_bounds = array<i64: 2>, scalar_prefetch = 0 : i64, scratch_operands = 0 : i64, tpu.core_type = #tpu.core_type<tc>, window_params = [{transform_indices = @transform_0, window_bounds = array<i64: 1, 64, 32>}, {pipeline_mode = #tpu.pipeline_mode<synchronous>, transform_indices = @transform_1, window_bounds = array<i64: 1, 32>}, {pipeline_mode = #tpu.pipeline_mode<synchronous>, transform_indices = @transform_2, window_bounds = array<i64: 1, 32>}, {pipeline_mode = #tpu.pipeline_mode<synchronous>, transform_indices = @transform_3, window_bounds = array<i64: 32, 96>}, {pipeline_mode = #tpu.pipeline_mode<synchronous>, transform_indices = @transform_4, window_bounds = array<i64: 1, 96>}, {pipeline_mode = #tpu.pipeline_mode<synchronous>, transform_indices = @transform_5, window_bounds = array<i64: 32, 32>}, {pipeline_mode = #tpu.pipeline_mode<synchronous>, transform_indices = @transform_6, window_bounds = array<i64: 1, 32>}, {pipeline_mode = #tpu.pipeline_mode<synchronous>, transform_indices = @transform_7, window_bounds = array<i64: 4, 64, 64>}, {pipeline_mode = #tpu.pipeline_mode<synchronous>, transform_indices = @transform_8, window_bounds = array<i64: 1, 32>}, {pipeline_mode = #tpu.pipeline_mode<synchronous>, transform_indices = @transform_9, window_bounds = array<i64: 1, 32>}, {pipeline_mode = #tpu.pipeline_mode<synchronous>, transform_indices = @transform_10, window_bounds = array<i64: 32, 128>}, {pipeline_mode = #tpu.pipeline_mode<synchronous>, transform_indices = @transform_11, window_bounds = array<i64: 1, 128>}, {pipeline_mode = #tpu.pipeline_mode<synchronous>, transform_indices = @transform_12, window_bounds = array<i64: 128, 32>}, {pipeline_mode = #tpu.pipeline_mode<synchronous>, transform_indices = @transform_13, window_bounds = array<i64: 1, 32>}, {transform_indices = @transform_14, window_bounds = array<i64: 1, 64, 32>}]} {
    %c0 = arith.constant 0 : index
    %c0_0 = arith.constant 0 : index
    %c0_1 = arith.constant 0 : index
    %0 = vector.load %arg1[%c0, %c0_0, %c0_1] : memref<1x64x32xf32, #tpu.memory_space<vmem>>, vector<1x64x32xf32>
    %1 = vector.shape_cast %0 : vector<1x64x32xf32> to vector<64x32xf32>
    %c0_2 = arith.constant 0 : index
    %c0_3 = arith.constant 0 : index
    %2 = vector.load %arg2[%c0_2, %c0_3] : memref<1x32xf32, #tpu.memory_space<vmem>>, vector<1x32xf32>
    %c0_4 = arith.constant 0 : index
    %c0_5 = arith.constant 0 : index
    %3 = vector.load %arg3[%c0_4, %c0_5] : memref<1x32xf32, #tpu.memory_space<vmem>>, vector<1x32xf32>
    %cst = arith.constant dense<0.000000e+00> : vector<64xf32>
    %4 = vector.multi_reduction <add>, %1, %cst [1] : vector<64x32xf32> to vector<64xf32>
    %5 = vector.shape_cast %4 : vector<64xf32> to vector<64x1xf32>
    %cst_6 = arith.constant 3.200000e+01 : f32
    %6 = vector.broadcast %cst_6 : f32 to vector<64x1xf32>
    %7 = arith.divf %5, %6 : vector<64x1xf32>
    %8 = vector.broadcast %7 : vector<64x1xf32> to vector<64x32xf32>
    %9 = arith.subf %1, %8 : vector<64x32xf32>
    %10 = arith.mulf %9, %9 : vector<64x32xf32>
    %cst_7 = arith.constant dense<0.000000e+00> : vector<64xf32>
    %11 = vector.multi_reduction <add>, %10, %cst_7 [1] : vector<64x32xf32> to vector<64xf32>
    %12 = vector.shape_cast %11 : vector<64xf32> to vector<64x1xf32>
    %cst_8 = arith.constant 3.200000e+01 : f32
    %13 = vector.broadcast %cst_8 : f32 to vector<64x1xf32>
    %14 = arith.divf %12, %13 : vector<64x1xf32>
    %15 = vector.broadcast %7 : vector<64x1xf32> to vector<64x32xf32>
    %16 = arith.subf %1, %15 : vector<64x32xf32>
    %cst_9 = arith.constant 9.99999974E-6 : f32
    %17 = vector.broadcast %cst_9 : f32 to vector<64x1xf32>
    %18 = arith.addf %14, %17 : vector<64x1xf32>
    %19 = math.sqrt %18 : vector<64x1xf32>
    %20 = vector.broadcast %19 : vector<64x1xf32> to vector<64x32xf32>
    %21 = arith.divf %16, %20 : vector<64x32xf32>
    %22 = vector.broadcast %2 : vector<1x32xf32> to vector<64x32xf32>
    %23 = arith.mulf %21, %22 : vector<64x32xf32>
    %24 = vector.broadcast %3 : vector<1x32xf32> to vector<64x32xf32>
    %25 = arith.addf %23, %24 : vector<64x32xf32>
    %c0_10 = arith.constant 0 : index
    %c0_11 = arith.constant 0 : index
    %26 = vector.load %arg4[%c0_10, %c0_11] : memref<32x96xf32, #tpu.memory_space<vmem>>, vector<32x96xf32>
    %cst_12 = arith.constant dense<0.000000e+00> : vector<64x96xf32>
    %27 = tpu.matmul %25, %26, %cst_12 {dimension_numbers = #tpu.dot_dimension_numbers<[1], [0], [0], [1], [0, 0, 1, 1], [], []>} : vector<64x32xf32>, vector<32x96xf32>, vector<64x96xf32> -> vector<64x96xf32>
    %c0_13 = arith.constant 0 : index
    %c0_14 = arith.constant 0 : index
    %28 = vector.load %arg5[%c0_13, %c0_14] : memref<1x96xf32, #tpu.memory_space<vmem>>, vector<1x96xf32>
    %29 = vector.broadcast %28 : vector<1x96xf32> to vector<64x96xf32>
    %30 = arith.addf %27, %29 : vector<64x96xf32>
    %31 = vector.extract_strided_slice %30 {offsets = [0, 0], sizes = [64, 8], strides = [1, 1]} : vector<64x96xf32> to vector<64x8xf32>
    %cst_15 = arith.constant 0.353553385 : f32
    %32 = vector.broadcast %cst_15 : f32 to vector<64x8xf32>
    %33 = arith.mulf %31, %32 : vector<64x8xf32>
    %34 = vector.extract_strided_slice %30 {offsets = [0, 32], sizes = [64, 8], strides = [1, 1]} : vector<64x96xf32> to vector<64x8xf32>
    %35 = vector.extract_strided_slice %30 {offsets = [0, 64], sizes = [64, 8], strides = [1, 1]} : vector<64x96xf32> to vector<64x8xf32>
    %cst_16 = arith.constant dense<0.000000e+00> : vector<64x64xf32>
    %36 = tpu.matmul %33, %34, %cst_16 {dimension_numbers = #tpu.dot_dimension_numbers<[1], [1], [0], [0], [0, 0, 1, 0], [], []>} : vector<64x8xf32>, vector<64x8xf32>, vector<64x64xf32> -> vector<64x64xf32>
    %c0_17 = arith.constant 0 : index
    %c0_18 = arith.constant 0 : index
    %c0_19 = arith.constant 0 : index
    %37 = vector.load %arg8[%c0_17, %c0_18, %c0_19] : memref<4x64x64xf32, #tpu.memory_space<vmem>>, vector<1x64x64xf32>
    %38 = vector.shape_cast %37 : vector<1x64x64xf32> to vector<64x64xf32>
    %39 = arith.addf %36, %38 : vector<64x64xf32>
    %cst_20 = arith.constant dense<0xFF800000> : vector<64xf32>
    %40 = vector.multi_reduction <maximumf>, %39, %cst_20 [1] : vector<64x64xf32> to vector<64xf32>
    %41 = vector.shape_cast %40 : vector<64xf32> to vector<64x1xf32>
    %42 = vector.broadcast %41 : vector<64x1xf32> to vector<64x64xf32>
    %43 = arith.subf %39, %42 : vector<64x64xf32>
    %44 = math.exp %43 : vector<64x64xf32>
    %cst_21 = arith.constant dense<0.000000e+00> : vector<64xf32>
    %45 = vector.multi_reduction <add>, %44, %cst_21 [1] : vector<64x64xf32> to vector<64xf32>
    %46 = vector.shape_cast %45 : vector<64xf32> to vector<64x1xf32>
    %47 = tpu.reciprocal %46 {approx = true} : vector<64x1xf32> -> vector<64x1xf32>
    %48 = vector.broadcast %47 : vector<64x1xf32> to vector<64x64xf32>
    %49 = arith.mulf %44, %48 : vector<64x64xf32>
    %cst_22 = arith.constant dense<0.000000e+00> : vector<64x8xf32>
    %50 = tpu.matmul %49, %35, %cst_22 {dimension_numbers = #tpu.dot_dimension_numbers<[1], [0], [0], [1], [0, 0, 1, 1], [], []>} : vector<64x64xf32>, vector<64x8xf32>, vector<64x8xf32> -> vector<64x8xf32>
    %51 = vector.extract_strided_slice %30 {offsets = [0, 8], sizes = [64, 8], strides = [1, 1]} : vector<64x96xf32> to vector<64x8xf32>
    %cst_23 = arith.constant 0.353553385 : f32
    %52 = vector.broadcast %cst_23 : f32 to vector<64x8xf32>
    %53 = arith.mulf %51, %52 : vector<64x8xf32>
    %54 = vector.extract_strided_slice %30 {offsets = [0, 40], sizes = [64, 8], strides = [1, 1]} : vector<64x96xf32> to vector<64x8xf32>
    %55 = vector.extract_strided_slice %30 {offsets = [0, 72], sizes = [64, 8], strides = [1, 1]} : vector<64x96xf32> to vector<64x8xf32>
    %cst_24 = arith.constant dense<0.000000e+00> : vector<64x64xf32>
    %56 = tpu.matmul %53, %54, %cst_24 {dimension_numbers = #tpu.dot_dimension_numbers<[1], [1], [0], [0], [0, 0, 1, 0], [], []>} : vector<64x8xf32>, vector<64x8xf32>, vector<64x64xf32> -> vector<64x64xf32>
    %c1 = arith.constant 1 : index
    %c0_25 = arith.constant 0 : index
    %c0_26 = arith.constant 0 : index
    %57 = vector.load %arg8[%c1, %c0_25, %c0_26] : memref<4x64x64xf32, #tpu.memory_space<vmem>>, vector<1x64x64xf32>
    %58 = vector.shape_cast %57 : vector<1x64x64xf32> to vector<64x64xf32>
    %59 = arith.addf %56, %58 : vector<64x64xf32>
    %cst_27 = arith.constant dense<0xFF800000> : vector<64xf32>
    %60 = vector.multi_reduction <maximumf>, %59, %cst_27 [1] : vector<64x64xf32> to vector<64xf32>
    %61 = vector.shape_cast %60 : vector<64xf32> to vector<64x1xf32>
    %62 = vector.broadcast %61 : vector<64x1xf32> to vector<64x64xf32>
    %63 = arith.subf %59, %62 : vector<64x64xf32>
    %64 = math.exp %63 : vector<64x64xf32>
    %cst_28 = arith.constant dense<0.000000e+00> : vector<64xf32>
    %65 = vector.multi_reduction <add>, %64, %cst_28 [1] : vector<64x64xf32> to vector<64xf32>
    %66 = vector.shape_cast %65 : vector<64xf32> to vector<64x1xf32>
    %67 = tpu.reciprocal %66 {approx = true} : vector<64x1xf32> -> vector<64x1xf32>
    %68 = vector.broadcast %67 : vector<64x1xf32> to vector<64x64xf32>
    %69 = arith.mulf %64, %68 : vector<64x64xf32>
    %cst_29 = arith.constant dense<0.000000e+00> : vector<64x8xf32>
    %70 = tpu.matmul %69, %55, %cst_29 {dimension_numbers = #tpu.dot_dimension_numbers<[1], [0], [0], [1], [0, 0, 1, 1], [], []>} : vector<64x64xf32>, vector<64x8xf32>, vector<64x8xf32> -> vector<64x8xf32>
    %71 = vector.extract_strided_slice %30 {offsets = [0, 16], sizes = [64, 8], strides = [1, 1]} : vector<64x96xf32> to vector<64x8xf32>
    %cst_30 = arith.constant 0.353553385 : f32
    %72 = vector.broadcast %cst_30 : f32 to vector<64x8xf32>
    %73 = arith.mulf %71, %72 : vector<64x8xf32>
    %74 = vector.extract_strided_slice %30 {offsets = [0, 48], sizes = [64, 8], strides = [1, 1]} : vector<64x96xf32> to vector<64x8xf32>
    %75 = vector.extract_strided_slice %30 {offsets = [0, 80], sizes = [64, 8], strides = [1, 1]} : vector<64x96xf32> to vector<64x8xf32>
    %cst_31 = arith.constant dense<0.000000e+00> : vector<64x64xf32>
    %76 = tpu.matmul %73, %74, %cst_31 {dimension_numbers = #tpu.dot_dimension_numbers<[1], [1], [0], [0], [0, 0, 1, 0], [], []>} : vector<64x8xf32>, vector<64x8xf32>, vector<64x64xf32> -> vector<64x64xf32>
    %c2 = arith.constant 2 : index
    %c0_32 = arith.constant 0 : index
    %c0_33 = arith.constant 0 : index
    %77 = vector.load %arg8[%c2, %c0_32, %c0_33] : memref<4x64x64xf32, #tpu.memory_space<vmem>>, vector<1x64x64xf32>
    %78 = vector.shape_cast %77 : vector<1x64x64xf32> to vector<64x64xf32>
    %79 = arith.addf %76, %78 : vector<64x64xf32>
    %cst_34 = arith.constant dense<0xFF800000> : vector<64xf32>
    %80 = vector.multi_reduction <maximumf>, %79, %cst_34 [1] : vector<64x64xf32> to vector<64xf32>
    %81 = vector.shape_cast %80 : vector<64xf32> to vector<64x1xf32>
    %82 = vector.broadcast %81 : vector<64x1xf32> to vector<64x64xf32>
    %83 = arith.subf %79, %82 : vector<64x64xf32>
    %84 = math.exp %83 : vector<64x64xf32>
    %cst_35 = arith.constant dense<0.000000e+00> : vector<64xf32>
    %85 = vector.multi_reduction <add>, %84, %cst_35 [1] : vector<64x64xf32> to vector<64xf32>
    %86 = vector.shape_cast %85 : vector<64xf32> to vector<64x1xf32>
    %87 = tpu.reciprocal %86 {approx = true} : vector<64x1xf32> -> vector<64x1xf32>
    %88 = vector.broadcast %87 : vector<64x1xf32> to vector<64x64xf32>
    %89 = arith.mulf %84, %88 : vector<64x64xf32>
    %cst_36 = arith.constant dense<0.000000e+00> : vector<64x8xf32>
    %90 = tpu.matmul %89, %75, %cst_36 {dimension_numbers = #tpu.dot_dimension_numbers<[1], [0], [0], [1], [0, 0, 1, 1], [], []>} : vector<64x64xf32>, vector<64x8xf32>, vector<64x8xf32> -> vector<64x8xf32>
    %91 = vector.extract_strided_slice %30 {offsets = [0, 24], sizes = [64, 8], strides = [1, 1]} : vector<64x96xf32> to vector<64x8xf32>
    %cst_37 = arith.constant 0.353553385 : f32
    %92 = vector.broadcast %cst_37 : f32 to vector<64x8xf32>
    %93 = arith.mulf %91, %92 : vector<64x8xf32>
    %94 = vector.extract_strided_slice %30 {offsets = [0, 56], sizes = [64, 8], strides = [1, 1]} : vector<64x96xf32> to vector<64x8xf32>
    %95 = vector.extract_strided_slice %30 {offsets = [0, 88], sizes = [64, 8], strides = [1, 1]} : vector<64x96xf32> to vector<64x8xf32>
    %cst_38 = arith.constant dense<0.000000e+00> : vector<64x64xf32>
    %96 = tpu.matmul %93, %94, %cst_38 {dimension_numbers = #tpu.dot_dimension_numbers<[1], [1], [0], [0], [0, 0, 1, 0], [], []>} : vector<64x8xf32>, vector<64x8xf32>, vector<64x64xf32> -> vector<64x64xf32>
    %c3 = arith.constant 3 : index
    %c0_39 = arith.constant 0 : index
    %c0_40 = arith.constant 0 : index
    %97 = vector.load %arg8[%c3, %c0_39, %c0_40] : memref<4x64x64xf32, #tpu.memory_space<vmem>>, vector<1x64x64xf32>
    %98 = vector.shape_cast %97 : vector<1x64x64xf32> to vector<64x64xf32>
    %99 = arith.addf %96, %98 : vector<64x64xf32>
    %cst_41 = arith.constant dense<0xFF800000> : vector<64xf32>
    %100 = vector.multi_reduction <maximumf>, %99, %cst_41 [1] : vector<64x64xf32> to vector<64xf32>
    %101 = vector.shape_cast %100 : vector<64xf32> to vector<64x1xf32>
    %102 = vector.broadcast %101 : vector<64x1xf32> to vector<64x64xf32>
    %103 = arith.subf %99, %102 : vector<64x64xf32>
    %104 = math.exp %103 : vector<64x64xf32>
    %cst_42 = arith.constant dense<0.000000e+00> : vector<64xf32>
    %105 = vector.multi_reduction <add>, %104, %cst_42 [1] : vector<64x64xf32> to vector<64xf32>
    %106 = vector.shape_cast %105 : vector<64xf32> to vector<64x1xf32>
    %107 = tpu.reciprocal %106 {approx = true} : vector<64x1xf32> -> vector<64x1xf32>
    %108 = vector.broadcast %107 : vector<64x1xf32> to vector<64x64xf32>
    %109 = arith.mulf %104, %108 : vector<64x64xf32>
    %cst_43 = arith.constant dense<0.000000e+00> : vector<64x8xf32>
    %110 = tpu.matmul %109, %95, %cst_43 {dimension_numbers = #tpu.dot_dimension_numbers<[1], [0], [0], [1], [0, 0, 1, 1], [], []>} : vector<64x64xf32>, vector<64x8xf32>, vector<64x8xf32> -> vector<64x8xf32>
    %111 = tpu.concatenate %50, %70, %90, %110 in 1 : vector<64x8xf32>, vector<64x8xf32>, vector<64x8xf32>, vector<64x8xf32> -> vector<64x32xf32>
    %c0_44 = arith.constant 0 : index
    %c0_45 = arith.constant 0 : index
    %112 = vector.load %arg6[%c0_44, %c0_45] : memref<32x32xf32, #tpu.memory_space<vmem>>, vector<32x32xf32>
    %cst_46 = arith.constant dense<0.000000e+00> : vector<64x32xf32>
    %113 = tpu.matmul %111, %112, %cst_46 {dimension_numbers = #tpu.dot_dimension_numbers<[1], [0], [0], [1], [0, 0, 1, 1], [], []>} : vector<64x32xf32>, vector<32x32xf32>, vector<64x32xf32> -> vector<64x32xf32>
    %c0_47 = arith.constant 0 : index
    %c0_48 = arith.constant 0 : index
    %114 = vector.load %arg7[%c0_47, %c0_48] : memref<1x32xf32, #tpu.memory_space<vmem>>, vector<1x32xf32>
    %115 = vector.broadcast %114 : vector<1x32xf32> to vector<64x32xf32>
    %116 = arith.addf %113, %115 : vector<64x32xf32>
    %117 = arith.addf %1, %116 : vector<64x32xf32>
    %c0_49 = arith.constant 0 : index
    %c0_50 = arith.constant 0 : index
    %118 = vector.load %arg9[%c0_49, %c0_50] : memref<1x32xf32, #tpu.memory_space<vmem>>, vector<1x32xf32>
    %c0_51 = arith.constant 0 : index
    %c0_52 = arith.constant 0 : index
    %119 = vector.load %arg10[%c0_51, %c0_52] : memref<1x32xf32, #tpu.memory_space<vmem>>, vector<1x32xf32>
    %cst_53 = arith.constant dense<0.000000e+00> : vector<64xf32>
    %120 = vector.multi_reduction <add>, %117, %cst_53 [1] : vector<64x32xf32> to vector<64xf32>
    %121 = vector.shape_cast %120 : vector<64xf32> to vector<64x1xf32>
    %cst_54 = arith.constant 3.200000e+01 : f32
    %122 = vector.broadcast %cst_54 : f32 to vector<64x1xf32>
    %123 = arith.divf %121, %122 : vector<64x1xf32>
    %124 = vector.broadcast %123 : vector<64x1xf32> to vector<64x32xf32>
    %125 = arith.subf %117, %124 : vector<64x32xf32>
    %126 = arith.mulf %125, %125 : vector<64x32xf32>
    %cst_55 = arith.constant dense<0.000000e+00> : vector<64xf32>
    %127 = vector.multi_reduction <add>, %126, %cst_55 [1] : vector<64x32xf32> to vector<64xf32>
    %128 = vector.shape_cast %127 : vector<64xf32> to vector<64x1xf32>
    %cst_56 = arith.constant 3.200000e+01 : f32
    %129 = vector.broadcast %cst_56 : f32 to vector<64x1xf32>
    %130 = arith.divf %128, %129 : vector<64x1xf32>
    %131 = vector.broadcast %123 : vector<64x1xf32> to vector<64x32xf32>
    %132 = arith.subf %117, %131 : vector<64x32xf32>
    %cst_57 = arith.constant 9.99999974E-6 : f32
    %133 = vector.broadcast %cst_57 : f32 to vector<64x1xf32>
    %134 = arith.addf %130, %133 : vector<64x1xf32>
    %135 = math.sqrt %134 : vector<64x1xf32>
    %136 = vector.broadcast %135 : vector<64x1xf32> to vector<64x32xf32>
    %137 = arith.divf %132, %136 : vector<64x32xf32>
    %138 = vector.broadcast %118 : vector<1x32xf32> to vector<64x32xf32>
    %139 = arith.mulf %137, %138 : vector<64x32xf32>
    %140 = vector.broadcast %119 : vector<1x32xf32> to vector<64x32xf32>
    %141 = arith.addf %139, %140 : vector<64x32xf32>
    %c0_58 = arith.constant 0 : index
    %c0_59 = arith.constant 0 : index
    %142 = vector.load %arg11[%c0_58, %c0_59] : memref<32x128xf32, #tpu.memory_space<vmem>>, vector<32x128xf32>
    %cst_60 = arith.constant dense<0.000000e+00> : vector<64x128xf32>
    %143 = tpu.matmul %141, %142, %cst_60 {dimension_numbers = #tpu.dot_dimension_numbers<[1], [0], [0], [1], [0, 0, 1, 1], [], []>} : vector<64x32xf32>, vector<32x128xf32>, vector<64x128xf32> -> vector<64x128xf32>
    %c0_61 = arith.constant 0 : index
    %c0_62 = arith.constant 0 : index
    %144 = vector.load %arg12[%c0_61, %c0_62] : memref<1x128xf32, #tpu.memory_space<vmem>>, vector<1x128xf32>
    %145 = vector.broadcast %144 : vector<1x128xf32> to vector<64x128xf32>
    %146 = arith.addf %143, %145 : vector<64x128xf32>
    %cst_63 = arith.constant 5.000000e-01 : f32
    %147 = vector.broadcast %cst_63 : f32 to vector<64x128xf32>
    %148 = arith.mulf %146, %147 : vector<64x128xf32>
    %cst_64 = arith.constant 0.707106769 : f32
    %149 = vector.broadcast %cst_64 : f32 to vector<64x128xf32>
    %150 = arith.mulf %146, %149 : vector<64x128xf32>
    %151 = math.absf %150 : vector<64x128xf32>
    %cst_65 = arith.constant 0.327591091 : f32
    %152 = vector.broadcast %cst_65 : f32 to vector<64x128xf32>
    %153 = arith.mulf %152, %151 : vector<64x128xf32>
    %cst_66 = arith.constant 1.000000e+00 : f32
    %154 = vector.broadcast %cst_66 : f32 to vector<64x128xf32>
    %155 = arith.addf %154, %153 : vector<64x128xf32>
    %cst_67 = arith.constant 1.000000e+00 : f32
    %156 = vector.broadcast %cst_67 : f32 to vector<64x128xf32>
    %157 = arith.divf %156, %155 : vector<64x128xf32>
    %cst_68 = arith.constant 1.06140542 : f32
    %158 = vector.broadcast %cst_68 : f32 to vector<64x128xf32>
    %159 = arith.mulf %157, %158 : vector<64x128xf32>
    %cst_69 = arith.constant -1.45315206 : f32
    %160 = vector.broadcast %cst_69 : f32 to vector<64x128xf32>
    %161 = arith.addf %160, %159 : vector<64x128xf32>
    %162 = arith.mulf %157, %161 : vector<64x128xf32>
    %cst_70 = arith.constant 1.42141378 : f32
    %163 = vector.broadcast %cst_70 : f32 to vector<64x128xf32>
    %164 = arith.addf %163, %162 : vector<64x128xf32>
    %165 = arith.mulf %157, %164 : vector<64x128xf32>
    %cst_71 = arith.constant -0.284496725 : f32
    %166 = vector.broadcast %cst_71 : f32 to vector<64x128xf32>
    %167 = arith.addf %166, %165 : vector<64x128xf32>
    %168 = arith.mulf %157, %167 : vector<64x128xf32>
    %cst_72 = arith.constant 0.254829586 : f32
    %169 = vector.broadcast %cst_72 : f32 to vector<64x128xf32>
    %170 = arith.addf %169, %168 : vector<64x128xf32>
    %171 = arith.mulf %157, %170 : vector<64x128xf32>
    %172 = arith.mulf %151, %151 : vector<64x128xf32>
    %cst_73 = arith.constant 0.000000e+00 : f32
    %173 = vector.broadcast %cst_73 : f32 to vector<64x128xf32>
    %174 = arith.subf %173, %172 : vector<64x128xf32>
    %175 = math.exp %174 : vector<64x128xf32>
    %176 = arith.mulf %171, %175 : vector<64x128xf32>
    %cst_74 = arith.constant 1.000000e+00 : f32
    %177 = vector.broadcast %cst_74 : f32 to vector<64x128xf32>
    %178 = arith.subf %177, %176 : vector<64x128xf32>
    %cst_75 = arith.constant 0.000000e+00 : f32
    %179 = vector.broadcast %cst_75 : f32 to vector<64x128xf32>
    %180 = arith.cmpf oge, %150, %179 : vector<64x128xf32>
    %cst_76 = arith.constant 0.000000e+00 : f32
    %181 = vector.broadcast %cst_76 : f32 to vector<64x128xf32>
    %182 = arith.subf %181, %178 : vector<64x128xf32>
    %183 = arith.select %180, %178, %182 : vector<64x128xi1>, vector<64x128xf32>
    %cst_77 = arith.constant 1.000000e+00 : f32
    %184 = vector.broadcast %cst_77 : f32 to vector<64x128xf32>
    %185 = arith.addf %184, %183 : vector<64x128xf32>
    %186 = arith.mulf %148, %185 : vector<64x128xf32>
    %c0_78 = arith.constant 0 : index
    %c0_79 = arith.constant 0 : index
    %187 = vector.load %arg13[%c0_78, %c0_79] : memref<128x32xf32, #tpu.memory_space<vmem>>, vector<128x32xf32>
    %cst_80 = arith.constant dense<0.000000e+00> : vector<64x32xf32>
    %188 = tpu.matmul %186, %187, %cst_80 {dimension_numbers = #tpu.dot_dimension_numbers<[1], [0], [0], [1], [0, 0, 1, 1], [], []>} : vector<64x128xf32>, vector<128x32xf32>, vector<64x32xf32> -> vector<64x32xf32>
    %c0_81 = arith.constant 0 : index
    %c0_82 = arith.constant 0 : index
    %189 = vector.load %arg14[%c0_81, %c0_82] : memref<1x32xf32, #tpu.memory_space<vmem>>, vector<1x32xf32>
    %190 = vector.broadcast %189 : vector<1x32xf32> to vector<64x32xf32>
    %191 = arith.addf %188, %190 : vector<64x32xf32>
    %192 = arith.addf %117, %191 : vector<64x32xf32>
    %c0_83 = arith.constant 0 : index
    %c0_84 = arith.constant 0 : index
    %c0_85 = arith.constant 0 : index
    %193 = vector.load %arg15[%c0_83, %c0_84, %c0_85] : memref<1x64x32xf32, #tpu.memory_space<vmem>>, vector<1x64x32xf32>
    %194 = vector.shape_cast %193 : vector<1x64x32xf32> to vector<64x32xf32>
    %195 = vector.shape_cast %192 : vector<64x32xf32> to vector<1x64x32xf32>
    tpu.vector_store %arg15[%c0_83, %c0_84, %c0_85], %195 {strides = array<i32>} : memref<1x64x32xf32, #tpu.memory_space<vmem>>, vector<1x64x32xf32>,
    return
  }
  func.func @transform_0(%arg0: i32) -> (i32, i32, i32) {
    %c0_i32 = arith.constant 0 : i32
    %c0_i32_0 = arith.constant 0 : i32
    %c0_i32_1 = arith.constant 0 : i32
    return %arg0, %c0_i32, %c0_i32_0 : i32, i32, i32
  }
  func.func @transform_1(%arg0: i32) -> (i32, i32) {
    %c0_i32 = arith.constant 0 : i32
    %c0_i32_0 = arith.constant 0 : i32
    %c0_i32_1 = arith.constant 0 : i32
    return %c0_i32, %c0_i32_0 : i32, i32
  }
  func.func @transform_2(%arg0: i32) -> (i32, i32) {
    %c0_i32 = arith.constant 0 : i32
    %c0_i32_0 = arith.constant 0 : i32
    %c0_i32_1 = arith.constant 0 : i32
    return %c0_i32, %c0_i32_0 : i32, i32
  }
  func.func @transform_3(%arg0: i32) -> (i32, i32) {
    %c0_i32 = arith.constant 0 : i32
    %c0_i32_0 = arith.constant 0 : i32
    %c0_i32_1 = arith.constant 0 : i32
    return %c0_i32, %c0_i32_0 : i32, i32
  }
  func.func @transform_4(%arg0: i32) -> (i32, i32) {
    %c0_i32 = arith.constant 0 : i32
    %c0_i32_0 = arith.constant 0 : i32
    %c0_i32_1 = arith.constant 0 : i32
    return %c0_i32, %c0_i32_0 : i32, i32
  }
  func.func @transform_5(%arg0: i32) -> (i32, i32) {
    %c0_i32 = arith.constant 0 : i32
    %c0_i32_0 = arith.constant 0 : i32
    %c0_i32_1 = arith.constant 0 : i32
    return %c0_i32, %c0_i32_0 : i32, i32
  }
  func.func @transform_6(%arg0: i32) -> (i32, i32) {
    %c0_i32 = arith.constant 0 : i32
    %c0_i32_0 = arith.constant 0 : i32
    %c0_i32_1 = arith.constant 0 : i32
    return %c0_i32, %c0_i32_0 : i32, i32
  }
  func.func @transform_7(%arg0: i32) -> (i32, i32, i32) {
    %c0_i32 = arith.constant 0 : i32
    %c0_i32_0 = arith.constant 0 : i32
    %c0_i32_1 = arith.constant 0 : i32
    %c0_i32_2 = arith.constant 0 : i32
    return %c0_i32, %c0_i32_0, %c0_i32_1 : i32, i32, i32
  }
  func.func @transform_8(%arg0: i32) -> (i32, i32) {
    %c0_i32 = arith.constant 0 : i32
    %c0_i32_0 = arith.constant 0 : i32
    %c0_i32_1 = arith.constant 0 : i32
    return %c0_i32, %c0_i32_0 : i32, i32
  }
  func.func @transform_9(%arg0: i32) -> (i32, i32) {
    %c0_i32 = arith.constant 0 : i32
    %c0_i32_0 = arith.constant 0 : i32
    %c0_i32_1 = arith.constant 0 : i32
    return %c0_i32, %c0_i32_0 : i32, i32
  }
  func.func @transform_10(%arg0: i32) -> (i32, i32) {
    %c0_i32 = arith.constant 0 : i32
    %c0_i32_0 = arith.constant 0 : i32
    %c0_i32_1 = arith.constant 0 : i32
    return %c0_i32, %c0_i32_0 : i32, i32
  }
  func.func @transform_11(%arg0: i32) -> (i32, i32) {
    %c0_i32 = arith.constant 0 : i32
    %c0_i32_0 = arith.constant 0 : i32
    %c0_i32_1 = arith.constant 0 : i32
    return %c0_i32, %c0_i32_0 : i32, i32
  }
  func.func @transform_12(%arg0: i32) -> (i32, i32) {
    %c0_i32 = arith.constant 0 : i32
    %c0_i32_0 = arith.constant 0 : i32
    %c0_i32_1 = arith.constant 0 : i32
    return %c0_i32, %c0_i32_0 : i32, i32
  }
  func.func @transform_13(%arg0: i32) -> (i32, i32) {
    %c0_i32 = arith.constant 0 : i32
    %c0_i32_0 = arith.constant 0 : i32
    %c0_i32_1 = arith.constant 0 : i32
    return %c0_i32, %c0_i32_0 : i32, i32
  }
  func.func @transform_14(%arg0: i32) -> (i32, i32, i32) {
    %c0_i32 = arith.constant 0 : i32
    %c0_i32_0 = arith.constant 0 : i32
    %c0_i32_1 = arith.constant 0 : i32
    return %arg0, %c0_i32, %c0_i32_0 : i32, i32, i32
  }
}

</mosaic_0001>

<bundles_post_ra>
// kernel: swin_block_forward.1
= control target key start
LH: loop header
LB: loop body
LE: loop exit
PB: predicated region body
PF: predicated region fallthrough
CT: control target
= control target key end

     0   :  { %s3718_s29 = smov 0   ;;  %s5190_s0 = inlined_call_operand.vmem [shape: f32[2,64,32], index: 0, kind: input, shape index: {}]   ;;  %s5191_s1 = inlined_call_operand.vmem [shape: f32[1,32], index: 1, kind: input, shape index: {}]   ;;  %s5192_s2 = inlined_call_operand.vmem [shape: f32[1,32], index: 2, kind: input, shape index: {}]   ;;  %s5193_s3 = inlined_call_operand.vmem [shape: f32[32,96], index: 3, kind: input, shape index: {}]   ;;  %s5194_s4 = inlined_call_operand.vmem [shape: f32[1,96], index: 4, kind: input, shape index: {}]   ;;  %s5195_s5 = inlined_call_operand.vmem [shape: f32[32,32], index: 5, kind: input, shape index: {}]   ;;  %s5196_s6 = inlined_call_operand.vmem [shape: f32[1,32], index: 6, kind: input, shape index: {}]   ;;  %s5197_s7 = inlined_call_operand.vmem [shape: f32[4,64,64], index: 7, kind: input, shape index: {}]   ;;  %s5198_s8 = inlined_call_operand.vmem [shape: f32[1,32], index: 8, kind: input, shape index: {}]   ;;  %s5199_s9 = inlined_call_operand.vmem [shape: f32[1,32], index: 9, kind: input, shape index: {}]   ;;  %s5200_s10 = inlined_call_operand.vmem [shape: f32[32,128], index: 10, kind: input, shape index: {}]   ;;  %s5201_s11 = inlined_call_operand.vmem [shape: f32[1,128], index: 11, kind: input, shape index: {}]   ;;  %s5202_s12 = inlined_call_operand.vmem [shape: f32[128,32], index: 12, kind: input, shape index: {}]   ;;  %s5203_s13 = inlined_call_operand.vmem [shape: f32[1,32], index: 13, kind: input, shape index: {}]   ;;  %s5204_s14 = inlined_call_operand.vmem [shape: f32[2,64,32], index: 14, kind: output, shape index: {}]  }
   0x1 LB: > { %s3114_s30 = sadd.s32 4294967295, %s3626_s29   ;;  %p3118_p0 = scmp.ge.s32.totalorder %s3626_s29, 1  ;;  %s3626_s29 = sphi %s3718_s29, %s24_s29  }
   0x2   : > { %p412_p1 = scmp.lt.s32.totalorder %s3626_s29, 3 }
   0x4   : > { %p413_p2 = pnand %p3118_p0, %p412_p1 }
   0x5   : > { %p458_p3 = scmp.lt.s32.totalorder (!%p413_p2), %s3114_s30, 1  ;;  %s3629_s21 = smov (!%p413_p2), 96  }
   0x6   : > { %416 = sbr.rel (%p413_p2) target bundleno = 2701 (0xa8d), region = 76  ;;  %s3630_s22 = smov (!%p413_p2), 88  }
   0x7   : > { %s3631_s23 = smov (!%p413_p2), 72   ;;  %s3632_s24 = smov (!%p413_p2), 64  }
   0x8   : > { %s3633_s25 = smov (!%p413_p2), 80   ;;  %s3634_s26 = smov (!%p413_p2), 120  }
   0x9   : > { %s3635_s27 = smov (!%p413_p2), 112   ;;  %s3636_s28 = smov (!%p413_p2), 104  }
   0xa   : > { %s3639_s16 = smov (!%p413_p2), 40   ;;  %s3642_s20 = smov (!%p413_p2), 24  }
   0xb   : > { %s5210_s30 = smov (!%p458_p3, %s3114_s30), 1  ;;  %vm478_vm0 = vcmask 261120   ;;  %v3628_v14 = vmov 32.0  }
   0xc   : > { %s3269_s15 = sshll.u32 %s5210_s30, 6  ;;  %3386 = vrcp.f32 %v3628_v14 }
   0xd   : > { %s3734_s18 = scalar_lea.vmem %s5190_s0, %s3269_s15  ;;  %s467_s19 = scalar_lea.vmem %s5204_s14, %s3269_s15 }
   0xe   : > { %v472_v0 = vld [vmem:[%s3734_s18 + $0x20] sm:$0xff]  ;;  %v470_v1 = vld [vmem:[%s3734_s18 + $0x10] sm:$0xff]  ;;  %v473_v6 = vld [vmem:[%s3734_s18 + $0x28] sm:$0xff] }
   0xf   : > { %v468_v2 = vld [vmem:[%s3734_s18] sm:$0xff]  ;;  %v491_v3 = vsel %vm478_vm0, %v472_v0, 0.0  ;;  %v485_v4 = vsel %vm478_vm0, %v470_v1, 0.0  ;;  %v471_v7 = vld [vmem:[%s3734_s18 + $0x18] sm:$0xff]  ;;  %v469_v8 = vld [vmem:[%s3734_s18 + $0x8] sm:$0xff]  ;;  %v494_v9 = vsel %vm478_vm0, %v473_v6, 0.0 }
  0x10   : > { %v479_v5 = vsel %vm478_vm0, %v468_v2, 0.0  ;;  %492 = vadd.xlane.f32.xlu2 %v491_v3  ;;  %486 = vadd.xlane.f32.xlu1 %v485_v4  ;;  %v488_v10 = vsel %vm478_vm0, %v471_v7, 0.0  ;;  %v482_v11 = vsel %vm478_vm0, %v469_v8, 0.0  ;;  %v474_v12 = vld [vmem:[%s3734_s18 + $0x30] sm:$0xff]  ;;  %v475_v40 = vld [vmem:[%s3734_s18 + $0x38] sm:$0xff] }
  0x11   : > { %480 = vadd.xlane.f32.xlu0 %v479_v5  ;;  %v497_v13 = vsel %vm478_vm0, %v474_v12, 0.0  ;;  %v500_v45 = vsel %vm478_vm0, %v475_v40, 0.0 }
  0x12   : > { %v3387_v15 = vpop.eup %3386 }
  0x13   : > { %v504_v16 = vmul.f32 32.0, %v3387_v15  ;;  %vm508_vm1 = vweird.f32 %v3387_v15 }
  0x15   : > { %v505_v17 = vsub.f32 1.0, %v504_v16 }
  0x17   : > { %v506_v18 = vmul.f32 %v3387_v15, %v505_v17 }
  0x18   : > { %495 = vadd.xlane.f32.xlu2 %v494_v9  ;;  %489 = vadd.xlane.f32.xlu1 %v488_v10 }
  0x19   : > { %483 = vadd.xlane.f32.xlu0 %v482_v11  ;;  %v507_v19 = vadd.f32 %v3387_v15, %v506_v18  ;;  %v812_v11 = vld [vmem:[%s5193_s3] sm:$0xff] }
  0x1b   : > { %v3750_v20 = vsel %vm508_vm1, %v3387_v15, %v507_v19 }
  0x20   : > { %498 = vadd.xlane.f32.xlu1 %v497_v13 }
  0x83   : > { %v493_v21 = vpop.xlane.xlu2 %492  ;;  %v487_v22 = vpop.xlane.xlu1 %486 }
  0x84   : > { %v512_v23 = vmul.f32 %v3750_v20, %v487_v22  ;;  %v481_v24 = vpop.xlane.xlu0 %480  ;;  %v514_v36 = vmul.f32 %v3750_v20, %v493_v21 }
  0x85   : > { %v510_v25 = vmul.f32 %v3750_v20, %v481_v24 }
  0x86   : > { %v3754_v26 = vsub.f32 %v470_v1, %v512_v23  ;;  %v3775_v43 = vsub.f32 %v472_v0, %v514_v36  ;;  %v815_v0 = vld [vmem:[%s5193_s3 + $0x18] sm:$0xff]  ;;  %v814_v1 = vld [vmem:[%s5193_s3 + $0x10] sm:$0xff] }
  0x87   : > { %v3756_v27 = vsub.f32 %v468_v2, %v510_v25  ;;  %856 = vmatpush.msra.mxu0 %v815_v0 }
  0x88   : > { %v528_v28 = vmul.f32 %v3754_v26, %v3754_v26  ;;  %v530_v51 = vmul.f32 %v3775_v43, %v3775_v43 }
  0x89   : > { %v526_v29 = vmul.f32 %v3756_v27, %v3756_v27  ;;  %857 = vmatpush.msra.mxu0 %v814_v1 }
  0x8a   : > { %v540_v30 = vsel %vm478_vm0, %v528_v28, 0.0  ;;  %v546_v54 = vsel %vm478_vm0, %v530_v51, 0.0 }
  0x8b   : > { %v496_v31 = vpop.xlane.xlu2 %495  ;;  %541 = vadd.xlane.f32.xlu1 %v540_v30  ;;  %v534_v32 = vsel %vm478_vm0, %v526_v29, 0.0  ;;  %v490_v33 = vpop.xlane.xlu1 %489 }
  0x8c   : > { %v515_v34 = vmul.f32 %v3750_v20, %v496_v31  ;;  %535 = vadd.xlane.f32.xlu0 %v534_v32  ;;  %v484_v35 = vpop.xlane.xlu0 %483  ;;  %v513_v38 = vmul.f32 %v3750_v20, %v490_v33 }
  0x8d   : > { %v511_v37 = vmul.f32 %v3750_v20, %v484_v35 }
  0x8e   : > { %v3768_v39 = vsub.f32 %v473_v6, %v515_v34  ;;  %v3777_v44 = vsub.f32 %v471_v7, %v513_v38  ;;  %v813_v6 = vld [vmem:[%s5193_s3 + $0x8] sm:$0xff] }
  0x8f   : > { %v3771_v41 = vsub.f32 %v469_v8, %v511_v37  ;;  %858 = vmatpush.msra.mxu0 %v813_v6 }
  0x90   : > { %v531_v42 = vmul.f32 %v3768_v39, %v3768_v39  ;;  %v529_v52 = vmul.f32 %v3777_v44, %v3777_v44 }
  0x91   : > { %v527_v46 = vmul.f32 %v3771_v41, %v3771_v41  ;;  %859 = vmatpush.msra.mxu0 %v812_v11 }
  0x92   : > { %v549_v47 = vsel %vm478_vm0, %v531_v42, 0.0  ;;  %v543_v55 = vsel %vm478_vm0, %v529_v52, 0.0 }
  0x93   : > { %550 = vadd.xlane.f32.xlu1 %v549_v47  ;;  %v537_v48 = vsel %vm478_vm0, %v527_v46, 0.0  ;;  %v499_v49 = vpop.xlane.xlu1 %498 }
  0x94   : > { %501 = vadd.xlane.f32.xlu0 %v500_v45  ;;  %538 = vadd.xlane.f32.xlu2 %v537_v48  ;;  %v516_v50 = vmul.f32 %v3750_v20, %v499_v49 }
  0x96   : > { %v3789_v53 = vsub.f32 %v474_v12, %v516_v50 }
  0x98   : > { %v532_v56 = vmul.f32 %v3789_v53, %v3789_v53 }
  0x9a   : > { %v552_v57 = vsel %vm478_vm0, %v532_v56, 0.0 }
  0x9c   : > { %547 = vadd.xlane.f32.xlu0 %v546_v54  ;;  %544 = vadd.xlane.f32.xlu2 %v543_v55 }
  0xa4   : > { %553 = vadd.xlane.f32.xlu2 %v552_v57 }
  0xfe   : > { %v542_v58 = vpop.xlane.xlu1 %541 }
  0xff   : > { %v560_v59 = vmul.f32 %v542_v58, %v3750_v20  ;;  %v536_v60 = vpop.xlane.xlu0 %535 }
 0x100   : > { %v558_v61 = vmul.f32 %v536_v60, %v3750_v20 }
 0x101   : > { %v3798_v62 = vadd.f32 1e-05, %v560_v59 }
 0x102   : > { %v3800_v63 = vadd.f32 1e-05, %v558_v61 }
 0x103   : > { %3388 = vrsqrt.f32 %v3798_v62  ;;  %vm605_vm2 = vcmp.eq.f32.partialorder %v3798_v62, inf  ;;  %v608_v42 = vand.u32 2147483648, %v3798_v62  ;;  %vm607_vm3 = vcmp.eq.f32.partialorder %v3798_v62, 0.0 }
 0x104   : > { %3390 = vrsqrt.f32 %v3800_v63  ;;  %vm581_vm4 = vcmp.eq.f32.partialorder %v3800_v63, inf  ;;  %vm583_vm5 = vcmp.eq.f32.partialorder %v3800_v63, 0.0  ;;  %v584_v48 = vand.u32 2147483648, %v3800_v63 }
 0x106   : > { %v551_v2 = vpop.xlane.xlu1 %550 }
 0x107   : > { %v563_v3 = vmul.f32 %v551_v2, %v3750_v20  ;;  %v539_v4 = vpop.xlane.xlu2 %538  ;;  %v502_v5 = vpop.xlane.xlu0 %501 }
 0x108   : > { %v559_v7 = vmul.f32 %v539_v4, %v3750_v20  ;;  %v517_v8 = vmul.f32 %v3750_v20, %v502_v5 }
 0x109   : > { %v3389_v9 = vpop.eup %3388  ;;  %v3816_v10 = vadd.f32 1e-05, %v563_v3 }
 0x10a   : > { %v3391_v12 = vpop.eup %3390  ;;  %v599_v13 = vmul.f32 %v3389_v9, %v3798_v62  ;;  %v3822_v14 = vadd.f32 1e-05, %v559_v7  ;;  %v3824_v15 = vsub.f32 %v475_v40, %v517_v8 }
 0x10b   : > { %v575_v16 = vmul.f32 %v3391_v12, %v3800_v63  ;;  %3392 = vrsqrt.f32 %v3816_v10  ;;  %v644_v4 = vand.u32 2147483648, %v3816_v10  ;;  %vm641_vm10 = vcmp.eq.f32.partialorder %v3816_v10, inf }
 0x10c   : > { %v600_v17 = vmul.f32 %v3389_v9, %v599_v13  ;;  %3394 = vrsqrt.f32 %v3822_v14  ;;  %v533_v18 = vmul.f32 %v3824_v15, %v3824_v15  ;;  %vm593_vm6 = vcmp.eq.f32.partialorder %v3822_v14, inf }
 0x10d   : > { %v576_v19 = vmul.f32 %v3391_v12, %v575_v16  ;;  %vm595_vm7 = vcmp.eq.f32.partialorder %v3822_v14, 0.0  ;;  %v596_v3 = vand.u32 2147483648, %v3822_v14  ;;  %vm643_vm13 = vcmp.eq.f32.partialorder %v3816_v10, 0.0 }
 0x10e   : > { %v555_v21 = vsel %vm478_vm0, %v533_v18, 0.0  ;;  %v601_v22 = vmul.f32 0.5, %v600_v17 }
 0x10f   : > { %v545_v23 = vpop.xlane.xlu2 %544  ;;  %556 = vadd.xlane.f32.xlu0 %v555_v21  ;;  %v548_v24 = vpop.xlane.xlu0 %547  ;;  %v577_v25 = vmul.f32 0.5, %v576_v19 }
 0x110   : > { %v561_v28 = vmul.f32 %v545_v23, %v3750_v20  ;;  %v562_v29 = vmul.f32 %v548_v24, %v3750_v20  ;;  %v602_v30 = vsub.f32 1.5, %v601_v22 }
 0x111   : > { %v3834_v31 = vpop.eup %3392  ;;  %v578_v32 = vsub.f32 1.5, %v577_v25 }
 0x112   : > { %v3395_v33 = vpop.eup %3394  ;;  %v3836_v34 = vadd.f32 1e-05, %v561_v28  ;;  %v3838_v35 = vadd.f32 1e-05, %v562_v29  ;;  %v603_v36 = vmul.f32 %v3389_v9, %v602_v30  ;;  %v635_v37 = vmul.f32 %v3834_v31, %v3816_v10 }
 0x113   : > { %v587_v38 = vmul.f32 %v3395_v33, %v3822_v14  ;;  %v579_v40 = vmul.f32 %v3391_v12, %v578_v32 }
 0x114   : > { %3396 = vrsqrt.f32 %v3836_v34  ;;  %v604_v45 = vmul.f32 %v603_v36, %v3798_v62  ;;  %v636_v50 = vmul.f32 %v3834_v31, %v635_v37  ;;  %vm617_vm8 = vcmp.eq.f32.partialorder %v3836_v34, inf }
 0x115   : > { %v588_v46 = vmul.f32 %v3395_v33, %v587_v38  ;;  %3398 = vrsqrt.f32 %v3838_v35  ;;  %v580_v47 = vmul.f32 %v579_v40, %v3800_v63  ;;  %vm619_vm9 = vcmp.eq.f32.partialorder %v3836_v34, 0.0 }
 0x116   : > { %v606_v49 = vsel %vm605_vm2, %v3798_v62, %v604_v45  ;;  %v637_v0 = vmul.f32 0.5, %v636_v50  ;;  %v620_v17 = vand.u32 2147483648, %v3836_v34  ;;  %vm629_vm11 = vcmp.eq.f32.partialorder %v3838_v35, inf }
 0x117   : > { %v554_v51 = vpop.xlane.xlu2 %553  ;;  %v582_v52 = vsel %vm581_vm4, %v3800_v63, %v580_v47  ;;  %v589_v54 = vmul.f32 0.5, %v588_v46  ;;  %v3856_v55 = vsel %vm607_vm3, %v608_v42, %v606_v49  ;;  %vm631_vm12 = vcmp.eq.f32.partialorder %v3838_v35, 0.0 }
 0x118   : > { %v564_v56 = vmul.f32 %v554_v51, %v3750_v20  ;;  %v585_v57 = vsel %vm583_vm5, %v584_v48, %v582_v52  ;;  %3400 = vrcp.f32 %v3856_v55  ;;  %v638_v8 = vsub.f32 1.5, %v637_v0  ;;  %v3905_v51 = vld [vmem:[%s5191_s1] ss:$0 sm:$0xff] }
 0x119   : > { %3402 = vrcp.f32 %v585_v57  ;;  %v590_v59 = vsub.f32 1.5, %v589_v54  ;;  %v679_v23 = vand.u32 2147483647, %v585_v57  ;;  %v681_v25 = vand.u32 2147483648, %v585_v57 }
 0x11a   : > { %v3397_v58 = vpop.eup %3396  ;;  %v3861_v62 = vadd.f32 1e-05, %v564_v56  ;;  %v639_v24 = vmul.f32 %v3834_v31, %v638_v8  ;;  %v632_v30 = vand.u32 2147483648, %v3838_v35  ;;  %vm705_vm15 = vweird.f32 %v3856_v55 }
 0x11b   : > { %v3399_v60 = vpop.eup %3398  ;;  %v611_v61 = vmul.f32 %v3397_v58, %v3836_v34  ;;  %v591_v63 = vmul.f32 %v3395_v33, %v590_v59  ;;  %vm675_vm1 = vweird.f32 %v585_v57  ;;  %v709_v36 = vand.u32 2147483647, %v3856_v55 }
 0x11c   : > { %v623_v1 = vmul.f32 %v3399_v60, %v3838_v35  ;;  %3404 = vrsqrt.f32 %v3861_v62  ;;  %v711_v37 = vand.u32 2147483648, %v3856_v55  ;;  %vm680_vm2 = vcmp.eq.f32.partialorder %v679_v23, 8.507059e+37 }
 0x11d   : > { %v612_v2 = vmul.f32 %v3397_v58, %v611_v61  ;;  %v592_v7 = vmul.f32 %v591_v63, %v3822_v14  ;;  %v640_v42 = vmul.f32 %v639_v24, %v3816_v10  ;;  %v682_v45 = vor.u32 1.1754944e-38, %v681_v25 }
 0x11e   : > { %v3868_v5 = vpop.eup %3400  ;;  %v624_v6 = vmul.f32 %v3399_v60, %v623_v1 }
 0x11f   : > { %v3403_v9 = vpop.eup %3402  ;;  %v701_v11 = vmul.f32 %v3868_v5, %v3856_v55  ;;  %v613_v12 = vmul.f32 0.5, %v612_v2  ;;  %v594_v16 = vsel %vm593_vm6, %v3822_v14, %v592_v7  ;;  %vm706_vm4 = vweird.f32 %v3868_v5 }
 0x120   : > { %v671_v13 = vmul.f32 %v3403_v9, %v585_v57  ;;  %v625_v18 = vmul.f32 0.5, %v624_v6  ;;  %v597_v19 = vsel %vm595_vm7, %v596_v3, %v594_v16  ;;  %vm676_vm14 = vweird.f32 %v3403_v9  ;;  %vm3929_vm7 = vmor %vm705_vm15, %vm706_vm4 }
 0x121   : > { %v614_v21 = vsub.f32 1.5, %v613_v12  ;;  %3406 = vrcp.f32 %v597_v19  ;;  %v702_v28 = vsub.f32 1.0, %v701_v11  ;;  %vm677_vm3 = vmor %vm675_vm1, %vm676_vm14  ;;  %vm690_vm5 = vweird.f32 %v597_v19 }
 0x122   : > { %v672_v22 = vsub.f32 1.0, %v671_v13  ;;  %v626_v14 = vsub.f32 1.5, %v625_v18  ;;  %v3889_v33 = vpop.eup %3404  ;;  %v696_v61 = vand.u32 2147483648, %v597_v19  ;;  %v712_v11 = vor.u32 1.1754944e-38, %v711_v37 }
 0x123   : > { %v615_v29 = vmul.f32 %v3397_v58, %v614_v21  ;;  %v703_v46 = vmul.f32 %v3868_v5, %v702_v28  ;;  %v647_v49 = vmul.f32 %v3889_v33, %v3861_v62  ;;  %v694_v58 = vand.u32 2147483647, %v597_v19 }
 0x124   : > { %v673_v32 = vmul.f32 %v3403_v9, %v672_v22  ;;  %v627_v40 = vmul.f32 %v3399_v60, %v626_v14  ;;  %v3914_v60 = vld [vmem:[%s5192_s2] ss:$0 sm:$0xff]  ;;  %v697_v55 = vor.u32 1.1754944e-38, %v696_v61  ;;  %vm655_vm15 = vcmp.eq.f32.partialorder %v3861_v62, 0.0 }
 0x125   : > { %v616_v31 = vmul.f32 %v615_v29, %v3836_v34  ;;  %v704_v1 = vadd.f32 %v3868_v5, %v703_v46 }
 0x126   : > { %v674_v38 = vadd.f32 %v3403_v9, %v673_v32  ;;  %v628_v54 = vmul.f32 %v627_v40, %v3838_v35  ;;  %v656_v32 = vand.u32 2147483648, %v3861_v62 }
 0x127   : > { %v618_v47 = vsel %vm617_vm8, %v3836_v34, %v616_v31  ;;  %v3407_v48 = vpop.eup %3406  ;;  %v642_v34 = vsel %vm641_vm10, %v3816_v10, %v640_v42  ;;  %vm710_vm10 = vcmp.eq.f32.partialorder %v709_v36, 8.507059e+37 }
 0x128   : > { %v678_v50 = vsel %vm677_vm3, %v3403_v9, %v674_v38  ;;  %v621_v52 = vsel %vm619_vm9, %v620_v17, %v618_v47  ;;  %v686_v57 = vmul.f32 %v3407_v48, %v597_v19  ;;  %vm691_vm6 = vweird.f32 %v3407_v48 }
 0x129   : > { %v683_v56 = vsel %vm680_vm2, %v682_v45, %v678_v50  ;;  %3408 = vrcp.f32 %v621_v52  ;;  %v630_v63 = vsel %vm629_vm11, %v3838_v35, %v628_v54  ;;  %v3942_v8 = vsel %vm643_vm13, %v644_v4, %v642_v34  ;;  %vm692_vm8 = vmor %vm690_vm5, %vm691_vm6 }
 0x12a   : > { %v684_v59 = vmul.f32 %v683_v56, %v3756_v27  ;;  %v687_v0 = vsub.f32 1.0, %v686_v57  ;;  %v648_v27 = vmul.f32 %v3889_v33, %v647_v49  ;;  %v3935_v6 = vsel %vm631_vm12, %v632_v30, %v630_v63 }
 0x12b   : > { %3410 = vrcp.f32 %v3935_v6  ;;  %vm695_vm9 = vcmp.eq.f32.partialorder %v694_v58, 8.507059e+37  ;;  %v708_v35 = vsel %vm3929_vm7, %v3868_v5, %v704_v1  ;;  %vm720_vm11 = vweird.f32 %v621_v52 }
 0x12c   : > { %v793_v2 = vmul.f32 %v3905_v51, %v684_v59  ;;  %v688_v7 = vmul.f32 %v3407_v48, %v687_v0  ;;  %3412 = vrcp.f32 %v3942_v8  ;;  %v649_v10 = vmul.f32 0.5, %v648_v27 }
 0x12d   : > { %v713_v18 = vsel %vm710_vm10, %v712_v11, %v708_v35  ;;  %v724_v24 = vand.u32 2147483647, %v621_v52  ;;  %v726_v5 = vand.u32 2147483648, %v621_v52  ;;  %vm653_vm13 = vcmp.eq.f32.partialorder %v3861_v62, inf }
 0x12e   : > { %v804_v9 = vadd.f32 %v3914_v60, %v793_v2  ;;  %v689_v12 = vadd.f32 %v3407_v48, %v688_v7  ;;  %v650_v19 = vsub.f32 1.5, %v649_v10  ;;  %vm735_vm2 = vweird.f32 %v3935_v6 }
 0x12f   : > { %v3409_v13 = vpop.eup %3408  ;;  %vm725_vm1 = vcmp.eq.f32.partialorder %v724_v24, 8.507059e+37  ;;  %v727_v40 = vor.u32 1.1754944e-38, %v726_v5  ;;  %v741_v50 = vand.u32 2147483648, %v3935_v6  ;;  %vm750_vm6 = vweird.f32 %v3942_v8 }
 0x130   : > { %3123 = vmatmul.msk.f32.vlgmr.msra.gmra.mxu0 %vm478_vm0, %v804_v9  ;;  %v693_v4 = vsel %vm692_vm8, %v3407_v48, %v689_v12  ;;  %v716_v16 = vmul.f32 %v3409_v13, %v621_v52  ;;  %vm721_vm12 = vweird.f32 %v3409_v13  ;;  %v651_v28 = vmul.f32 %v3889_v33, %v650_v19 }
 0x131   : > { %v698_v17 = vsel %vm695_vm9, %v697_v55, %v693_v4  ;;  %v3411_v21 = vpop.eup %3410  ;;  %vm3957_vm14 = vmor %vm720_vm11, %vm721_vm12  ;;  %v714_v33 = vmul.f32 %v713_v18, %v3754_v26  ;;  %v742_v59 = vor.u32 1.1754944e-38, %v741_v50  ;;  %v756_v27 = vand.u32 2147483648, %v3942_v8 }
 0x132   : > { %v699_v22 = vmul.f32 %v698_v17, %v3771_v41  ;;  %v717_v23 = vsub.f32 1.0, %v716_v16  ;;  %v731_v25 = vmul.f32 %v3411_v21, %v3935_v6  ;;  %v3413_v14 = vpop.eup %3412  ;;  %v652_v37 = vmul.f32 %v651_v28, %v3861_v62 }
 0x133   : > { %v746_v47 = vmul.f32 %v3413_v14, %v3942_v8  ;;  %v795_v49 = vmul.f32 %v3905_v51, %v714_v33  ;;  %vm736_vm3 = vweird.f32 %v3411_v21  ;;  %vm751_vm7 = vweird.f32 %v3413_v14 }
 0x134   : > { %v794_v29 = vmul.f32 %v3905_v51, %v699_v22  ;;  %v718_v30 = vmul.f32 %v3409_v13, %v717_v23  ;;  %v732_v41 = vsub.f32 1.0, %v731_v25  ;;  %v654_v42 = vsel %vm653_vm13, %v3861_v62, %v652_v37  ;;  %vm737_vm4 = vmor %vm735_vm2, %vm736_vm3 }
 0x135   : > { %v657_v48 = vsel %vm655_vm15, %v656_v32, %v654_v42  ;;  %v739_v62 = vand.u32 2147483647, %v3935_v6  ;;  %v747_v54 = vsub.f32 1.0, %v746_v47  ;;  %v806_v56 = vadd.f32 %v3914_v60, %v795_v49  ;;  %vm752_vm8 = vmor %vm750_vm6, %vm751_vm7 }
 0x136   : > { %v805_v31 = vadd.f32 %v3914_v60, %v794_v29  ;;  %v719_v38 = vadd.f32 %v3409_v13, %v718_v30  ;;  %v733_v46 = vmul.f32 %v3411_v21, %v732_v41  ;;  %3414 = vrcp.f32 %v657_v48 }
 0x137   : > { %vm740_vm5 = vcmp.eq.f32.partialorder %v739_v62, 8.507059e+37  ;;  %v748_v34 = vmul.f32 %v3413_v14, %v747_v54  ;;  %v754_v3 = vand.u32 2147483647, %v3942_v8  ;;  %v757_v9 = vor.u32 1.1754944e-38, %v756_v27 }
 0x138   : > { %3124 = vmatmul.msk.f32.gmra.mxu0 %vm478_vm0, %v805_v31  ;;  %v723_v45 = vsel %vm3957_vm14, %v3409_v13, %v719_v38  ;;  %v734_v52 = vadd.f32 %v3411_v21, %v733_v46  ;;  %vm765_vm10 = vweird.f32 %v657_v48  ;;  %v771_v13 = vand.u32 2147483648, %v657_v48 }
 0x139   : > { %v728_v26 = vsel %vm725_vm1, %v727_v40, %v723_v45  ;;  %v749_v2 = vadd.f32 %v3413_v14, %v748_v34  ;;  %vm755_vm9 = vcmp.eq.f32.partialorder %v754_v3, 8.507059e+37  ;;  %v769_v8 = vand.u32 2147483647, %v657_v48 }
 0x13a   : > { %v729_v57 = vmul.f32 %v728_v26, %v3777_v44  ;;  %v738_v61 = vsel %vm737_vm4, %v3411_v21, %v734_v52  ;;  %vm1007_vm6 = vcmask 523264   ;;  %vm2162_vm7 = vcmask 130048  }
 0x13b   : > { %v743_v63 = vsel %vm740_vm5, %v742_v59, %v738_v61  ;;  %v753_v55 = vsel %vm752_vm8, %v3413_v14, %v749_v2  ;;  %vm770_vm13 = vcmp.eq.f32.partialorder %v769_v8, 8.507059e+37  ;;  %v3380_v61 = vld [vmem:[%s5194_s4] ss:$0 sm:$0xff]  ;;  %vm925_vm5 = vcmask 64512  }
 0x13c   : > { %v3415_v58 = vpop.eup %3414  ;;  %v796_v1 = vmul.f32 %v3905_v51, %v729_v57  ;;  %v744_v7 = vmul.f32 %v743_v63, %v3775_v43  ;;  %v758_v35 = vsel %vm755_vm9, %v757_v9, %v753_v55  ;;  %v772_v43 = vor.u32 1.1754944e-38, %v771_v13 }
 0x13d   : > { %v761_v0 = vmul.f32 %v3415_v58, %v657_v48  ;;  %vm766_vm11 = vweird.f32 %v3415_v58  ;;  %v759_v16 = vmul.f32 %v758_v35, %v3768_v39  ;;  %vm2171_vm8 = vcmask 195584  }
 0x13e   : > { %v807_v6 = vadd.f32 %v3914_v60, %v796_v1  ;;  %v797_v12 = vmul.f32 %v3905_v51, %v744_v7  ;;  %vm767_vm12 = vmor %vm765_vm10, %vm766_vm11 }
 0x13f   : > { %v762_v44 = vsub.f32 1.0, %v761_v0  ;;  %v798_v18 = vmul.f32 %v3905_v51, %v759_v16 }
 0x140   : > { %3125 = vmatmul.msk.f32.gmra.mxu0 %vm478_vm0, %v806_v56  ;;  %v808_v4 = vadd.f32 %v3914_v60, %v797_v12 }
 0x141   : > { %v763_v11 = vmul.f32 %v3415_v58, %v762_v44  ;;  %v809_v21 = vadd.f32 %v3914_v60, %v798_v18 }
 0x143   : > { %v764_v10 = vadd.f32 %v3415_v58, %v763_v11 }
 0x145   : > { %v768_v17 = vsel %vm767_vm12, %v3415_v58, %v764_v10 }
 0x146   : > { %v773_v19 = vsel %vm770_vm13, %v772_v43, %v768_v17 }
 0x147   : > { %v774_v22 = vmul.f32 %v773_v19, %v3789_v53 }
 0x148   : > { %3126 = vmatmul.msk.f32.gmra.mxu0 %vm478_vm0, %v807_v6 }
 0x149   : > { %v799_v23 = vmul.f32 %v3905_v51, %v774_v22 }
 0x14b   : > { %v810_v24 = vadd.f32 %v3914_v60, %v799_v23 }
 0x150   : > { %3127 = vmatmul.msk.f32.gmra.mxu0 %vm478_vm0, %v808_v4 }
 0x158   : > { %3128 = vmatmul.msk.f32.gmra.mxu0 %vm478_vm0, %v809_v21 }
 0x160   : > { %3129 = vmatmul.msk.f32.gmra.mxu0 %vm478_vm0, %v810_v24 }
 0x182   : > { %v557_v39 = vpop.xlane.xlu0 %556 }
 0x183   : > { %v565_v5 = vmul.f32 %v557_v39, %v3750_v20 }
 0x185   : > { %v573_v25 = vadd.f32 1e-05, %v565_v5 }
 0x187   : > { %3416 = vrsqrt.f32 %v573_v25  ;;  %vm665_vm14 = vcmp.eq.f32.partialorder %v573_v25, inf  ;;  %v668_v41 = vand.u32 2147483648, %v573_v25  ;;  %vm667_vm15 = vcmp.eq.f32.partialorder %v573_v25, 0.0 }
 0x18d   : > { %v3417_v28 = vpop.eup %3416 }
 0x18e   : > { %v659_v29 = vmul.f32 %v3417_v28, %v573_v25 }
 0x190   : > { %v660_v30 = vmul.f32 %v3417_v28, %v659_v29 }
 0x192   : > { %v661_v32 = vmul.f32 0.5, %v660_v30 }
 0x194   : > { %v662_v14 = vsub.f32 1.5, %v661_v32 }
 0x196   : > { %v663_v36 = vmul.f32 %v3417_v28, %v662_v14 }
 0x198   : > { %v664_v53 = vmul.f32 %v663_v36, %v573_v25 }
 0x19a   : > { %v666_v37 = vsel %vm665_vm14, %v573_v25, %v664_v53 }
 0x19b   : > { %v669_v31 = vsel %vm667_vm15, %v668_v41, %v666_v37 }
 0x19c   : > { %3418 = vrcp.f32 %v669_v31  ;;  %v786_v42 = vand.u32 2147483648, %v669_v31  ;;  %v784_v46 = vand.u32 2147483647, %v669_v31  ;;  %vm780_vm2 = vweird.f32 %v669_v31 }
 0x19e   : > { %v787_v48 = vor.u32 1.1754944e-38, %v786_v42  ;;  %vm785_vm4 = vcmp.eq.f32.partialorder %v784_v46, 8.507059e+37 }
 0x1a2   : > { %v3419_v33 = vpop.eup %3418 }
 0x1a3   : > { %v776_v38 = vmul.f32 %v3419_v33, %v669_v31  ;;  %vm781_vm1 = vweird.f32 %v3419_v33 }
 0x1a4   : > { %vm782_vm3 = vmor %vm780_vm2, %vm781_vm1 }
 0x1a5   : > { %v777_v40 = vsub.f32 1.0, %v776_v38 }
 0x1a7   : > { %v778_v45 = vmul.f32 %v3419_v33, %v777_v40 }
 0x1a9   : > { %v779_v47 = vadd.f32 %v3419_v33, %v778_v45 }
 0x1ab   : > { %v783_v49 = vsel %vm782_vm3, %v3419_v33, %v779_v47 }
 0x1ac   : > { %v788_v26 = vsel %vm785_vm4, %v787_v48, %v783_v49 }
 0x1ad   : > { %v861_v50 = vpop.f32.mrf.mxu0  ;;  %v789_v52 = vmul.f32 %v788_v26, %v3824_v15 }
 0x1ae   : > { %v862_v44 = vadd.f32 %v3380_v61, %v861_v50 }
 0x1af   : > { %v800_v62 = vmul.f32 %v3905_v51, %v789_v52 }
 0x1b0   : > { %v4064_v35 = vmul.f32 0.35355338, %v862_v44 }
 0x1b1   : > { %v811_v54 = vadd.f32 %v3914_v60, %v800_v62 }
 0x1b3   : > { %3130 = vmatmul.msk.f32.gmra.mxu0 %vm478_vm0, %v811_v54 }
 0x1b5   : > { %v864_v56 = vpop.f32.mrf.mxu0 }
 0x1b6   : > { %v4015_v63 = vadd.f32 %v3380_v61, %v864_v56 }
 0x1b8   : > { %v4042_v6 = vmul.f32 0.35355338, %v4015_v63  ;;  %v4083_v10 = vpack.i.bf16 %v862_v44, %v4015_v63 }
 0x1bd   : > { %v867_v57 = vpop.f32.mrf.mxu0 }
 0x1be   : > { %v868_v51 = vadd.f32 %v3380_v61, %v867_v57 }
 0x1c0   : > { %v4047_v7 = vmul.f32 0.35355338, %v868_v51 }
 0x1c5   : > { %v870_v58 = vpop.f32.mrf.mxu0 }
 0x1c6   : > { %v871_v2 = vadd.f32 %v3380_v61, %v870_v58 }
 0x1c8   : > { %v4034_v3 = vpack.i.bf16 %v868_v51, %v871_v2  ;;  %v4052_v9 = vmul.f32 0.35355338, %v871_v2 }
 0x1cd   : > { %v873_v59 = vpop.f32.mrf.mxu0 }
 0x1ce   : > { %v874_v1 = vadd.f32 %v3380_v61, %v873_v59 }
 0x1d0   : > { %v4058_v12 = vmul.f32 0.35355338, %v874_v1 }
 0x1d5   : > { %v876_v34 = vpop.f32.mrf.mxu0 }
 0x1d6   : > { %v4003_v0 = vadd.f32 %v3380_v61, %v876_v34 }
 0x1d8   : > { %919 = vrot.lane.b32.xlu0 %v4003_v0, %s3629_s21  ;;  %v4025_v27 = vpack.i.bf16 %v874_v1, %v4003_v0  ;;  %v4096_v8 = vmul.f32 0.35355338, %v4003_v0 }
 0x1dd   : > { %v879_v15 = vpop.f32.mrf.mxu0 }
 0x1de   : > { %v4007_v60 = vadd.f32 %v3380_v61, %v879_v15 }
 0x1e0   : > { %921 = vrot.lane.b32.xlu2 %v4007_v60, %s3629_s21  ;;  %913 = vrot.lane.b32.xlu0 %v868_v51, %s3629_s21  ;;  %v4072_v13 = vmul.f32 0.35355338, %v4007_v60 }
 0x1e8   : > { %1222 = vrot.lane.b32.xlu0 %v4007_v60, %s3630_s22  ;;  %917 = vrot.lane.b32.xlu2 %v874_v1, %s3629_s21 }
 0x1f0   : > { %1218 = vrot.lane.b32.xlu0 %v874_v1, %s3630_s22  ;;  %911 = vrot.lane.b32.xlu2 %v4015_v63, %s3629_s21 }
 0x1f8   : > { %1212 = vrot.lane.b32.xlu0 %v4015_v63, %s3630_s22  ;;  %1220 = vrot.lane.b32.xlu2 %v4003_v0, %s3630_s22 }
 0x200   : > { %1804 = vrot.lane.b32.xlu0 %v4007_v60, %s3631_s23  ;;  %3299 = vrot.lane.b32.xlu2 %v4025_v27, %s3632_s24 }
 0x208   : > { %1511 = vrot.lane.b32.xlu0 %v4003_v0, %s3633_s25  ;;  %1214 = vrot.lane.b32.xlu2 %v868_v51, %s3630_s22 }
 0x210   : > { %1509 = vrot.lane.b32.xlu0 %v874_v1, %s3633_s25  ;;  %3304 = vrot.lane.b32.xlu2 %v4034_v3, %s3632_s24 }
 0x218   : > { %1800 = vrot.lane.b32.xlu0 %v874_v1, %s3631_s23  ;;  %1210 = vrot.lane.b32.xlu2 %v862_v44, %s3630_s22 }
 0x220   : > { %1507 = vrot.lane.b32.xlu0 %v871_v2, %s3633_s25  ;;  %1196 = vrot.lane.b32.xlu2 %v4042_v6, %s3634_s26 }
 0x228   : > { %1798 = vrot.lane.b32.xlu0 %v871_v2, %s3631_s23  ;;  %1198 = vrot.lane.b32.xlu2 %v4047_v7, %s3634_s26 }
 0x230   : > { %v882_v55 = vpop.f32.mrf.mxu0  ;;  %1505 = vrot.lane.b32.xlu0 %v868_v51, %s3633_s25  ;;  %1200 = vrot.lane.b32.xlu2 %v4052_v9, %s3634_s26 }
 0x231   : > { %v883_v11 = vadd.f32 %v3380_v61, %v882_v55 }
 0x233   : > { %923 = vrot.lane.b32.xlu1 %v883_v11, %s3629_s21  ;;  %v4100_v4 = vmul.f32 0.35355338, %v883_v11  ;;  %v4124_v19 = vpack.i.bf16 %v4007_v60, %v883_v11 }
 0x238   : > { %1501 = vrot.lane.b32.xlu0 %v862_v44, %s3633_s25  ;;  %1202 = vrot.lane.b32.xlu2 %v4058_v12, %s3634_s26 }
 0x23a   : > { %v922_v21 = vpop.permute.xlu2 %921 }
 0x23b   : > { %915 = vrot.lane.b32.xlu1 %v871_v2, %s3629_s21 }
 0x240   : > { %1485 = vrot.lane.b32.xlu0 %v4064_v35, %s3635_s27  ;;  %1513 = vrot.lane.b32.xlu2 %v4007_v60, %s3633_s25 }
 0x242   : > { %v918_v23 = vpop.permute.xlu2 %917 }
 0x243   : > { %909 = vrot.lane.b32.xlu1 %v862_v44, %s3629_s21 }
 0x248   : > { %1487 = vrot.lane.b32.xlu0 %v4042_v6, %s3635_s27  ;;  %1206 = vrot.lane.b32.xlu2 %v4072_v13, %s3634_s26 }
 0x24a   : > { %v920_v16 = vpop.permute.xlu0 %919  ;;  %v912_v5 = vpop.permute.xlu2 %911 }
 0x24b   : > { %1216 = vrot.lane.b32.xlu1 %v871_v2, %s3630_s22 }
 0x250   : > { %1780 = vrot.lane.b32.xlu0 %v4047_v7, %s3636_s28  ;;  %1796 = vrot.lane.b32.xlu2 %v868_v51, %s3631_s23 }
 0x252   : > { %v914_v43 = vpop.permute.xlu0 %913  ;;  %v1221_v29 = vpop.permute.xlu2 %1220 }
 0x253   : > { %3309 = vrot.lane.b32.xlu1 %v4083_v10, %s3632_s24 }
 0x258   : > { %1493 = vrot.lane.b32.xlu0 %v4058_v12, %s3635_s27  ;;  %1503 = vrot.lane.b32.xlu2 %v4015_v63, %s3633_s25 }
 0x25a   : > { %v1223_v17 = vpop.permute.xlu0 %1222  ;;  %v3300_v36 = vpop.permute.xlu2 %3299 }
 0x25b   : > { %1194 = vrot.lane.b32.xlu1 %v4064_v35, %s3634_s26  ;;  %v3301_v51 = vunpack.i.l.bf16 %v3300_v36  ;;  %v3302_v60 = vunpack.i.h.bf16 %v3300_v36  ;;  %v897_v36 = vld [vmem:[%s5197_s7 + $0x20] sm:$0xff] }
 0x260   : > { %1792 = vrot.lane.b32.xlu2 %v862_v44, %s3631_s23  ;;  %1806 = vrot.lane.b32.xlu0 %v883_v11, %s3631_s23 }
 0x262   : > { %v4121_v18 = vpop.permute.xlu0 %1218  ;;  %v1215_v37 = vpop.permute.xlu2 %1214 }
 0x263   : > { %1204 = vrot.lane.b32.xlu1 %v4096_v8, %s3634_s26 }
 0x268   : > { %1776 = vrot.lane.b32.xlu2 %v4064_v35, %s3636_s28  ;;  %1208 = vrot.lane.b32.xlu0 %v4100_v4, %s3634_s26 }
 0x26a   : > { %v4128_v22 = vpop.permute.xlu0 %1212  ;;  %v3305_v38 = vpop.permute.xlu2 %3304 }
 0x26b   : > { %1802 = vrot.lane.b32.xlu1 %v4003_v0, %s3631_s23  ;;  %v3307_v44 = vunpack.i.h.bf16 %v3305_v38 }
 0x270   : > { %1778 = vrot.lane.b32.xlu2 %v4042_v6, %s3636_s28 }
 0x272   : > { %v4131_v24 = vpop.permute.xlu0 %1804  ;;  %v1211_v45 = vpop.permute.xlu2 %1210 }
 0x273   : > { %1794 = vrot.lane.b32.xlu1 %v4015_v63, %s3631_s23  ;;  %v3306_v63 = vunpack.i.l.bf16 %v3305_v38 }
 0x278   : > { %1491 = vrot.lane.b32.xlu2 %v4052_v9, %s3635_s27 }
 0x27a   : > { %v4135_v25 = vpop.permute.xlu0 %1511  ;;  %v1197_v49 = vpop.permute.xlu2 %1196 }
 0x27b   : > { %1489 = vrot.lane.b32.xlu1 %v4047_v7, %s3635_s27 }
 0x280   : > { %1784 = vrot.lane.b32.xlu2 %v4058_v12, %s3636_s28 }
 0x282   : > { %v4139_v32 = vpop.permute.xlu0 %1509  ;;  %v1199_v52 = vpop.permute.xlu2 %1198 }
 0x283   : > { %1782 = vrot.lane.b32.xlu1 %v4052_v9, %s3636_s28 }
 0x28a   : > { %v4144_v53 = vpop.permute.xlu0 %1800  ;;  %v1201_v56 = vpop.permute.xlu2 %1200 }
 0x28b   : > { %1224 = vrot.lane.b32.xlu1 %v883_v11, %s3630_s22 }
 0x292   : > { %v4149_v31 = vpop.permute.xlu0 %1507  ;;  %v1203_v59 = vpop.permute.xlu2 %1202 }
 0x293   : > { %3314 = vrot.lane.b32.xlu1 %v4124_v19, %s3632_s24 }
 0x29a   : > { %v4153_v40 = vpop.permute.xlu0 %1798  ;;  %v1514_v1 = vpop.permute.xlu2 %1513 }
 0x29b   : > { %1515 = vrot.lane.b32.xlu1 %v883_v11, %s3633_s25  ;;  %s3638_s25 = smov 48  }
 0x2a2   : > { %v1506_v47 = vpop.permute.xlu0 %1505  ;;  %v1207_v55 = vpop.permute.xlu2 %1206 }
 0x2a5   : > { %v924_v39 = vpop.permute.xlu1 %923 }
 0x2a6   : > { %3131 = vmatpush.xpose.msk.msra.mxu1 %vm925_vm5, %v924_v39 }
 0x2aa   : > { %3132 = vmatpush.xpose.msk.msra.mxu1 %vm925_vm5, %v922_v21  ;;  %v1502_v26 = vpop.permute.xlu0 %1501 }
 0x2ad   : > { %v916_v28 = vpop.permute.xlu1 %915 }
 0x2ae   : > { %3133 = vmatpush.xpose.msk.msra.mxu1 %vm925_vm5, %v920_v16 }
 0x2b2   : > { %3134 = vmatpush.xpose.msk.msra.mxu1 %vm925_vm5, %v918_v23  ;;  %v4169_v62 = vpop.permute.xlu0 %1485 }
 0x2b5   : > { %v910_v30 = vpop.permute.xlu1 %909 }
 0x2b6   : > { %3135 = vmatpush.xpose.msk.msra.mxu1 %vm925_vm5, %v916_v28 }
 0x2ba   : > { %3136 = vmatpush.xpose.msk.msra.mxu1 %vm925_vm5, %v914_v43  ;;  %v4175_v57 = vpop.permute.xlu0 %1487  ;;  %v893_v43 = vld [vmem:[%s5197_s7] sm:$0xff] }
 0x2bd   : > { %v1217_v14 = vpop.permute.xlu1 %1216 }
 0x2be   : > { %3137 = vmatpush.xpose.msk.msra.mxu1 %vm925_vm5, %v912_v5  ;;  %v895_v5 = vld [vmem:[%s5197_s7 + $0x10] sm:$0xff] }
 0x2c2   : > { %3138 = vmatpush.xpose.msk.msra.mxu1 %vm925_vm5, %v910_v30  ;;  %v4181_v34 = vpop.permute.xlu0 %1780 }
 0x2c5   : > { %v3310_v41 = vpop.permute.xlu1 %3309  ;;  %3139 = vmatmul.msk.f32.vlgmr.msra.gmra.mxu1 %vm925_vm5, %v4064_v35 }
 0x2ca   : > { %v4187_v2 = vpop.permute.xlu0 %1493 }
 0x2cd   : > { %v1195_v33 = vpop.permute.xlu1 %1194  ;;  %3140 = vmatmul.msk.f32.gmra.mxu1 %vm925_vm5, %v4042_v6  ;;  %v3311_v6 = vunpack.i.l.bf16 %v3310_v41 }
 0x2d2   : > { %v1807_v11 = vpop.permute.xlu0 %1806 }
 0x2d5   : > { %v4155_v42 = vpop.permute.xlu1 %1204  ;;  %3141 = vmatmul.msk.f32.gmra.mxu1 %vm925_vm5, %v4047_v7  ;;  %v3312_v7 = vunpack.i.h.bf16 %v3310_v41 }
 0x2dd   : > { %v1803_v46 = vpop.permute.xlu1 %1802  ;;  %3142 = vmatmul.msk.f32.gmra.mxu1 %vm925_vm5, %v4052_v9 }
 0x2e5   : > { %v4161_v48 = vpop.permute.xlu1 %1794  ;;  %3143 = vmatmul.msk.f32.gmra.mxu1 %vm925_vm5, %v4058_v12  ;;  %v1797_v12 = vpop.permute.xlu2 %1796 }
 0x2ed   : > { %v4165_v50 = vpop.permute.xlu1 %1489  ;;  %3144 = vmatmul.msk.f32.gmra.mxu1 %vm925_vm5, %v4096_v8  ;;  %v1504_v35 = vpop.permute.xlu2 %1503 }
 0x2f5   : > { %v4171_v54 = vpop.permute.xlu1 %1782  ;;  %3145 = vmatmul.msk.f32.gmra.mxu1 %vm925_vm5, %v4072_v13  ;;  %v1793_v16 = vpop.permute.xlu2 %1792 }
 0x2fd   : > { %v1225_v58 = vpop.permute.xlu1 %1224  ;;  %3146 = vmatmul.msk.f32.gmra.mxu1 %vm925_vm5, %v4100_v4 }
 0x2fe   : > { %3163 = vmatpush.xpose.msk.msra.mxu3 %vm925_vm5, %v1225_v58 }
 0x302   : > { %3164 = vmatpush.xpose.msk.msra.mxu3 %vm925_vm5, %v1223_v17 }
 0x305   : > { %v3315_v61 = vpop.permute.xlu1 %3314 }
 0x306   : > { %3165 = vmatpush.xpose.msk.msra.mxu3 %vm925_vm5, %v1221_v29  ;;  %v3316_v0 = vunpack.i.l.bf16 %v3315_v61  ;;  %v3317_v15 = vunpack.i.h.bf16 %v3315_v61  ;;  %v1209_v29 = vpop.permute.xlu0 %1208 }
 0x308   : > { %1152 = vmatpush.msra.mxu2 %v3316_v0 }
 0x30a   : > { %1153 = vmatpush.msra.mxu2 %v3317_v15  ;;  %3166 = vmatpush.xpose.msk.msra.mxu3 %vm925_vm5, %v4121_v18 }
 0x30c   : > { %1154 = vmatpush.msra.mxu2 %v3301_v51 }
 0x30d   : > { %v1516_v9 = vpop.permute.xlu1 %1515 }
 0x30e   : > { %1155 = vmatpush.msra.mxu2 %v3302_v60  ;;  %3167 = vmatpush.xpose.msk.msra.mxu3 %vm925_vm5, %v1217_v14 }
 0x310   : > { %1156 = vmatpush.msra.mxu2 %v3306_v63 }
 0x312   : > { %1157 = vmatpush.msra.mxu2 %v3307_v44  ;;  %3168 = vmatpush.xpose.msk.msra.mxu3 %vm925_vm5, %v1215_v37 }
 0x314   : > { %1158 = vmatpush.msra.mxu2 %v3311_v6 }
 0x316   : > { %1159 = vmatpush.msra.mxu2 %v3312_v7  ;;  %3169 = vmatpush.xpose.msk.msra.mxu3 %vm925_vm5, %v4128_v22  ;;  %v894_v22 = vld [vmem:[%s5197_s7 + $0x8] sm:$0xff] }
 0x318   : > { %3195 = vmatpush.xpose.msk.msrb.mxu2 %vm925_vm5, %v1516_v9 }
 0x31a   : > { %3170 = vmatpush.xpose.msk.msra.mxu3 %vm925_vm5, %v1211_v45 }
 0x31c   : > { %3196 = vmatpush.xpose.msk.msrb.mxu2 %vm925_vm5, %v1514_v1 }
 0x31d   : > { %3171 = vmatmul.msk.f32.vlgmr.msra.gmra.mxu3 %vm925_vm5, %v1195_v33  ;;  %v898_v33 = vld [vmem:[%s5197_s7 + $0x28] sm:$0xff] }
 0x31e   : > { %3227 = vmatpush.xpose.msk.msrb.mxu3 %vm925_vm5, %v1807_v11 }
 0x320   : > { %3197 = vmatpush.xpose.msk.msrb.mxu2 %vm925_vm5, %v4135_v25 }
 0x322   : > { %3228 = vmatpush.xpose.msk.msrb.mxu3 %vm925_vm5, %v4131_v24 }
 0x324   : > { %3198 = vmatpush.xpose.msk.msrb.mxu2 %vm925_vm5, %v4139_v32  ;;  %v1777_v32 = vpop.permute.xlu2 %1776 }
 0x325   : > { %3172 = vmatmul.msk.f32.gmra.mxu3 %vm925_vm5, %v1197_v49 }
 0x326   : > { %3229 = vmatpush.xpose.msk.msrb.mxu3 %vm925_vm5, %v1803_v46 }
 0x328   : > { %3199 = vmatpush.xpose.msk.msrb.mxu2 %vm925_vm5, %v4149_v31 }
 0x32a   : > { %3230 = vmatpush.xpose.msk.msrb.mxu3 %vm925_vm5, %v4144_v53 }
 0x32c   : > { %3200 = vmatpush.xpose.msk.msrb.mxu2 %vm925_vm5, %v1506_v47  ;;  %v1779_v37 = vpop.permute.xlu2 %1778  ;;  %v900_v47 = vld [vmem:[%s5197_s7 + $0x38] sm:$0xff] }
 0x32d   : > { %3173 = vmatmul.msk.f32.gmra.mxu3 %vm925_vm5, %v1199_v52  ;;  %v896_v52 = vld [vmem:[%s5197_s7 + $0x18] sm:$0xff] }
 0x32e   : > { %3231 = vmatpush.xpose.msk.msrb.mxu3 %vm925_vm5, %v4153_v40 }
 0x330   : > { %3201 = vmatpush.xpose.msk.msrb.mxu2 %vm925_vm5, %v1504_v35 }
 0x332   : > { %3232 = vmatpush.xpose.msk.msrb.mxu3 %vm925_vm5, %v1797_v12 }
 0x334   : > { %3202 = vmatpush.xpose.msk.msrb.mxu2 %vm925_vm5, %v1502_v26  ;;  %v4259_v45 = vpop.permute.xlu2 %1491 }
 0x335   : > { %3174 = vmatmul.msk.f32.gmra.mxu3 %vm925_vm5, %v1201_v56 }
 0x336   : > { %3233 = vmatpush.xpose.msk.msrb.mxu3 %vm925_vm5, %v4161_v48 }
 0x33a   : > { %3234 = vmatpush.xpose.msk.msrb.mxu3 %vm925_vm5, %v1793_v16 }
 0x33c   : > { %v1785_v26 = vpop.permute.xlu2 %1784 }
 0x33d   : > { %3175 = vmatmul.msk.f32.gmra.mxu3 %vm925_vm5, %v1203_v59 }
 0x342   : > { %v983_v17 = vpop.f32.mrf.mxu1 }
 0x343   : > { %v984_v18 = vadd.f32 %v983_v17, %v893_v43 }
 0x345   : > { %3176 = vmatmul.msk.f32.gmra.mxu3 %vm925_vm5, %v4155_v42  ;;  %v1008_v21 = vsel %vm1007_vm6, %v984_v18, -inf }
 0x346   : > { %1009 = vmax.xlane.f32.xlu0 %v1008_v21 }
 0x34a   : > { %v986_v23 = vpop.f32.mrf.mxu1 }
 0x34b   : > { %v987_v24 = vadd.f32 %v986_v23, %v894_v22 }
 0x34d   : > { %3177 = vmatmul.msk.f32.gmra.mxu3 %vm925_vm5, %v1207_v55  ;;  %v1011_v39 = vsel %vm1007_vm6, %v987_v24, -inf }
 0x34e   : > { %1012 = vmax.xlane.f32.xlu2 %v1011_v39 }
 0x352   : > { %v989_v25 = vpop.f32.mrf.mxu1 }
 0x353   : > { %v990_v28 = vadd.f32 %v989_v25, %v895_v5 }
 0x355   : > { %3178 = vmatmul.msk.f32.gmra.mxu3 %vm925_vm5, %v1209_v29  ;;  %v1014_v30 = vsel %vm1007_vm6, %v990_v28, -inf }
 0x356   : > { %1015 = vmax.xlane.f32.xlu1 %v1014_v30 }
 0x35a   : > { %v992_v14 = vpop.f32.mrf.mxu1  ;;  %1786 = vrot.lane.b32.xlu0 %v4096_v8, %s3636_s28 }
 0x35b   : > { %v993_v56 = vadd.f32 %v992_v14, %v896_v52  ;;  %v3155_v52 = vld [vmem:[%s5197_s7 + $0x40] sm:$0xff] }
 0x35d   : > { %3235 = vmatmul.msk.f32.vlgmr.msrb.gmra.mxu3 %vm925_vm5, %v1777_v32  ;;  %v1017_v58 = vsel %vm1007_vm6, %v993_v56, -inf }
 0x362   : > { %v995_v53 = vpop.f32.mrf.mxu1 }
 0x363   : > { %v4243_v41 = vadd.f32 %v995_v53, %v897_v36 }
 0x365   : > { %3236 = vmatmul.msk.f32.gmra.mxu3 %vm925_vm5, %v1779_v37  ;;  %v1020_v31 = vsel %vm1007_vm6, %v4243_v41, -inf }
 0x366   : > { %1021 = vmax.xlane.f32.xlu2 %v1020_v31 }
 0x36a   : > { %v998_v38 = vpop.f32.mrf.mxu1 }
 0x36b   : > { %v4251_v40 = vadd.f32 %v998_v38, %v898_v33 }
 0x36d   : > { %3237 = vmatmul.msk.f32.gmra.mxu3 %vm925_vm5, %v4181_v34  ;;  %v1023_v42 = vsel %vm1007_vm6, %v4251_v40, -inf }
 0x36e   : > { %1024 = vmax.xlane.f32.xlu2 %v1023_v42 }
 0x36f   : > { %1495 = vrot.lane.b32.xlu1 %v4096_v8, %s3635_s27 }
 0x372   : > { %v1001_v46 = vpop.f32.mrf.mxu1 }
 0x375   : > { %3238 = vmatmul.msk.f32.gmra.mxu3 %vm925_vm5, %v4171_v54  ;;  %v899_v54 = vld [vmem:[%s5197_s7 + $0x30] sm:$0xff] }
 0x376   : > { %v1002_v59 = vadd.f32 %v1001_v46, %v899_v54 }
 0x378   : > { %v1026_v61 = vsel %vm1007_vm6, %v1002_v59, -inf }
 0x37a   : > { %v1004_v48 = vpop.f32.mrf.mxu1 }
 0x37b   : > { %v1005_v49 = vadd.f32 %v1004_v48, %v900_v47 }
 0x37d   : > { %3239 = vmatmul.msk.f32.gmra.mxu3 %vm925_vm5, %v1785_v26  ;;  %v1029_v8 = vsel %vm1007_vm6, %v1005_v49, -inf }
 0x37e   : > { %1030 = vmax.xlane.f32.xlu2 %v1029_v8 }
 0x384   : > { %1018 = vmax.xlane.f32.xlu0 %v1017_v58 }
 0x38c   : > { %1027 = vmax.xlane.f32.xlu0 %v1026_v61 }
 0x396   : > { %1497 = vrot.lane.b32.xlu2 %v4072_v13, %s3635_s27 }
 0x3a0   : > { %v1275_v47 = vpop.f32.mrf.mxu3 }
 0x3a1   : > { %v4324_v58 = vadd.f32 %v3155_v52, %v1275_v47  ;;  %v3219_v52 = vld [vmem:[%s5197_s7 + $0xc0] sm:$0xff] }
 0x3a3   : > { %v1299_v54 = vsel %vm1007_vm6, %v4324_v58, -inf }
 0x3a8   : > { %v1278_v48 = vpop.f32.mrf.mxu3 }
 0x3b9   : > { %v1010_v34 = vpop.xlane.xlu0 %1009 }
 0x3ba   : > { %v1032_v0 = vsub.f32 %v984_v18, %v1010_v34 }
 0x3bc   : > { %v1040_v15 = vmul.f32 1.442695, %v1032_v0 }
 0x3be   : > { %3420 = vpow2.f32 %v1040_v15  ;;  %v3157_v15 = vld [vmem:[%s5197_s7 + $0x50] sm:$0xff] }
 0x3c1   : > { %v1013_v51 = vpop.xlane.xlu2 %1012 }
 0x3c2   : > { %v1033_v60 = vsub.f32 %v987_v24, %v1013_v51 }
 0x3c4   : > { %v4278_v1 = vpop.eup %3420  ;;  %v1042_v63 = vmul.f32 1.442695, %v1033_v60 }
 0x3c5   : > { %v1056_v44 = vsel %vm1007_vm6, %v4278_v1, 0.0 }
 0x3c6   : > { %3422 = vpow2.f32 %v1042_v63  ;;  %1057 = vadd.xlane.f32.xlu1 %v1056_v44 }
 0x3c9   : > { %v1016_v6 = vpop.xlane.xlu1 %1015 }
 0x3ca   : > { %v1034_v7 = vsub.f32 %v990_v28, %v1016_v6  ;;  %v3156_v6 = vld [vmem:[%s5197_s7 + $0x48] sm:$0xff] }
 0x3cc   : > { %v4282_v9 = vpop.eup %3422  ;;  %v1044_v55 = vmul.f32 1.442695, %v1034_v7  ;;  %v1787_v11 = vpop.permute.xlu0 %1786 }
 0x3cd   : > { %3240 = vmatmul.msk.f32.gmra.mxu3 %vm925_vm5, %v1787_v11  ;;  %v1059_v12 = vsel %vm1007_vm6, %v4282_v9, 0.0  ;;  %v3160_v11 = vld [vmem:[%s5197_s7 + $0x68] sm:$0xff] }
 0x3ce   : > { %3424 = vpow2.f32 %v1044_v55  ;;  %1060 = vadd.xlane.f32.xlu0 %v1059_v12  ;;  %v4349_v55 = vadd.f32 %v3156_v6, %v1278_v48 }
 0x3d4   : > { %v4287_v35 = vpop.eup %3424 }
 0x3d5   : > { %v1062_v16 = vsel %vm1007_vm6, %v4287_v35, 0.0 }
 0x3d6   : > { %1063 = vadd.xlane.f32.xlu1 %v1062_v16 }
 0x3d9   : > { %v1022_v43 = vpop.xlane.xlu2 %1021 }
 0x3da   : > { %v1036_v39 = vsub.f32 %v4243_v41, %v1022_v43  ;;  %v1302_v43 = vsel %vm1007_vm6, %v4349_v55, -inf }
 0x3dc   : > { %v1048_v29 = vmul.f32 1.442695, %v1036_v39 }
 0x3e1   : > { %v1025_v17 = vpop.xlane.xlu2 %1024  ;;  %v4319_v26 = vpop.permute.xlu1 %1495 }
 0x3e2   : > { %v1037_v36 = vsub.f32 %v4251_v40, %v1025_v17 }
 0x3e4   : > { %v1050_v37 = vmul.f32 1.442695, %v1037_v36 }
 0x3f1   : > { %v1031_v18 = vpop.xlane.xlu2 %1030 }
 0x3f2   : > { %v1039_v21 = vsub.f32 %v1005_v49, %v1031_v18  ;;  %v1281_v49 = vpop.f32.mrf.mxu3  ;;  %v3159_v18 = vld [vmem:[%s5197_s7 + $0x60] sm:$0xff] }
 0x3f3   : > { %v4338_v60 = vadd.f32 %v3157_v15, %v1281_v49 }
 0x3f4   : > { %v1054_v22 = vmul.f32 1.442695, %v1039_v21 }
 0x3f5   : > { %v1305_v7 = vsel %vm1007_vm6, %v4338_v60, -inf }
 0x3f6   : > { %3426 = vpow2.f32 %v1054_v22 }
 0x3f7   : > { %v1019_v23 = vpop.xlane.xlu0 %1018 }
 0x3f8   : > { %v1035_v24 = vsub.f32 %v993_v56, %v1019_v23 }
 0x3fa   : > { %v1046_v5 = vmul.f32 1.442695, %v1035_v24  ;;  %v1284_v8 = vpop.f32.mrf.mxu3 }
 0x3fc   : > { %v4292_v25 = vpop.eup %3426  ;;  %3428 = vpow2.f32 %v1046_v5 }
 0x3fd   : > { %v1077_v28 = vsel %vm1007_vm6, %v4292_v25, 0.0  ;;  %3430 = vpow2.f32 %v1048_v29 }
 0x3fe   : > { %1078 = vadd.xlane.f32.xlu1 %v1077_v28 }
 0x3ff   : > { %v1028_v30 = vpop.xlane.xlu0 %1027 }
 0x400   : > { %v1038_v32 = vsub.f32 %v1002_v59, %v1028_v30  ;;  %v4384_v30 = vpop.permute.xlu2 %1497 }
 0x402   : > { %v4296_v14 = vpop.eup %3428  ;;  %v1052_v53 = vmul.f32 1.442695, %v1038_v32  ;;  %v1287_v34 = vpop.f32.mrf.mxu3 }
 0x403   : > { %v1065_v41 = vsel %vm1007_vm6, %v4296_v14, 0.0  ;;  %v4301_v31 = vpop.eup %3430  ;;  %v4365_v22 = vadd.f32 %v3159_v18, %v1287_v34 }
 0x404   : > { %3432 = vpow2.f32 %v1052_v53  ;;  %1066 = vadd.xlane.f32.xlu0 %v1065_v41  ;;  %v1068_v38 = vsel %vm1007_vm6, %v4301_v31, 0.0 }
 0x405   : > { %3434 = vpow2.f32 %v1050_v37  ;;  %v1311_v23 = vsel %vm1007_vm6, %v4365_v22, -inf  ;;  %v3162_v37 = vld [vmem:[%s5197_s7 + $0x78] sm:$0xff] }
 0x40a   : > { %v4303_v33 = vpop.eup %3432  ;;  %v1290_v12 = vpop.f32.mrf.mxu3 }
 0x40b   : > { %v1074_v42 = vsel %vm1007_vm6, %v4303_v33, 0.0  ;;  %v4309_v40 = vpop.eup %3434 }
 0x40c   : > { %1069 = vadd.xlane.f32.xlu0 %v1068_v38  ;;  %1075 = vadd.xlane.f32.xlu2 %v1074_v42  ;;  %v1071_v46 = vsel %vm1007_vm6, %v4309_v40, 0.0 }
 0x412   : > { %v1293_v24 = vpop.f32.mrf.mxu3 }
 0x414   : > { %1072 = vadd.xlane.f32.xlu0 %v1071_v46 }
 0x417   : > { %1788 = vrot.lane.b32.xlu1 %v4072_v13, %s3636_s28 }
 0x41a   : > { %v1296_v41 = vpop.f32.mrf.mxu3 }
 0x41b   : > { %v4393_v42 = vadd.f32 %v3162_v37, %v1296_v41 }
 0x41d   : > { %v1320_v49 = vsel %vm1007_vm6, %v4393_v42, -inf }
 0x424   : > { %1790 = vrot.lane.b32.xlu2 %v4100_v4, %s3636_s28  ;;  %s3637_s28 = smov 56  }
 0x428   : > { %1499 = vrot.lane.b32.xlu0 %v4100_v4, %s3635_s27  ;;  %v3158_v4 = vld [vmem:[%s5197_s7 + $0x58] sm:$0xff] }
 0x429   : > { %v4333_v0 = vadd.f32 %v3158_v4, %v1284_v8  ;;  %v1857_v8 = vpop.f32.mrf.mxu3 }
 0x42b   : > { %v1308_v63 = vsel %vm1007_vm6, %v4333_v0, -inf }
 0x439   : > { %v1058_v56 = vpop.xlane.xlu1 %1057 }
 0x43a   : > { %3436 = vrcp.f32 %v1058_v56 }
 0x440   : > { %v3437_v13 = vpop.eup %3436 }
 0x441   : > { %1300 = vmax.xlane.f32.xlu1 %v1299_v54  ;;  %v1061_v59 = vpop.xlane.xlu0 %1060  ;;  %v1088_v61 = vmul.f32 %v3437_v13, %v4278_v1  ;;  %v4403_v13 = vadd.f32 %v3219_v52, %v1857_v8  ;;  %v1860_v52 = vpop.f32.mrf.mxu3 }
 0x442   : > { %3438 = vrcp.f32 %v1061_v59 }
 0x443   : > { %3147 = vmatmul.msk.f32.vlgmr.msra.gmra.mxu2 %vm1007_vm6, %v1088_v61  ;;  %v1881_v4 = vsel %vm1007_vm6, %v4403_v13, -inf }
 0x448   : > { %v3439_v51 = vpop.eup %3438 }
 0x449   : > { %1309 = vmax.xlane.f32.xlu1 %v1308_v63  ;;  %v1064_v44 = vpop.xlane.xlu1 %1063  ;;  %v1089_v1 = vmul.f32 %v3439_v51, %v4282_v9  ;;  %v4354_v9 = vadd.f32 %v3160_v11, %v1290_v12 }
 0x44a   : > { %3440 = vrcp.f32 %v1064_v44 }
 0x44b   : > { %3148 = vmatmul.msk.f32.gmra.mxu2 %vm1007_vm6, %v1089_v1  ;;  %v1314_v21 = vsel %vm1007_vm6, %v4354_v9, -inf }
 0x44d   : > { %1306 = vmax.xlane.f32.xlu2 %v1305_v7 }
 0x450   : > { %v3441_v16 = vpop.eup %3440 }
 0x451   : > { %v1090_v17 = vmul.f32 %v3441_v16, %v4287_v35  ;;  %v3161_v35 = vld [vmem:[%s5197_s7 + $0x70] sm:$0xff] }
 0x452   : > { %1303 = vmax.xlane.f32.xlu0 %v1302_v43  ;;  %v4372_v39 = vadd.f32 %v3161_v35, %v1293_v24 }
 0x453   : > { %3149 = vmatmul.msk.f32.gmra.mxu2 %vm1007_vm6, %v1090_v17 }
 0x454   : > { %v1317_v5 = vsel %vm1007_vm6, %v4372_v39, -inf }
 0x455   : > { %1315 = vmax.xlane.f32.xlu2 %v1314_v21 }
 0x45a   : > { %1312 = vmax.xlane.f32.xlu0 %v1311_v23 }
 0x462   : > { %3319 = vrot.lane.b32.xlu1 %v4124_v19, %s3637_s28  ;;  %1318 = vmax.xlane.f32.xlu0 %v1317_v5 }
 0x46d   : > { %3324 = vrot.lane.b32.xlu2 %v4025_v27, %s3637_s28 }
 0x471   : > { %v1079_v53 = vpop.xlane.xlu1 %1078 }
 0x475   : > { %3334 = vrot.lane.b32.xlu2 %v4083_v10, %s3637_s28 }
 0x477   : > { %v1067_v28 = vpop.xlane.xlu0 %1066 }
 0x478   : > { %3442 = vrcp.f32 %v1067_v28 }
 0x47d   : > { %3339 = vrot.lane.b32.xlu2 %v4124_v19, %s3638_s25 }
 0x47e   : > { %v3443_v29 = vpop.eup %3442 }
 0x47f   : > { %v1070_v32 = vpop.xlane.xlu0 %1069  ;;  %v1091_v36 = vmul.f32 %v3443_v29, %v4296_v14  ;;  %v1076_v46 = vpop.xlane.xlu2 %1075 }
 0x480   : > { %3444 = vrcp.f32 %v1070_v32 }
 0x481   : > { %3150 = vmatmul.msk.f32.gmra.mxu2 %vm1007_vm6, %v1091_v36 }
 0x485   : > { %3364 = vrot.lane.b32.xlu2 %v4034_v3, %s3639_s16 }
 0x486   : > { %v3445_v38 = vpop.eup %3444 }
 0x487   : > { %v1073_v47 = vpop.xlane.xlu0 %1072  ;;  %v1092_v14 = vmul.f32 %v3445_v38, %v4301_v31  ;;  %v1791_v54 = vpop.permute.xlu2 %1790 }
 0x488   : > { %3446 = vrcp.f32 %v1073_v47 }
 0x489   : > { %v1789_v48 = vpop.permute.xlu1 %1788  ;;  %3151 = vmatmul.msk.f32.gmra.mxu2 %vm1007_vm6, %v1092_v14  ;;  %3448 = vrcp.f32 %v1076_v46 }
 0x48a   : > { %3241 = vmatmul.msk.f32.gmra.mxu3 %vm925_vm5, %v1789_v48  ;;  %3450 = vrcp.f32 %v1079_v53 }
 0x48c   : > { %1321 = vmax.xlane.f32.xlu1 %v1320_v49 }
 0x48e   : > { %v3447_v56 = vpop.eup %3446 }
 0x48f   : > { %v1093_v31 = vmul.f32 %v3447_v56, %v4309_v40  ;;  %v3449_v59 = vpop.eup %3448 }
 0x490   : > { %v1094_v61 = vmul.f32 %v3449_v59, %v4303_v33  ;;  %v3451_v34 = vpop.eup %3450 }
 0x491   : > { %3152 = vmatmul.msk.f32.gmra.mxu2 %vm1007_vm6, %v1093_v31  ;;  %v1095_v15 = vmul.f32 %v3451_v34, %v4292_v25  ;;  %v3221_v34 = vld [vmem:[%s5197_s7 + $0xd0] sm:$0xff] }
 0x492   : > { %3242 = vmatmul.msk.f32.gmra.mxu3 %vm925_vm5, %v1791_v54  ;;  %v3220_v54 = vld [vmem:[%s5197_s7 + $0xc8] sm:$0xff] }
 0x494   : > { %1882 = vmax.xlane.f32.xlu1 %v1881_v4  ;;  %v4477_v4 = vadd.f32 %v3220_v54, %v1860_v52  ;;  %v3190_v52 = vld [vmem:[%s5197_s7 + $0x98] sm:$0xff] }
 0x499   : > { %3153 = vmatmul.msk.f32.gmra.mxu2 %vm1007_vm6, %v1094_v61  ;;  %v1884_v61 = vsel %vm1007_vm6, %v4477_v4, -inf }
 0x49a   : > { %v1500_v33 = vpop.permute.xlu0 %1499 }
 0x4a1   : > { %3154 = vmatmul.msk.f32.gmra.mxu2 %vm1007_vm6, %v1095_v15 }
 0x4a9   : > { %3203 = vmatmul.msk.f32.vlgmr.msrb.gmra.mxu2 %vm925_vm5, %v4169_v62 }
 0x4b1   : > { %3204 = vmatmul.msk.f32.gmra.mxu2 %vm925_vm5, %v4175_v57 }
 0x4b4   : > { %v1301_v40 = vpop.xlane.xlu1 %1300 }
 0x4b5   : > { %v1323_v51 = vsub.f32 %v4324_v58, %v1301_v40 }
 0x4b7   : > { %v1331_v63 = vmul.f32 1.442695, %v1323_v51 }
 0x4b9   : > { %3452 = vpow2.f32 %v1331_v63  ;;  %3205 = vmatmul.msk.f32.gmra.mxu2 %vm925_vm5, %v4165_v50 }
 0x4bc   : > { %v1310_v25 = vpop.xlane.xlu1 %1309 }
 0x4bd   : > { %v1326_v57 = vsub.f32 %v4333_v0, %v1310_v25 }
 0x4bf   : > { %v4421_v44 = vpop.eup %3452  ;;  %v1337_v50 = vmul.f32 1.442695, %v1326_v57 }
 0x4c0   : > { %v1307_v1 = vpop.xlane.xlu2 %1306  ;;  %v1347_v6 = vsel %vm1007_vm6, %v4421_v44, 0.0 }
 0x4c1   : > { %v1325_v62 = vsub.f32 %v4338_v60, %v1307_v1  ;;  %1348 = vadd.xlane.f32.xlu0 %v1347_v6  ;;  %3206 = vmatmul.msk.f32.gmra.mxu2 %vm925_vm5, %v4259_v45  ;;  %v3223_v6 = vld [vmem:[%s5197_s7 + $0xe0] sm:$0xff] }
 0x4c3   : > { %v1335_v58 = vmul.f32 1.442695, %v1325_v62 }
 0x4c5   : > { %3454 = vpow2.f32 %v1335_v58  ;;  %v1304_v7 = vpop.xlane.xlu0 %1303 }
 0x4c6   : > { %3456 = vpow2.f32 %v1337_v50  ;;  %v4459_v38 = vpop.f32.mrf.mxu2  ;;  %v1324_v14 = vsub.f32 %v4349_v55, %v1304_v7  ;;  %v1863_v55 = vpop.f32.mrf.mxu3 }
 0x4c7   : > { %v4488_v15 = vadd.f32 %v3221_v34, %v1863_v55 }
 0x4c8   : > { %v1316_v11 = vpop.xlane.xlu2 %1315  ;;  %v1333_v48 = vmul.f32 1.442695, %v1324_v14 }
 0x4c9   : > { %3207 = vmatmul.msk.f32.gmra.mxu2 %vm925_vm5, %v4187_v2  ;;  %v1328_v18 = vsub.f32 %v4354_v9, %v1316_v11  ;;  %v1887_v63 = vsel %vm1007_vm6, %v4488_v15, -inf }
 0x4cb   : > { %v4431_v12 = vpop.eup %3454 }
 0x4cc   : > { %v1353_v60 = vsel %vm1007_vm6, %v4431_v12, 0.0  ;;  %v4436_v17 = vpop.eup %3456 }
 0x4cd   : > { %1354 = vadd.xlane.f32.xlu1 %v1353_v60  ;;  %v1313_v16 = vpop.xlane.xlu0 %1312  ;;  %v1356_v21 = vsel %vm1007_vm6, %v4436_v17, 0.0 }
 0x4ce   : > { %v1327_v45 = vsub.f32 %v4365_v22, %v1313_v16  ;;  %v1341_v22 = vmul.f32 1.442695, %v1328_v18  ;;  %v4466_v49 = vpop.f32.mrf.mxu2  ;;  %v1866_v40 = vpop.f32.mrf.mxu3 }
 0x4d0   : > { %v1339_v43 = vmul.f32 1.442695, %v1327_v45  ;;  %v3325_v0 = vpop.permute.xlu2 %3324  ;;  %v3225_v45 = vld [vmem:[%s5197_s7 + $0xf0] sm:$0xff] }
 0x4d1   : > { %3208 = vmatmul.msk.f32.gmra.mxu2 %vm925_vm5, %v4319_v26  ;;  %v3326_v26 = vunpack.i.l.bf16 %v3325_v0  ;;  %v3327_v29 = vunpack.i.h.bf16 %v3325_v0 }
 0x4d2   : > { %3458 = vpow2.f32 %v1339_v43 }
 0x4d3   : > { %3460 = vpow2.f32 %v1341_v22 }
 0x4d4   : > { %v3320_v2 = vpop.permute.xlu1 %3319 }
 0x4d5   : > { %3329 = vrot.lane.b32.xlu0 %v4034_v3, %s3637_s28  ;;  %1357 = vadd.xlane.f32.xlu1 %v1356_v21  ;;  %v3321_v23 = vunpack.i.l.bf16 %v3320_v2  ;;  %v3322_v35 = vunpack.i.h.bf16 %v3320_v2  ;;  %v1319_v24 = vpop.xlane.xlu0 %1318  ;;  %v3187_v2 = vld [vmem:[%s5197_s7 + $0x80] sm:$0xff] }
 0x4d6   : > { %v1329_v9 = vsub.f32 %v4372_v39, %v1319_v24  ;;  %v4470_v56 = vpop.f32.mrf.mxu2  ;;  %v1869_v62 = vpop.f32.mrf.mxu3 }
 0x4d7   : > { %1443 = vmatpush.msrb.mxu0 %v3321_v23  ;;  %v4510_v57 = vadd.f32 %v3223_v6, %v1869_v62 }
 0x4d8   : > { %v4445_v5 = vpop.permute.xlu2 %3334  ;;  %v4447_v28 = vpop.eup %3458  ;;  %v1343_v36 = vmul.f32 1.442695, %v1329_v9  ;;  %v3188_v9 = vld [vmem:[%s5197_s7 + $0x88] sm:$0xff] }
 0x4d9   : > { %1444 = vmatpush.msrb.mxu0 %v3322_v35  ;;  %3209 = vmatmul.msk.f32.gmra.mxu2 %vm925_vm5, %v4384_v30  ;;  %v1359_v32 = vsel %vm1007_vm6, %v4447_v28, 0.0  ;;  %v4454_v41 = vpop.eup %3460  ;;  %v1893_v7 = vsel %vm1007_vm6, %v4510_v57, -inf }
 0x4da   : > { %3462 = vpow2.f32 %v1343_v36  ;;  %v1362_v39 = vsel %vm1007_vm6, %v4454_v41, 0.0  ;;  %v3189_v36 = vld [vmem:[%s5197_s7 + $0x90] sm:$0xff] }
 0x4db   : > { %1445 = vmatpush.msrb.mxu0 %v3326_v26  ;;  %3464 = vpow2.f32 %v1333_v48 }
 0x4dd   : > { %1446 = vmatpush.msrb.mxu0 %v3327_v29  ;;  %1360 = vadd.xlane.f32.xlu1 %v1359_v32 }
 0x4de   : > { %v1872_v50 = vpop.f32.mrf.mxu3 }
 0x4e0   : > { %v3340_v53 = vpop.permute.xlu2 %3339  ;;  %v4461_v46 = vpop.eup %3462 }
 0x4e1   : > { %v3341_v37 = vunpack.i.l.bf16 %v3340_v53  ;;  %3210 = vmatmul.msk.f32.gmra.mxu2 %vm925_vm5, %v1500_v33  ;;  %v3342_v30 = vunpack.i.h.bf16 %v3340_v53  ;;  %v1365_v47 = vsel %vm1007_vm6, %v4461_v46, 0.0  ;;  %v4468_v8 = vpop.eup %3464 }
 0x4e2   : > { %v1350_v31 = vsel %vm1007_vm6, %v4468_v8, 0.0 }
 0x4e3   : > { %1734 = vmatpush.msrb.mxu1 %v3341_v37 }
 0x4e5   : > { %1735 = vmatpush.msrb.mxu1 %v3342_v30  ;;  %1363 = vadd.xlane.f32.xlu1 %v1362_v39 }
 0x4ed   : > { %1366 = vadd.xlane.f32.xlu1 %v1365_v47 }
 0x4ff   : > { %1351 = vadd.xlane.f32.xlu0 %v1350_v31  ;;  %v1322_v18 = vpop.xlane.xlu1 %1321 }
 0x500   : > { %v1330_v23 = vsub.f32 %v4393_v42, %v1322_v18 }
 0x502   : > { %v1345_v26 = vmul.f32 1.442695, %v1330_v23  ;;  %v3194_v23 = vld [vmem:[%s5197_s7 + $0xb8] sm:$0xff] }
 0x504   : > { %v4479_v59 = vpop.f32.mrf.mxu2  ;;  %3466 = vpow2.f32 %v1345_v26 }
 0x506   : > { %3344 = vrot.lane.b32.xlu1 %v4124_v19, %s3639_s16  ;;  %v3222_v19 = vld [vmem:[%s5197_s7 + $0xd8] sm:$0xff] }
 0x507   : > { %1885 = vmax.xlane.f32.xlu0 %v1884_v61  ;;  %v4499_v33 = vadd.f32 %v3222_v19, %v1866_v40  ;;  %v1883_v14 = vpop.xlane.xlu1 %1882 }
 0x509   : > { %v1890_v1 = vsel %vm1007_vm6, %v4499_v33, -inf }
 0x50a   : > { %v4550_v53 = vpop.eup %3466 }
 0x50b   : > { %v1368_v47 = vsel %vm1007_vm6, %v4550_v53, 0.0 }
 0x50c   : > { %v4490_v51 = vpop.f32.mrf.mxu2 }
 0x50d   : > { %v1875_v43 = vpop.f32.mrf.mxu3 }
 0x50e   : > { %3354 = vrot.lane.b32.xlu1 %v4025_v27, %s3639_s16  ;;  %v4528_v0 = vadd.f32 %v3225_v45, %v1875_v43  ;;  %v3192_v45 = vld [vmem:[%s5197_s7 + $0xa8] sm:$0xff] }
 0x50f   : > { %1888 = vmax.xlane.f32.xlu0 %v1887_v63 }
 0x510   : > { %v1899_v35 = vsel %vm1007_vm6, %v4528_v0, -inf }
 0x514   : > { %v4501_v25 = vpop.f32.mrf.mxu2 }
 0x516   : > { %3359 = vrot.lane.b32.xlu1 %v4034_v3, %s3638_s25  ;;  %v3224_v3 = vld [vmem:[%s5197_s7 + $0xe8] sm:$0xff] }
 0x517   : > { %1891 = vmax.xlane.f32.xlu0 %v1890_v1  ;;  %v4519_v11 = vadd.f32 %v3224_v3, %v1872_v50  ;;  %v3336_v1 = vunpack.i.l.bf16 %v4445_v5 }
 0x519   : > { %v1896_v16 = vsel %vm1007_vm6, %v4519_v11, -inf }
 0x51c   : > { %v4512_v58 = vpop.f32.mrf.mxu2 }
 0x51f   : > { %1894 = vmax.xlane.f32.xlu0 %v1893_v7  ;;  %v3337_v7 = vunpack.i.h.bf16 %v4445_v5 }
 0x524   : > { %v4521_v60 = vpop.f32.mrf.mxu2 }
 0x527   : > { %1897 = vmax.xlane.f32.xlu0 %v1896_v16 }
 0x52c   : > { %v1566_v21 = vpop.f32.mrf.mxu2 }
 0x52d   : > { %v4534_v22 = vadd.f32 %v3187_v2, %v1566_v21  ;;  %v1905_v21 = vsub.f32 %v4403_v13, %v1883_v14 }
 0x52f   : > { %1900 = vmax.xlane.f32.xlu0 %v1899_v35  ;;  %v1590_v24 = vsel %vm1007_vm6, %v4534_v22, -inf  ;;  %v3226_v35 = vld [vmem:[%s5197_s7 + $0xf8] sm:$0xff] }
 0x530   : > { %1591 = vmax.xlane.f32.xlu2 %v1590_v24  ;;  %v1878_v24 = vpop.f32.mrf.mxu3 }
 0x534   : > { %v1569_v29 = vpop.f32.mrf.mxu2  ;;  %v1349_v39 = vpop.xlane.xlu0 %1348 }
 0x535   : > { %v4543_v32 = vadd.f32 %v3188_v9, %v1569_v29  ;;  %3468 = vrcp.f32 %v1349_v39 }
 0x537   : > { %v1593_v42 = vsel %vm1007_vm6, %v4543_v32, -inf }
 0x538   : > { %1594 = vmax.xlane.f32.xlu2 %v1593_v42  ;;  %v1913_v42 = vmul.f32 1.442695, %v1905_v21 }
 0x53a   : > { %3470 = vpow2.f32 %v1913_v42 }
 0x53b   : > { %v3469_v19 = vpop.eup %3468 }
 0x53c   : > { %v1572_v37 = vpop.f32.mrf.mxu2  ;;  %v1379_v3 = vmul.f32 %v3469_v19, %v4421_v44 }
 0x53d   : > { %v4552_v30 = vadd.f32 %v3189_v36, %v1572_v37  ;;  %v4594_v36 = vadd.f32 %v3226_v35, %v1878_v24 }
 0x53f   : > { %v1596_v48 = vsel %vm1007_vm6, %v4552_v30, -inf  ;;  %v1902_v13 = vsel %vm1007_vm6, %v4594_v36, -inf }
 0x540   : > { %1369 = vadd.xlane.f32.xlu1 %v1368_v47  ;;  %1597 = vmax.xlane.f32.xlu2 %v1596_v48  ;;  %v1355_v61 = vpop.xlane.xlu1 %1354  ;;  %v4600_v47 = vpop.eup %3470 }
 0x541   : > { %v1929_v48 = vsel %vm1007_vm6, %v4600_v47, 0.0 }
 0x543   : > { %3349 = vrot.lane.b32.xlu0 %v4025_v27, %s3638_s25  ;;  %v3191_v27 = vld [vmem:[%s5197_s7 + $0xa0] sm:$0xff] }
 0x544   : > { %v1575_v31 = vpop.f32.mrf.mxu2 }
 0x545   : > { %v4563_v54 = vadd.f32 %v3190_v52, %v1575_v31  ;;  %v3193_v52 = vld [vmem:[%s5197_s7 + $0xb0] sm:$0xff] }
 0x547   : > { %v3330_v55 = vpop.permute.xlu0 %3329  ;;  %v1599_v34 = vsel %vm1007_vm6, %v4563_v54, -inf }
 0x548   : > { %v3331_v40 = vunpack.i.l.bf16 %v3330_v55  ;;  %1600 = vmax.xlane.f32.xlu2 %v1599_v34  ;;  %v3332_v63 = vunpack.i.h.bf16 %v3330_v55  ;;  %v1358_v16 = vpop.xlane.xlu1 %1357 }
 0x54a   : > { %1447 = vmatpush.msrb.mxu0 %v3331_v40 }
 0x54c   : > { %1448 = vmatpush.msrb.mxu0 %v3332_v63  ;;  %v1578_v6 = vpop.f32.mrf.mxu2 }
 0x54d   : > { %v4571_v62 = vadd.f32 %v3191_v27, %v1578_v6 }
 0x54e   : > { %1449 = vmatpush.msrb.mxu0 %v3336_v1 }
 0x54f   : > { %v1602_v50 = vsel %vm1007_vm6, %v4571_v62, -inf }
 0x550   : > { %1450 = vmatpush.msrb.mxu0 %v3337_v7  ;;  %1603 = vmax.xlane.f32.xlu2 %v1602_v50  ;;  %v1361_v44 = vpop.xlane.xlu1 %1360 }
 0x551   : > { %3179 = vmatmul.msk.f32.vlgmr.msrb.gmra.mxu0 %vm1007_vm6, %v1379_v3 }
 0x554   : > { %v1581_v43 = vpop.f32.mrf.mxu2 }
 0x555   : > { %v4581_v18 = vadd.f32 %v3192_v45, %v1581_v43  ;;  %v3365_v45 = vpop.permute.xlu2 %3364 }
 0x556   : > { %v3367_v35 = vunpack.i.h.bf16 %v3365_v45 }
 0x557   : > { %v1605_v5 = vsel %vm1007_vm6, %v4581_v18, -inf }
 0x558   : > { %1606 = vmax.xlane.f32.xlu2 %v1605_v5  ;;  %v1364_v9 = vpop.xlane.xlu1 %1363  ;;  %v3366_v5 = vunpack.i.l.bf16 %v3365_v45 }
 0x55c   : > { %v1584_v2 = vpop.f32.mrf.mxu2 }
 0x55d   : > { %v4607_v31 = vadd.f32 %v3193_v52, %v1584_v2 }
 0x55f   : > { %v1608_v6 = vsel %vm1007_vm6, %v4607_v31, -inf }
 0x560   : > { %v1367_v39 = vpop.xlane.xlu1 %1366 }
 0x564   : > { %v1587_v26 = vpop.f32.mrf.mxu2 }
 0x565   : > { %v4592_v29 = vadd.f32 %v3194_v23, %v1587_v26 }
 0x567   : > { %v1611_v37 = vsel %vm1007_vm6, %v4592_v29, -inf }
 0x568   : > { %1612 = vmax.xlane.f32.xlu1 %v1611_v37 }
 0x56d   : > { %1903 = vmax.xlane.f32.xlu0 %v1902_v13 }
 0x572   : > { %v1352_v14 = vpop.xlane.xlu0 %1351 }
 0x573   : > { %3472 = vrcp.f32 %v1352_v14 }
 0x574   : > { %3474 = vrcp.f32 %v1355_v61 }
 0x575   : > { %1930 = vadd.xlane.f32.xlu0 %v1929_v48 }
 0x578   : > { %v3345_v55 = vpop.permute.xlu1 %3344 }
 0x579   : > { %v3473_v34 = vpop.eup %3472  ;;  %v3346_v40 = vunpack.i.l.bf16 %v3345_v55  ;;  %v3347_v19 = vunpack.i.h.bf16 %v3345_v55 }
 0x57a   : > { %v1886_v63 = vpop.xlane.xlu0 %1885  ;;  %v1380_v27 = vmul.f32 %v3473_v34, %v4468_v8  ;;  %v3475_v3 = vpop.eup %3474 }
 0x57b   : > { %v1906_v1 = vsub.f32 %v4477_v4, %v1886_v63  ;;  %2025 = vmatpush.msra.mxu0 %v3346_v40  ;;  %v1381_v8 = vmul.f32 %v3475_v3, %v4431_v12 }
 0x57c   : > { %3180 = vmatmul.msk.f32.gmra.mxu0 %vm1007_vm6, %v1380_v27 }
 0x57d   : > { %v1915_v7 = vmul.f32 1.442695, %v1906_v1  ;;  %1609 = vmax.xlane.f32.xlu0 %v1608_v6  ;;  %2026 = vmatpush.msra.mxu0 %v3347_v19 }
 0x57f   : > { %3476 = vpow2.f32 %v1915_v7 }
 0x580   : > { %v3355_v50 = vpop.permute.xlu1 %3354  ;;  %3478 = vrcp.f32 %v1358_v16 }
 0x581   : > { %v3356_v61 = vunpack.i.l.bf16 %v3355_v50  ;;  %v3357_v43 = vunpack.i.h.bf16 %v3355_v50  ;;  %3480 = vrcp.f32 %v1361_v44 }
 0x582   : > { %v1889_v2 = vpop.xlane.xlu0 %1888  ;;  %3482 = vrcp.f32 %v1364_v9 }
 0x583   : > { %2027 = vmatpush.msra.mxu0 %v3356_v61  ;;  %3484 = vrcp.f32 %v1367_v39  ;;  %v1907_v40 = vsub.f32 %v4488_v15, %v1889_v2 }
 0x584   : > { %3181 = vmatmul.msk.f32.gmra.mxu0 %vm1007_vm6, %v1381_v8 }
 0x585   : > { %v4616_v4 = vpop.eup %3476  ;;  %2028 = vmatpush.msra.mxu0 %v3357_v43  ;;  %v1917_v27 = vmul.f32 1.442695, %v1907_v40 }
 0x586   : > { %v1932_v21 = vsel %vm1007_vm6, %v4616_v4, 0.0  ;;  %v3479_v23 = vpop.eup %3478 }
 0x587   : > { %1933 = vadd.xlane.f32.xlu1 %v1932_v21  ;;  %2029 = vmatpush.msra.mxu0 %v3366_v5  ;;  %v1382_v12 = vmul.f32 %v3479_v23, %v4436_v17  ;;  %v3481_v16 = vpop.eup %3480 }
 0x588   : > { %v1383_v26 = vmul.f32 %v3481_v16, %v4447_v28  ;;  %v3483_v42 = vpop.eup %3482  ;;  %v3360_v52 = vpop.permute.xlu1 %3359 }
 0x589   : > { %2030 = vmatpush.msra.mxu0 %v3367_v35  ;;  %v1384_v44 = vmul.f32 %v3483_v42, %v4454_v41  ;;  %v3485_v17 = vpop.eup %3484  ;;  %v3361_v61 = vunpack.i.l.bf16 %v3360_v52  ;;  %v3362_v5 = vunpack.i.h.bf16 %v3360_v52 }
 0x58a   : > { %v1892_v24 = vpop.xlane.xlu0 %1891  ;;  %v1385_v13 = vmul.f32 %v3485_v17, %v4461_v46 }
 0x58c   : > { %3182 = vmatmul.msk.f32.gmra.mxu0 %vm1007_vm6, %v1382_v12 }
 0x591   : > { %3369 = vrot.lane.b32.xlu0 %v4083_v10, %s3638_s25  ;;  %s3640_s25 = smov 8  }
 0x592   : > { %v1895_v37 = vpop.xlane.xlu0 %1894 }
 0x593   : > { %v1909_v23 = vsub.f32 %v4510_v57, %v1895_v37 }
 0x594   : > { %3183 = vmatmul.msk.f32.gmra.mxu0 %vm1007_vm6, %v1383_v26 }
 0x59a   : > { %v4629_v14 = vpop.xlane.xlu0 %1897 }
 0x59c   : > { %3184 = vmatmul.msk.f32.gmra.mxu0 %vm1007_vm6, %v1384_v44 }
 0x5a2   : > { %v4633_v39 = vpop.xlane.xlu0 %1900 }
 0x5a3   : > { %v1592_v9 = vpop.xlane.xlu2 %1591 }
 0x5a4   : > { %3185 = vmatmul.msk.f32.gmra.mxu0 %vm1007_vm6, %v1385_v13  ;;  %v1614_v48 = vsub.f32 %v4534_v22, %v1592_v9 }
 0x5a6   : > { %v1622_v28 = vmul.f32 1.442695, %v1614_v48 }
 0x5a8   : > { %3486 = vpow2.f32 %v1622_v28 }
 0x5ab   : > { %v1595_v55 = vpop.xlane.xlu2 %1594 }
 0x5ac   : > { %v1615_v41 = vsub.f32 %v4543_v32, %v1595_v55  ;;  %v1908_v32 = vsub.f32 %v4499_v33, %v1892_v24 }
 0x5ae   : > { %v4636_v34 = vpop.eup %3486  ;;  %v1624_v46 = vmul.f32 1.442695, %v1615_v41  ;;  %v1919_v8 = vmul.f32 1.442695, %v1908_v32 }
 0x5af   : > { %v1638_v63 = vsel %vm1007_vm6, %v4636_v34, 0.0 }
 0x5b0   : > { %3488 = vpow2.f32 %v1624_v46  ;;  %1639 = vadd.xlane.f32.xlu2 %v1638_v63 }
 0x5b3   : > { %v1370_v22 = vpop.xlane.xlu1 %1369  ;;  %v1598_v19 = vpop.xlane.xlu2 %1597 }
 0x5b4   : > { %3490 = vrcp.f32 %v1370_v22 }
 0x5b5   : > { %v3350_v1 = vpop.permute.xlu0 %3349  ;;  %3492 = vpow2.f32 %v1917_v27  ;;  %v1910_v27 = vsub.f32 %v4519_v11, %v4629_v14 }
 0x5b6   : > { %v3351_v6 = vunpack.i.l.bf16 %v3350_v1  ;;  %v4641_v7 = vpop.eup %3488  ;;  %v3352_v3 = vunpack.i.h.bf16 %v3350_v1  ;;  %3494 = vpow2.f32 %v1919_v8 }
 0x5b7   : > { %v1641_v15 = vsel %vm1007_vm6, %v4641_v7, 0.0  ;;  %v1923_v1 = vmul.f32 1.442695, %v1910_v27 }
 0x5b8   : > { %1736 = vmatpush.msrb.mxu1 %v3351_v6  ;;  %1642 = vadd.xlane.f32.xlu1 %v1641_v15 }
 0x5ba   : > { %v3491_v50 = vpop.eup %3490  ;;  %1737 = vmatpush.msrb.mxu1 %v3352_v3 }
 0x5bb   : > { %v1386_v45 = vmul.f32 %v3491_v50, %v4550_v53  ;;  %v1601_v43 = vpop.xlane.xlu2 %1600  ;;  %v4647_v2 = vpop.eup %3492  ;;  %v1921_v53 = vmul.f32 1.442695, %v1909_v23 }
 0x5bc   : > { %1738 = vmatpush.msrb.mxu1 %v3361_v61  ;;  %v1617_v21 = vsub.f32 %v4563_v54, %v1601_v43  ;;  %v1935_v35 = vsel %vm1007_vm6, %v4647_v2, 0.0  ;;  %v4654_v16 = vpop.eup %3494 }
 0x5bd   : > { %3186 = vmatmul.msk.f32.gmra.mxu0 %vm1007_vm6, %v1386_v45  ;;  %v1938_v57 = vsel %vm1007_vm6, %v4654_v16, 0.0 }
 0x5be   : > { %1739 = vmatpush.msrb.mxu1 %v3362_v5  ;;  %v1628_v33 = vmul.f32 1.442695, %v1617_v21 }
 0x5c0   : > { %3496 = vpow2.f32 %v1628_v33  ;;  %1936 = vadd.xlane.f32.xlu1 %v1935_v35 }
 0x5c1   : > { %3498 = vpow2.f32 %v1921_v53 }
 0x5c3   : > { %v1604_v12 = vpop.xlane.xlu2 %1603 }
 0x5c4   : > { %v1618_v54 = vsub.f32 %v4571_v62, %v1604_v12 }
 0x5c6   : > { %v4656_v24 = vpop.eup %3496  ;;  %v1630_v42 = vmul.f32 1.442695, %v1618_v54 }
 0x5c7   : > { %v1647_v26 = vsel %vm1007_vm6, %v4656_v24, 0.0  ;;  %v4665_v44 = vpop.eup %3498 }
 0x5c8   : > { %3374 = vrot.lane.b32.xlu2 %v4083_v10, %s3639_s16  ;;  %1648 = vadd.xlane.f32.xlu0 %v1647_v26  ;;  %3500 = vpow2.f32 %v1630_v42  ;;  %v1941_v62 = vsel %vm1007_vm6, %v4665_v44, 0.0  ;;  %s3641_s16 = smov 16  }
 0x5c9   : > { %1939 = vadd.xlane.f32.xlu1 %v1938_v57 }
 0x5cb   : > { %v1607_v37 = vpop.xlane.xlu2 %1606 }
 0x5cc   : > { %v1619_v17 = vsub.f32 %v4581_v18, %v1607_v37  ;;  %v1616_v18 = vsub.f32 %v4552_v30, %v1598_v19  ;;  %v1911_v19 = vsub.f32 %v4528_v0, %v4633_v39 }
 0x5ce   : > { %v1632_v13 = vmul.f32 1.442695, %v1619_v17  ;;  %v4670_v9 = vpop.eup %3500  ;;  %v1626_v46 = vmul.f32 1.442695, %v1616_v18  ;;  %v1925_v3 = vmul.f32 1.442695, %v1911_v19  ;;  %v1452_v23 = vpop.f32.mrf.mxu0 }
 0x5cf   : > { %v1650_v10 = vsel %vm1007_vm6, %v4670_v9, 0.0 }
 0x5d0   : > { %3502 = vpow2.f32 %v1632_v13 }
 0x5d1   : > { %1942 = vadd.xlane.f32.xlu1 %v1941_v62 }
 0x5d6   : > { %v4675_v52 = vpop.eup %3502 }
 0x5d7   : > { %v1653_v40 = vsel %vm1007_vm6, %v4675_v52, 0.0 }
 0x5d9   : > { %1651 = vadd.xlane.f32.xlu1 %v1650_v10 }
 0x5db   : > { %v1613_v48 = vpop.xlane.xlu1 %1612 }
 0x5dc   : > { %v1621_v28 = vsub.f32 %v4592_v29, %v1613_v48 }
 0x5de   : > { %v1636_v55 = vmul.f32 1.442695, %v1621_v28 }
 0x5e0   : > { %v1904_v41 = vpop.xlane.xlu0 %1903  ;;  %3504 = vpow2.f32 %v1636_v55 }
 0x5e1   : > { %1654 = vadd.xlane.f32.xlu1 %v1653_v40  ;;  %3506 = vpow2.f32 %v1626_v46  ;;  %v1912_v11 = vsub.f32 %v4594_v36, %v1904_v41 }
 0x5e2   : > { %3508 = vpow2.f32 %v1923_v1 }
 0x5e3   : > { %v1927_v61 = vmul.f32 1.442695, %v1912_v11 }
 0x5e6   : > { %v4680_v63 = vpop.eup %3504 }
 0x5e7   : > { %v1659_v29 = vsel %vm1007_vm6, %v4680_v63, 0.0  ;;  %v4686_v30 = vpop.eup %3506 }
 0x5e8   : > { %v1931_v22 = vpop.xlane.xlu0 %1930  ;;  %1660 = vadd.xlane.f32.xlu0 %v1659_v29  ;;  %v1644_v15 = vsel %vm1007_vm6, %v4686_v30, 0.0  ;;  %v4694_v50 = vpop.eup %3508 }
 0x5e9   : > { %v1944_v45 = vsel %vm1007_vm6, %v4694_v50, 0.0 }
 0x5f0   : > { %v1610_v6 = vpop.xlane.xlu0 %1609 }
 0x5f1   : > { %v1620_v32 = vsub.f32 %v4607_v31, %v1610_v6  ;;  %1645 = vadd.xlane.f32.xlu2 %v1644_v15 }
 0x5f3   : > { %v1634_v14 = vmul.f32 1.442695, %v1620_v32 }
 0x5f5   : > { %3510 = vpow2.f32 %v1634_v14 }
 0x5f6   : > { %3512 = vpow2.f32 %v1925_v3 }
 0x5f7   : > { %3514 = vpow2.f32 %v1927_v61 }
 0x5f9   : > { %1945 = vadd.xlane.f32.xlu2 %v1944_v45  ;;  %v1455_v19 = vpop.f32.mrf.mxu0 }
 0x5fa   : > { %v1934_v35 = vpop.xlane.xlu1 %1933 }
 0x5fb   : > { %v4698_v0 = vpop.eup %3510 }
 0x5fc   : > { %v1656_v31 = vsel %vm1007_vm6, %v4698_v0, 0.0  ;;  %v4702_v39 = vpop.eup %3512 }
 0x5fd   : > { %1657 = vadd.xlane.f32.xlu1 %v1656_v31  ;;  %v4704_v36 = vpop.eup %3514  ;;  %v1947_v8 = vsel %vm1007_vm6, %v4702_v39, 0.0 }
 0x5fe   : > { %v1950_v5 = vsel %vm1007_vm6, %v4704_v36, 0.0 }
 0x601   : > { %1948 = vadd.xlane.f32.xlu2 %v1947_v8  ;;  %v1458_v61 = vpop.f32.mrf.mxu0 }
 0x603   : > { %v3370_v43 = vpop.permute.xlu0 %3369 }
 0x604   : > { %v3371_v21 = vunpack.i.l.bf16 %v3370_v43  ;;  %v3372_v33 = vunpack.i.h.bf16 %v3370_v43 }
 0x605   : > { %1951 = vadd.xlane.f32.xlu1 %v1950_v5 }
 0x606   : > { %1740 = vmatpush.msrb.mxu1 %v3371_v21 }
 0x608   : > { %1741 = vmatpush.msrb.mxu1 %v3372_v33 }
 0x619   : > { %2066 = vrot.lane.b32.xlu2 %v1452_v23, %s3640_s25 }
 0x623   : > { %v1640_v53 = vpop.xlane.xlu2 %1639 }
 0x624   : > { %3516 = vrcp.f32 %v1640_v53 }
 0x625   : > { %3518 = vrcp.f32 %v1931_v22 }
 0x62a   : > { %v3517_v12 = vpop.eup %3516 }
 0x62b   : > { %v3375_v54 = vpop.permute.xlu2 %3374  ;;  %v1643_v26 = vpop.xlane.xlu1 %1642  ;;  %v1670_v57 = vmul.f32 %v3517_v12, %v4636_v34 }
 0x62c   : > { %v3519_v42 = vpop.eup %3518  ;;  %v3376_v37 = vunpack.i.l.bf16 %v3375_v54  ;;  %3520 = vrcp.f32 %v1643_v26  ;;  %v3377_v17 = vunpack.i.h.bf16 %v3375_v54 }
 0x62d   : > { %3211 = vmatmul.msk.f32.vlgmr.msrb.gmra.mxu1 %vm1007_vm6, %v1670_v57  ;;  %3522 = vrcp.f32 %v1934_v35  ;;  %v1961_v62 = vmul.f32 %v3519_v42, %v4600_v47 }
 0x62e   : > { %2031 = vmatpush.msra.mxu0 %v3376_v37 }
 0x630   : > { %2032 = vmatpush.msra.mxu0 %v3377_v17  ;;  %v2183_v17 = vld [vmem:[%s5195_s5 + $0x18] sm:$0xff] }
 0x631   : > { %3243 = vmatmul.msk.f32.vlgmr.msra.gmra.mxu0 %vm1007_vm6, %v1961_v62  ;;  %2224 = vmatpush.msra.mxu2 %v2183_v17 }
 0x632   : > { %v3521_v13 = vpop.eup %3520 }
 0x633   : > { %v1937_v10 = vpop.xlane.xlu1 %1936  ;;  %v1671_v48 = vmul.f32 %v3521_v13, %v4641_v7  ;;  %v3523_v28 = vpop.eup %3522  ;;  %v2182_v13 = vld [vmem:[%s5195_s5 + $0x10] sm:$0xff] }
 0x634   : > { %3524 = vrcp.f32 %v1937_v10  ;;  %v1962_v34 = vmul.f32 %v3523_v28, %v4616_v4  ;;  %2225 = vmatpush.msra.mxu2 %v2182_v13 }
 0x635   : > { %3212 = vmatmul.msk.f32.gmra.mxu1 %vm1007_vm6, %v1671_v48  ;;  %v2181_v48 = vld [vmem:[%s5195_s5 + $0x8] sm:$0xff] }
 0x636   : > { %2226 = vmatpush.msra.mxu2 %v2181_v48 }
 0x639   : > { %3244 = vmatmul.msk.f32.gmra.mxu0 %vm1007_vm6, %v1962_v34 }
 0x63a   : > { %v3525_v55 = vpop.eup %3524 }
 0x63b   : > { %v1963_v47 = vmul.f32 %v3525_v55, %v4647_v2  ;;  %v1649_v1 = vpop.xlane.xlu0 %1648 }
 0x63c   : > { %v1940_v18 = vpop.xlane.xlu1 %1939 }
 0x63d   : > { %3526 = vrcp.f32 %v1940_v18 }
 0x641   : > { %3245 = vmatmul.msk.f32.gmra.mxu0 %vm1007_vm6, %v1963_v47  ;;  %v2180_v47 = vld [vmem:[%s5195_s5] sm:$0xff] }
 0x642   : > { %2227 = vmatpush.msra.mxu2 %v2180_v47 }
 0x643   : > { %v3527_v41 = vpop.eup %3526 }
 0x644   : > { %v1943_v40 = vpop.xlane.xlu1 %1942  ;;  %v1964_v7 = vmul.f32 %v3527_v41, %v4654_v16 }
 0x645   : > { %3528 = vrcp.f32 %v1943_v40 }
 0x649   : > { %3246 = vmatmul.msk.f32.gmra.mxu0 %vm1007_vm6, %v1964_v7 }
 0x64b   : > { %v3529_v46 = vpop.eup %3528 }
 0x64c   : > { %v1965_v27 = vmul.f32 %v3529_v46, %v4665_v44  ;;  %v1652_v4 = vpop.xlane.xlu1 %1651 }
 0x651   : > { %3247 = vmatmul.msk.f32.gmra.mxu0 %vm1007_vm6, %v1965_v27 }
 0x654   : > { %v1655_v22 = vpop.xlane.xlu1 %1654 }
 0x65b   : > { %v1661_v23 = vpop.xlane.xlu0 %1660 }
 0x664   : > { %v1646_v29 = vpop.xlane.xlu2 %1645 }
 0x665   : > { %3530 = vrcp.f32 %v1646_v29 }
 0x666   : > { %3532 = vrcp.f32 %v1649_v1 }
 0x66b   : > { %v3531_v2 = vpop.eup %3530 }
 0x66c   : > { %v1946_v6 = vpop.xlane.xlu2 %1945  ;;  %v1672_v32 = vmul.f32 %v3531_v2, %v4686_v30  ;;  %v3533_v15 = vpop.eup %3532 }
 0x66d   : > { %3534 = vrcp.f32 %v1946_v6  ;;  %v1673_v14 = vmul.f32 %v3533_v15, %v4656_v24 }
 0x66e   : > { %3213 = vmatmul.msk.f32.gmra.mxu1 %vm1007_vm6, %v1672_v32  ;;  %3536 = vrcp.f32 %v1652_v4 }
 0x670   : > { %v1658_v16 = vpop.xlane.xlu1 %1657 }
 0x673   : > { %v3535_v11 = vpop.eup %3534 }
 0x674   : > { %v1949_v44 = vpop.xlane.xlu2 %1948  ;;  %v1966_v3 = vmul.f32 %v3535_v11, %v4694_v50  ;;  %v3537_v30 = vpop.eup %3536 }
 0x675   : > { %3538 = vrcp.f32 %v1949_v44  ;;  %v1674_v8 = vmul.f32 %v3537_v30, %v4670_v9  ;;  %v1461_v50 = vpop.f32.mrf.mxu0 }
 0x676   : > { %3214 = vmatmul.msk.f32.gmra.mxu1 %vm1007_vm6, %v1673_v14  ;;  %3248 = vmatmul.msk.f32.gmra.mxu0 %vm1007_vm6, %v1966_v3  ;;  %3540 = vrcp.f32 %v1655_v22 }
 0x678   : > { %v1952_v45 = vpop.xlane.xlu1 %1951 }
 0x679   : > { %3542 = vrcp.f32 %v1952_v45 }
 0x67a   : > { %3544 = vrcp.f32 %v1658_v16 }
 0x67b   : > { %v3539_v31 = vpop.eup %3538  ;;  %3546 = vrcp.f32 %v1661_v23 }
 0x67c   : > { %v1967_v43 = vmul.f32 %v3539_v31, %v4702_v39  ;;  %v3541_v24 = vpop.eup %3540  ;;  %v2067_v27 = vpop.permute.xlu2 %2066 }
 0x67d   : > { %v1675_v21 = vmul.f32 %v3541_v24, %v4675_v52  ;;  %v1464_v35 = vpop.f32.mrf.mxu0  ;;  %v2154_v29 = vsel %vm925_vm5, %v4459_v38, %v2067_v27 }
 0x67e   : > { %3215 = vmatmul.msk.f32.gmra.mxu1 %vm1007_vm6, %v1674_v8  ;;  %3249 = vmatmul.msk.f32.gmra.mxu0 %vm1007_vm6, %v1967_v43 }
 0x67f   : > { %v3543_v5 = vpop.eup %3542 }
 0x680   : > { %v1968_v33 = vmul.f32 %v3543_v5, %v4704_v36  ;;  %v3545_v9 = vpop.eup %3544 }
 0x681   : > { %v1676_v39 = vmul.f32 %v3545_v9, %v4698_v0  ;;  %v3547_v53 = vpop.eup %3546 }
 0x682   : > { %v1677_v54 = vmul.f32 %v3547_v53, %v4680_v63 }
 0x685   : > { %v1467_v12 = vpop.f32.mrf.mxu0 }
 0x686   : > { %3216 = vmatmul.msk.f32.gmra.mxu1 %vm1007_vm6, %v1675_v21  ;;  %3250 = vmatmul.msk.f32.gmra.mxu0 %vm1007_vm6, %v1968_v33 }
 0x68d   : > { %v1470_v52 = vpop.f32.mrf.mxu0 }
 0x68e   : > { %3217 = vmatmul.msk.f32.gmra.mxu1 %vm1007_vm6, %v1676_v39 }
 0x695   : > { %v1473_v36 = vpop.f32.mrf.mxu0 }
 0x696   : > { %3218 = vmatmul.msk.f32.gmra.mxu1 %vm1007_vm6, %v1677_v54 }
 0x6aa   : > { %v1743_v26 = vpop.f32.mrf.mxu1 }
 0x6ab   : > { %2098 = vrot.lane.b32.xlu0 %v1743_v26, %s3641_s16 }
 0x6ae   : > { %v2034_v57 = vpop.f32.mrf.mxu0 }
 0x6af   : > { %2130 = vrot.lane.b32.xlu1 %v2034_v57, %s3642_s20 }
 0x6b2   : > { %v1746_v42 = vpop.f32.mrf.mxu1 }
 0x6b3   : > { %2100 = vrot.lane.b32.xlu2 %v1746_v42, %s3641_s16  ;;  %2068 = vrot.lane.b32.xlu0 %v1455_v19, %s3640_s25 }
 0x6b6   : > { %v2037_v0 = vpop.f32.mrf.mxu0 }
 0x6b7   : > { %2070 = vrot.lane.b32.xlu1 %v1458_v61, %s3640_s25 }
 0x6bb   : > { %2132 = vrot.lane.b32.xlu0 %v2037_v0, %s3642_s20 }
 0x6be   : > { %v2040_v63 = vpop.f32.mrf.mxu0 }
 0x6bf   : > { %2072 = vrot.lane.b32.xlu1 %v1461_v50, %s3640_s25 }
 0x6c3   : > { %2134 = vrot.lane.b32.xlu0 %v2040_v63, %s3642_s20 }
 0x6c6   : > { %v2043_v37 = vpop.f32.mrf.mxu0 }
 0x6c7   : > { %2074 = vrot.lane.b32.xlu1 %v1464_v35, %s3640_s25 }
 0x6cb   : > { %2136 = vrot.lane.b32.xlu0 %v2043_v37, %s3642_s20 }
 0x6ce   : > { %v2046_v62 = vpop.f32.mrf.mxu0 }
 0x6cf   : > { %2076 = vrot.lane.b32.xlu1 %v1467_v12, %s3640_s25 }
 0x6d3   : > { %2138 = vrot.lane.b32.xlu0 %v2046_v62, %s3642_s20 }
 0x6d7   : > { %2078 = vrot.lane.b32.xlu1 %v1470_v52, %s3640_s25 }
 0x6df   : > { %2080 = vrot.lane.b32.xlu1 %v1473_v36, %s3640_s25 }
 0x6eb   : > { %v1749_v10 = vpop.f32.mrf.mxu1 }
 0x6ec   : > { %2102 = vrot.lane.b32.xlu2 %v1749_v10, %s3641_s16  ;;  %v3612_v10 = vld [vmem:[%s3734_s18] sm:$0xff] }
 0x6f3   : > { %v1752_v28 = vpop.f32.mrf.mxu1  ;;  %v2049_v34 = vpop.f32.mrf.mxu0 }
 0x6f4   : > { %2104 = vrot.lane.b32.xlu2 %v1752_v28, %s3641_s16  ;;  %2140 = vrot.lane.b32.xlu0 %v2049_v34, %s3642_s20 }
 0x6fb   : > { %v1755_v55 = vpop.f32.mrf.mxu1  ;;  %v2052_v18 = vpop.f32.mrf.mxu0 }
 0x6fc   : > { %2106 = vrot.lane.b32.xlu2 %v1755_v55, %s3641_s16  ;;  %2142 = vrot.lane.b32.xlu0 %v2052_v18, %s3642_s20  ;;  %v3613_v55 = vld [vmem:[%s3734_s18 + $0x8] sm:$0xff] }
 0x703   : > { %v1758_v41 = vpop.f32.mrf.mxu1  ;;  %v2055_v40 = vpop.f32.mrf.mxu0 }
 0x704   : > { %2108 = vrot.lane.b32.xlu2 %v1758_v41, %s3641_s16  ;;  %2144 = vrot.lane.b32.xlu0 %v2055_v40, %s3642_s20 }
 0x70b   : > { %v1761_v7 = vpop.f32.mrf.mxu1 }
 0x70c   : > { %2110 = vrot.lane.b32.xlu2 %v1761_v7, %s3641_s16  ;;  %v3614_v7 = vld [vmem:[%s3734_s18 + $0x10] sm:$0xff] }
 0x70d   : > { %v2101_v32 = vpop.permute.xlu2 %2100 }
 0x713   : > { %v1764_v46 = vpop.f32.mrf.mxu1 }
 0x714   : > { %2112 = vrot.lane.b32.xlu2 %v1764_v46, %s3641_s16 }
 0x71d   : > { %v2099_v4 = vpop.permute.xlu0 %2098 }
 0x71e   : > { %v2163_v22 = vsel %vm2162_vm7, %v2154_v29, %v2099_v4 }
 0x721   : > { %v2131_v1 = vpop.permute.xlu1 %2130 }
 0x722   : > { %v2172_v2 = vsel %vm2171_vm8, %v2163_v22, %v2131_v1  ;;  %v3615_v22 = vld [vmem:[%s3734_s18 + $0x18] sm:$0xff] }
 0x723   : > { %3251 = vmatmul.msk.f32.vlgmr.msra.gmra.mxu2 %vm478_vm0, %v2172_v2 }
 0x725   : > { %v2069_v19 = vpop.permute.xlu0 %2068 }
 0x726   : > { %v2155_v6 = vsel %vm925_vm5, %v4466_v49, %v2069_v19 }
 0x727   : > { %v2164_v15 = vsel %vm2162_vm7, %v2155_v6, %v2101_v32  ;;  %v3616_v32 = vld [vmem:[%s3734_s18 + $0x20] sm:$0xff] }
 0x729   : > { %v2071_v38 = vpop.permute.xlu1 %2070 }
 0x72a   : > { %v2156_v14 = vsel %vm925_vm5, %v4470_v56, %v2071_v38 }
 0x72d   : > { %v2133_v16 = vpop.permute.xlu0 %2132 }
 0x72e   : > { %v2173_v11 = vsel %vm2171_vm8, %v2164_v15, %v2133_v16 }
 0x72f   : > { %3252 = vmatmul.msk.f32.gmra.mxu2 %vm478_vm0, %v2173_v11 }
 0x731   : > { %v2073_v30 = vpop.permute.xlu1 %2072 }
 0x732   : > { %v2157_v31 = vsel %vm925_vm5, %v4479_v59, %v2073_v30  ;;  %v3618_v30 = vld [vmem:[%s3734_s18 + $0x30] sm:$0xff] }
 0x735   : > { %v2135_v44 = vpop.permute.xlu0 %2134 }
 0x739   : > { %v2075_v56 = vpop.permute.xlu1 %2074 }
 0x73a   : > { %v2158_v50 = vsel %vm925_vm5, %v4490_v51, %v2075_v56 }
 0x73d   : > { %v2137_v49 = vpop.permute.xlu0 %2136 }
 0x741   : > { %v2077_v59 = vpop.permute.xlu1 %2076 }
 0x742   : > { %v2159_v35 = vsel %vm925_vm5, %v4501_v25, %v2077_v59 }
 0x745   : > { %v2139_v21 = vpop.permute.xlu0 %2138 }
 0x746   : > { %v2103_v3 = vpop.permute.xlu2 %2102 }
 0x747   : > { %v2165_v61 = vsel %vm2162_vm7, %v2156_v14, %v2103_v3 }
 0x748   : > { %v2174_v45 = vsel %vm2171_vm8, %v2165_v61, %v2135_v44  ;;  %v3617_v44 = vld [vmem:[%s3734_s18 + $0x28] sm:$0xff] }
 0x749   : > { %3253 = vmatmul.msk.f32.gmra.mxu2 %vm478_vm0, %v2174_v45  ;;  %v2079_v54 = vpop.permute.xlu1 %2078 }
 0x74a   : > { %v2160_v52 = vsel %vm925_vm5, %v4512_v58, %v2079_v54  ;;  %v3381_v58 = vld [vmem:[%s5196_s6] ss:$0 sm:$0xff] }
 0x74e   : > { %v2105_v8 = vpop.permute.xlu2 %2104 }
 0x74f   : > { %v2166_v43 = vsel %vm2162_vm7, %v2157_v31, %v2105_v8 }
 0x750   : > { %v2175_v24 = vsel %vm2171_vm8, %v2166_v43, %v2137_v49 }
 0x751   : > { %3254 = vmatmul.msk.f32.gmra.mxu2 %vm478_vm0, %v2175_v24  ;;  %v2081_v25 = vpop.permute.xlu1 %2080 }
 0x752   : > { %v2161_v0 = vsel %vm925_vm5, %v4521_v60, %v2081_v25 }
 0x756   : > { %v2107_v5 = vpop.permute.xlu2 %2106 }
 0x757   : > { %v2167_v33 = vsel %vm2162_vm7, %v2158_v50, %v2107_v5 }
 0x758   : > { %v2176_v23 = vsel %vm2171_vm8, %v2167_v33, %v2139_v21  ;;  %v3619_v33 = vld [vmem:[%s3734_s18 + $0x38] sm:$0xff] }
 0x759   : > { %3255 = vmatmul.msk.f32.gmra.mxu2 %vm478_vm0, %v2176_v23 }
 0x75e   : > { %v2109_v9 = vpop.permute.xlu2 %2108 }
 0x75f   : > { %v2168_v39 = vsel %vm2162_vm7, %v2159_v35, %v2109_v9 }
 0x766   : > { %v2141_v53 = vpop.permute.xlu0 %2140  ;;  %v2111_v51 = vpop.permute.xlu2 %2110 }
 0x767   : > { %v2177_v12 = vsel %vm2171_vm8, %v2168_v39, %v2141_v53  ;;  %v2169_v36 = vsel %vm2162_vm7, %v2160_v52, %v2111_v51 }
 0x768   : > { %3256 = vmatmul.msk.f32.gmra.mxu2 %vm478_vm0, %v2177_v12 }
 0x76e   : > { %v2143_v26 = vpop.permute.xlu0 %2142  ;;  %v2113_v42 = vpop.permute.xlu2 %2112 }
 0x76f   : > { %v2178_v57 = vsel %vm2171_vm8, %v2169_v36, %v2143_v26  ;;  %v2170_v63 = vsel %vm2162_vm7, %v2161_v0, %v2113_v42 }
 0x770   : > { %3257 = vmatmul.msk.f32.gmra.mxu2 %vm478_vm0, %v2178_v57 }
 0x776   : > { %v2145_v37 = vpop.permute.xlu0 %2144 }
 0x777   : > { %v2179_v17 = vsel %vm2171_vm8, %v2170_v63, %v2145_v37 }
 0x778   : > { %3258 = vmatmul.msk.f32.gmra.mxu2 %vm478_vm0, %v2179_v17 }
 0x7a6   : > { %v2229_v62 = vpop.f32.mrf.mxu2 }
 0x7a7   : > { %v2230_v13 = vadd.f32 %v3381_v58, %v2229_v62 }
 0x7a9   : > { %v4822_v48 = vadd.f32 %v3612_v10, %v2230_v13 }
 0x7ab   : > { %v2263_v60 = vsel %vm478_vm0, %v4822_v48, 0.0 }
 0x7ac   : > { %2264 = vadd.xlane.f32.xlu1 %v2263_v60 }
 0x7b2   : > { %v2232_v28 = vpop.f32.mrf.mxu2 }
 0x7b3   : > { %v2233_v34 = vadd.f32 %v3381_v58, %v2232_v28 }
 0x7b5   : > { %v4827_v18 = vadd.f32 %v3613_v55, %v2233_v34 }
 0x7b7   : > { %v2266_v47 = vsel %vm478_vm0, %v4827_v18, 0.0 }
 0x7b8   : > { %2267 = vadd.xlane.f32.xlu2 %v2266_v47 }
 0x7cc   : > { %v2235_v41 = vpop.f32.mrf.mxu2 }
 0x7cd   : > { %v2236_v40 = vadd.f32 %v3381_v58, %v2235_v41 }
 0x7cf   : > { %v4832_v46 = vadd.f32 %v3614_v7, %v2236_v40 }
 0x7d1   : > { %v2269_v27 = vsel %vm478_vm0, %v4832_v46, 0.0 }
 0x7d2   : > { %2270 = vadd.xlane.f32.xlu0 %v2269_v27 }
 0x7d4   : > { %v2238_v4 = vpop.f32.mrf.mxu2 }
 0x7d5   : > { %v2239_v29 = vadd.f32 %v3381_v58, %v2238_v4 }
 0x7d7   : > { %v4837_v1 = vadd.f32 %v3615_v22, %v2239_v29 }
 0x7d9   : > { %v2272_v2 = vsel %vm478_vm0, %v4837_v1, 0.0 }
 0x7da   : > { %2273 = vadd.xlane.f32.xlu1 %v2272_v2 }
 0x7dc   : > { %v2241_v19 = vpop.f32.mrf.mxu2 }
 0x7dd   : > { %v2242_v6 = vadd.f32 %v3381_v58, %v2241_v19 }
 0x7df   : > { %v4842_v16 = vadd.f32 %v3616_v32, %v2242_v6 }
 0x7e1   : > { %v2275_v15 = vsel %vm478_vm0, %v4842_v16, 0.0 }
 0x7e2   : > { %2276 = vadd.xlane.f32.xlu2 %v2275_v15 }
 0x7eb   : > { %v2244_v11 = vpop.f32.mrf.mxu2 }
 0x7ec   : > { %v2245_v38 = vadd.f32 %v3381_v58, %v2244_v11 }
 0x7ee   : > { %v4847_v14 = vadd.f32 %v3617_v44, %v2245_v38 }
 0x7f0   : > { %v2278_v3 = vsel %vm478_vm0, %v4847_v14, 0.0 }
 0x7f1   : > { %2279 = vadd.xlane.f32.xlu0 %v2278_v3 }
 0x7f3   : > { %v2247_v61 = vpop.f32.mrf.mxu2 }
 0x7f4   : > { %v2248_v45 = vadd.f32 %v3381_v58, %v2247_v61 }
 0x7f6   : > { %v4852_v49 = vadd.f32 %v3618_v30, %v2248_v45 }
 0x7f8   : > { %v2281_v31 = vsel %vm478_vm0, %v4852_v49, 0.0 }
 0x7f9   : > { %2282 = vadd.xlane.f32.xlu2 %v2281_v31  ;;  %v2592_v31 = vld [vmem:[%s5200_s10 + $0x18] sm:$0xff] }
 0x7fa   : > { %2633 = vmatpush.msrb.mxu0 %v2592_v31  ;;  %3271 = vmatpush.msra.mxu1 %v2592_v31 }
 0x7fb   : > { %v2250_v56 = vpop.f32.mrf.mxu2 }
 0x7fc   : > { %v2251_v5 = vadd.f32 %v3381_v58, %v2250_v56 }
 0x7fe   : > { %v4864_v23 = vadd.f32 %v3619_v33, %v2251_v5 }
 0x800   : > { %v2284_v39 = vsel %vm478_vm0, %v4864_v23, 0.0 }
 0x81f   : > { %v2265_v8 = vpop.xlane.xlu1 %2264 }
 0x820   : > { %v2287_v43 = vmul.f32 %v2265_v8, %v3750_v20 }
 0x822   : > { %v4858_v24 = vsub.f32 %v4822_v48, %v2287_v43  ;;  %v2591_v43 = vld [vmem:[%s5200_s10 + $0x10] sm:$0xff] }
 0x823   : > { %2634 = vmatpush.msrb.mxu0 %v2591_v43  ;;  %3272 = vmatpush.msra.mxu1 %v2591_v43 }
 0x824   : > { %v2303_v50 = vmul.f32 %v4858_v24, %v4858_v24 }
 0x826   : > { %v2311_v21 = vsel %vm478_vm0, %v2303_v50, 0.0  ;;  %v2590_v50 = vld [vmem:[%s5200_s10 + $0x8] sm:$0xff] }
 0x827   : > { %2312 = vadd.xlane.f32.xlu1 %v2311_v21  ;;  %2635 = vmatpush.msrb.mxu0 %v2590_v50 }
 0x828   : > { %3273 = vmatpush.msra.mxu1 %v2590_v50 }
 0x82b   : > { %v2268_v59 = vpop.xlane.xlu2 %2267 }
 0x82c   : > { %v2288_v9 = vmul.f32 %v2268_v59, %v3750_v20  ;;  %v2589_v59 = vld [vmem:[%s5200_s10] sm:$0xff] }
 0x82d   : > { %2636 = vmatpush.msrb.mxu0 %v2589_v59  ;;  %3274 = vmatpush.msra.mxu1 %v2589_v59 }
 0x82e   : > { %v4868_v35 = vsub.f32 %v4827_v18, %v2288_v9 }
 0x82f   : > { %2285 = vadd.xlane.f32.xlu1 %v2284_v39 }
 0x830   : > { %v2304_v53 = vmul.f32 %v4868_v35, %v4868_v35 }
 0x832   : > { %v2314_v12 = vsel %vm478_vm0, %v2304_v53, 0.0 }
 0x833   : > { %2315 = vadd.xlane.f32.xlu0 %v2314_v12 }
 0x845   : > { %v2271_v54 = vpop.xlane.xlu0 %2270 }
 0x846   : > { %v2289_v51 = vmul.f32 %v2271_v54, %v3750_v20 }
 0x848   : > { %v4877_v52 = vsub.f32 %v4832_v46, %v2289_v51 }
 0x84a   : > { %v2305_v36 = vmul.f32 %v4877_v52, %v4877_v52 }
 0x84c   : > { %v2317_v26 = vsel %vm478_vm0, %v2305_v36, 0.0 }
 0x84d   : > { %v2274_v57 = vpop.xlane.xlu1 %2273  ;;  %2318 = vadd.xlane.f32.xlu2 %v2317_v26 }
 0x84e   : > { %v2290_v25 = vmul.f32 %v2274_v57, %v3750_v20 }
 0x850   : > { %v4884_v42 = vsub.f32 %v4837_v1, %v2290_v25 }
 0x852   : > { %v2306_v0 = vmul.f32 %v4884_v42, %v4884_v42 }
 0x854   : > { %v2320_v63 = vsel %vm478_vm0, %v2306_v0, 0.0 }
 0x855   : > { %v2277_v37 = vpop.xlane.xlu2 %2276  ;;  %2321 = vadd.xlane.f32.xlu0 %v2320_v63 }
 0x856   : > { %v2291_v17 = vmul.f32 %v2277_v37, %v3750_v20 }
 0x858   : > { %v4891_v58 = vsub.f32 %v4842_v16, %v2291_v17 }
 0x85a   : > { %v2307_v62 = vmul.f32 %v4891_v58, %v4891_v58 }
 0x85c   : > { %v2323_v13 = vsel %vm478_vm0, %v2307_v62, 0.0 }
 0x85d   : > { %2324 = vadd.xlane.f32.xlu1 %v2323_v13 }
 0x864   : > { %v2280_v10 = vpop.xlane.xlu0 %2279 }
 0x865   : > { %v2292_v60 = vmul.f32 %v2280_v10, %v3750_v20 }
 0x867   : > { %v4898_v28 = vsub.f32 %v4847_v14, %v2292_v60 }
 0x869   : > { %v2308_v34 = vmul.f32 %v4898_v28, %v4898_v28 }
 0x86b   : > { %v2326_v55 = vsel %vm478_vm0, %v2308_v34, 0.0 }
 0x86c   : > { %v2283_v47 = vpop.xlane.xlu2 %2282  ;;  %2327 = vadd.xlane.f32.xlu2 %v2326_v55 }
 0x86d   : > { %v2293_v41 = vmul.f32 %v2283_v47, %v3750_v20 }
 0x86f   : > { %v4905_v40 = vsub.f32 %v4852_v49, %v2293_v41 }
 0x871   : > { %v2309_v7 = vmul.f32 %v4905_v40, %v4905_v40 }
 0x873   : > { %v2329_v27 = vsel %vm478_vm0, %v2309_v7, 0.0 }
 0x874   : > { %2330 = vadd.xlane.f32.xlu0 %v2329_v27  ;;  %v4935_v27 = vld [vmem:[%s5198_s8] ss:$0 sm:$0xff] }
 0x89a   : > { %v2313_v4 = vpop.xlane.xlu1 %2312 }
 0x89b   : > { %v2335_v29 = vmul.f32 %v2313_v4, %v3750_v20 }
 0x89d   : > { %v2343_v22 = vadd.f32 1e-05, %v2335_v29 }
 0x89f   : > { %3548 = vrsqrt.f32 %v2343_v22  ;;  %vm2358_vm9 = vcmp.eq.f32.partialorder %v2343_v22, inf  ;;  %v2361_v33 = vand.u32 2147483648, %v2343_v22  ;;  %vm2360_vm10 = vcmp.eq.f32.partialorder %v2343_v22, 0.0 }
 0x8a2   : > { %v2286_v2 = vpop.xlane.xlu1 %2285 }
 0x8a3   : > { %v2294_v19 = vmul.f32 %v2286_v2, %v3750_v20 }
 0x8a5   : > { %v3549_v6 = vpop.eup %3548  ;;  %v4913_v32 = vsub.f32 %v4864_v23, %v2294_v19 }
 0x8a6   : > { %v2352_v15 = vmul.f32 %v3549_v6, %v2343_v22  ;;  %v2316_v11 = vpop.xlane.xlu0 %2315 }
 0x8a7   : > { %v2336_v38 = vmul.f32 %v2316_v11, %v3750_v20  ;;  %v2310_v44 = vmul.f32 %v4913_v32, %v4913_v32 }
 0x8a8   : > { %v2353_v3 = vmul.f32 %v3549_v6, %v2352_v15 }
 0x8a9   : > { %v2344_v61 = vadd.f32 1e-05, %v2336_v38  ;;  %v2332_v45 = vsel %vm478_vm0, %v2310_v44, 0.0 }
 0x8aa   : > { %v2354_v30 = vmul.f32 0.5, %v2353_v3  ;;  %2333 = vadd.xlane.f32.xlu1 %v2332_v45 }
 0x8ab   : > { %3550 = vrsqrt.f32 %v2344_v61  ;;  %vm2370_vm11 = vcmp.eq.f32.partialorder %v2344_v61, inf  ;;  %v2373_v0 = vand.u32 2147483648, %v2344_v61  ;;  %vm2372_vm12 = vcmp.eq.f32.partialorder %v2344_v61, 0.0 }
 0x8ac   : > { %v2355_v8 = vsub.f32 1.5, %v2354_v30 }
 0x8ae   : > { %v2356_v56 = vmul.f32 %v3549_v6, %v2355_v8 }
 0x8b0   : > { %v2357_v5 = vmul.f32 %v2356_v56, %v2343_v22 }
 0x8b1   : > { %v3551_v21 = vpop.eup %3550 }
 0x8b2   : > { %v2359_v9 = vsel %vm2358_vm9, %v2343_v22, %v2357_v5  ;;  %v2364_v39 = vmul.f32 %v3551_v21, %v2344_v61  ;;  %v4941_v22 = vld [vmem:[%s5199_s9] ss:$0 sm:$0xff] }
 0x8b3   : > { %v2362_v53 = vsel %vm2360_vm10, %v2361_v33, %v2359_v9 }
 0x8b4   : > { %3552 = vrcp.f32 %v2362_v53  ;;  %v2365_v12 = vmul.f32 %v3551_v21, %v2364_v39  ;;  %v2458_v17 = vand.u32 2147483648, %v2362_v53  ;;  %v2456_v13 = vand.u32 2147483647, %v2362_v53 }
 0x8b5   : > { %vm2452_vm14 = vweird.f32 %v2362_v53 }
 0x8b6   : > { %v2366_v54 = vmul.f32 0.5, %v2365_v12  ;;  %v2459_v47 = vor.u32 1.1754944e-38, %v2458_v17  ;;  %vm2457_vm1 = vcmp.eq.f32.partialorder %v2456_v13, 8.507059e+37 }
 0x8b8   : > { %v2367_v51 = vsub.f32 1.5, %v2366_v54 }
 0x8ba   : > { %v3553_v36 = vpop.eup %3552  ;;  %v2368_v26 = vmul.f32 %v3551_v21, %v2367_v51 }
 0x8bb   : > { %v2448_v57 = vmul.f32 %v3553_v36, %v2362_v53  ;;  %vm2453_vm13 = vweird.f32 %v3553_v36 }
 0x8bc   : > { %v2369_v25 = vmul.f32 %v2368_v26, %v2344_v61  ;;  %vm2454_vm15 = vmor %vm2452_vm14, %vm2453_vm13 }
 0x8bd   : > { %v2449_v63 = vsub.f32 1.0, %v2448_v57 }
 0x8be   : > { %v2371_v37 = vsel %vm2370_vm11, %v2344_v61, %v2369_v25 }
 0x8bf   : > { %v2450_v62 = vmul.f32 %v3553_v36, %v2449_v63  ;;  %v2374_v10 = vsel %vm2372_vm12, %v2373_v0, %v2371_v37 }
 0x8c0   : > { %v2319_v60 = vpop.xlane.xlu2 %2318  ;;  %3554 = vrcp.f32 %v2374_v10  ;;  %v2473_v3 = vand.u32 2147483648, %v2374_v10  ;;  %v2471_v30 = vand.u32 2147483647, %v2374_v10  ;;  %vm2467_vm3 = vweird.f32 %v2374_v10 }
 0x8c1   : > { %v2337_v34 = vmul.f32 %v2319_v60, %v3750_v20  ;;  %v2451_v55 = vadd.f32 %v3553_v36, %v2450_v62 }
 0x8c2   : > { %v2474_v56 = vor.u32 1.1754944e-38, %v2473_v3  ;;  %vm2472_vm5 = vcmp.eq.f32.partialorder %v2471_v30, 8.507059e+37 }
 0x8c3   : > { %v2345_v41 = vadd.f32 1e-05, %v2337_v34  ;;  %v2455_v7 = vsel %vm2454_vm15, %v3553_v36, %v2451_v55 }
 0x8c4   : > { %v2460_v4 = vsel %vm2457_vm1, %v2459_v47, %v2455_v7 }
 0x8c5   : > { %3556 = vrsqrt.f32 %v2345_v41  ;;  %v2461_v29 = vmul.f32 %v2460_v4, %v4858_v24  ;;  %vm2382_vm6 = vcmp.eq.f32.partialorder %v2345_v41, inf  ;;  %v2385_v0 = vand.u32 2147483648, %v2345_v41 }
 0x8c6   : > { %v3555_v2 = vpop.eup %3554  ;;  %vm2384_vm7 = vcmp.eq.f32.partialorder %v2345_v41, 0.0 }
 0x8c7   : > { %v2570_v19 = vmul.f32 %v4935_v27, %v2461_v29  ;;  %v2463_v6 = vmul.f32 %v3555_v2, %v2374_v10  ;;  %vm2468_vm2 = vweird.f32 %v3555_v2 }
 0x8c8   : > { %v2322_v15 = vpop.xlane.xlu0 %2321  ;;  %vm2469_vm4 = vmor %vm2467_vm3, %vm2468_vm2 }
 0x8c9   : > { %v2338_v11 = vmul.f32 %v2322_v15, %v3750_v20  ;;  %v2581_v38 = vadd.f32 %v4941_v22, %v2570_v19  ;;  %v2464_v44 = vsub.f32 1.0, %v2463_v6 }
 0x8cb   : > { %v3557_v61 = vpop.eup %3556  ;;  %v2346_v45 = vadd.f32 1e-05, %v2338_v11  ;;  %3259 = vmatmul.msk.f32.vlgmr.msrb.gmra.mxu0 %vm478_vm0, %v2581_v38  ;;  %v2465_v24 = vmul.f32 %v3555_v2, %v2464_v44 }
 0x8cc   : > { %v2376_v31 = vmul.f32 %v3557_v61, %v2345_v41 }
 0x8cd   : > { %3558 = vrsqrt.f32 %v2346_v45  ;;  %v2466_v8 = vadd.f32 %v3555_v2, %v2465_v24  ;;  %vm2394_vm8 = vcmp.eq.f32.partialorder %v2346_v45, inf  ;;  %v2397_v47 = vand.u32 2147483648, %v2346_v45 }
 0x8ce   : > { %v2377_v43 = vmul.f32 %v3557_v61, %v2376_v31  ;;  %vm2396_vm9 = vcmp.eq.f32.partialorder %v2346_v45, 0.0 }
 0x8cf   : > { %v2470_v50 = vsel %vm2469_vm4, %v3555_v2, %v2466_v8 }
 0x8d0   : > { %v2378_v5 = vmul.f32 0.5, %v2377_v43  ;;  %v2325_v21 = vpop.xlane.xlu1 %2324  ;;  %v2475_v33 = vsel %vm2472_vm5, %v2474_v56, %v2470_v50 }
 0x8d1   : > { %v2339_v59 = vmul.f32 %v2325_v21, %v3750_v20  ;;  %v2476_v9 = vmul.f32 %v2475_v33, %v4868_v35 }
 0x8d2   : > { %v2379_v39 = vsub.f32 1.5, %v2378_v5 }
 0x8d3   : > { %v3559_v53 = vpop.eup %3558  ;;  %v2347_v12 = vadd.f32 1e-05, %v2339_v59  ;;  %v2571_v54 = vmul.f32 %v4935_v27, %v2476_v9 }
 0x8d4   : > { %v2388_v51 = vmul.f32 %v3559_v53, %v2346_v45  ;;  %v2380_v36 = vmul.f32 %v3557_v61, %v2379_v39 }
 0x8d5   : > { %3560 = vrsqrt.f32 %v2347_v12  ;;  %v2582_v26 = vadd.f32 %v4941_v22, %v2571_v54  ;;  %vm2406_vm12 = vcmp.eq.f32.partialorder %v2347_v12, inf  ;;  %vm2408_vm14 = vcmp.eq.f32.partialorder %v2347_v12, 0.0 }
 0x8d6   : > { %v2389_v57 = vmul.f32 %v3559_v53, %v2388_v51  ;;  %v2381_v25 = vmul.f32 %v2380_v36, %v2345_v41 }
 0x8d7   : > { %3260 = vmatmul.msk.f32.vlgmr.msra.gmra.mxu1 %vm478_vm0, %v2582_v26 }
 0x8d8   : > { %v2390_v63 = vmul.f32 0.5, %v2389_v57  ;;  %v2383_v37 = vsel %vm2382_vm6, %v2345_v41, %v2381_v25 }
 0x8d9   : > { %v2386_v35 = vsel %vm2384_vm7, %v2385_v0, %v2383_v37 }
 0x8da   : > { %v2391_v17 = vsub.f32 1.5, %v2390_v63  ;;  %3562 = vrcp.f32 %v2386_v35  ;;  %v2488_v38 = vand.u32 2147483648, %v2386_v35  ;;  %v2486_v61 = vand.u32 2147483647, %v2386_v35 }
 0x8db   : > { %v3561_v62 = vpop.eup %3560  ;;  %vm2482_vm11 = vweird.f32 %v2386_v35 }
 0x8dc   : > { %v2400_v13 = vmul.f32 %v3561_v62, %v2347_v12  ;;  %v2392_v10 = vmul.f32 %v3559_v53, %v2391_v17  ;;  %v2489_v56 = vor.u32 1.1754944e-38, %v2488_v38  ;;  %vm2487_vm15 = vcmp.eq.f32.partialorder %v2486_v61, 8.507059e+37 }
 0x8de   : > { %v2401_v60 = vmul.f32 %v3561_v62, %v2400_v13  ;;  %v2393_v34 = vmul.f32 %v2392_v10, %v2346_v45 }
 0x8df   : > { %v2328_v55 = vpop.xlane.xlu2 %2327 }
 0x8e0   : > { %v3563_v7 = vpop.eup %3562  ;;  %v2402_v4 = vmul.f32 0.5, %v2401_v60  ;;  %v2340_v29 = vmul.f32 %v2328_v55, %v3750_v20  ;;  %v2395_v2 = vsel %vm2394_vm8, %v2346_v45, %v2393_v34  ;;  %v2409_v45 = vand.u32 2147483648, %v2347_v12 }
 0x8e1   : > { %v2478_v19 = vmul.f32 %v3563_v7, %v2386_v35  ;;  %v2398_v6 = vsel %vm2396_vm9, %v2397_v47, %v2395_v2  ;;  %vm2483_vm10 = vweird.f32 %v3563_v7 }
 0x8e2   : > { %v2403_v41 = vsub.f32 1.5, %v2402_v4  ;;  %v4953_v15 = vadd.f32 1e-05, %v2340_v29  ;;  %3564 = vrcp.f32 %v2398_v6  ;;  %vm2484_vm13 = vmor %vm2482_vm11, %vm2483_vm10  ;;  %v2501_v36 = vand.u32 2147483647, %v2398_v6 }
 0x8e3   : > { %v2479_v11 = vsub.f32 1.0, %v2478_v19  ;;  %v2503_v26 = vand.u32 2147483648, %v2398_v6  ;;  %vm2497_vm2 = vweird.f32 %v2398_v6 }
 0x8e4   : > { %3566 = vrsqrt.f32 %v4953_v15  ;;  %v2404_v44 = vmul.f32 %v3561_v62, %v2403_v41  ;;  %vm2502_vm4 = vcmp.eq.f32.partialorder %v2501_v36, 8.507059e+37  ;;  %vm2418_vm7 = vcmp.eq.f32.partialorder %v4953_v15, inf }
 0x8e5   : > { %v2480_v3 = vmul.f32 %v3563_v7, %v2479_v11  ;;  %v2504_v17 = vor.u32 1.1754944e-38, %v2503_v26  ;;  %vm2420_vm8 = vcmp.eq.f32.partialorder %v4953_v15, 0.0  ;;  %v2421_v11 = vand.u32 2147483648, %v4953_v15 }
 0x8e6   : > { %v2405_v24 = vmul.f32 %v2404_v44, %v2347_v12 }
 0x8e7   : > { %v2331_v30 = vpop.xlane.xlu0 %2330  ;;  %v2481_v31 = vadd.f32 %v3563_v7, %v2480_v3 }
 0x8e8   : > { %v3565_v8 = vpop.eup %3564  ;;  %v2341_v43 = vmul.f32 %v2331_v30, %v3750_v20  ;;  %v2407_v50 = vsel %vm2406_vm12, %v2347_v12, %v2405_v24 }
 0x8e9   : > { %v2485_v5 = vsel %vm2484_vm13, %v3563_v7, %v2481_v31  ;;  %v2493_v21 = vmul.f32 %v3565_v8, %v2398_v6  ;;  %v2410_v33 = vsel %vm2408_vm14, %v2409_v45, %v2407_v50  ;;  %vm2498_vm1 = vweird.f32 %v3565_v8 }
 0x8ea   : > { %v3567_v59 = vpop.eup %3566  ;;  %v4957_v9 = vadd.f32 1e-05, %v2341_v43  ;;  %v2490_v39 = vsel %vm2487_vm15, %v2489_v56, %v2485_v5  ;;  %3568 = vrcp.f32 %v2410_v33  ;;  %vm2499_vm3 = vmor %vm2497_vm2, %vm2498_vm1  ;;  %v2516_v4 = vand.u32 2147483647, %v2410_v33 }
 0x8eb   : > { %v2412_v53 = vmul.f32 %v3567_v59, %v4953_v15  ;;  %v2491_v54 = vmul.f32 %v2490_v39, %v4877_v52  ;;  %v2494_v51 = vsub.f32 1.0, %v2493_v21  ;;  %v2518_v29 = vand.u32 2147483648, %v2410_v33 }
 0x8ec   : > { %3570 = vrsqrt.f32 %v4957_v9  ;;  %vm2512_vm6 = vweird.f32 %v2410_v33  ;;  %vm2517_vm10 = vcmp.eq.f32.partialorder %v2516_v4, 8.507059e+37  ;;  %vm2430_vm11 = vcmp.eq.f32.partialorder %v4957_v9, inf }
 0x8ed   : > { %v2413_v57 = vmul.f32 %v3567_v59, %v2412_v53  ;;  %v2572_v12 = vmul.f32 %v4935_v27, %v2491_v54  ;;  %v2495_v25 = vmul.f32 %v3565_v8, %v2494_v51  ;;  %v2519_v61 = vor.u32 1.1754944e-38, %v2518_v29 }
 0x8ee   : > { %vm2432_vm12 = vcmp.eq.f32.partialorder %v4957_v9, 0.0 }
 0x8ef   : > { %v2414_v0 = vmul.f32 0.5, %v2413_v57  ;;  %v2583_v63 = vadd.f32 %v4941_v22, %v2572_v12  ;;  %v2496_v37 = vadd.f32 %v3565_v8, %v2495_v25 }
 0x8f0   : > { %v3569_v35 = vpop.eup %3568 }
 0x8f1   : > { %v2415_v62 = vsub.f32 1.5, %v2414_v0  ;;  %3261 = vmatmul.msk.f32.gmra.mxu1 %vm478_vm0, %v2583_v63  ;;  %v2500_v52 = vsel %vm2499_vm3, %v3565_v8, %v2496_v37  ;;  %v2508_v13 = vmul.f32 %v3569_v35, %v2410_v33  ;;  %vm2513_vm5 = vweird.f32 %v3569_v35 }
 0x8f2   : > { %v3571_v10 = vpop.eup %3570  ;;  %v2505_v60 = vsel %vm2502_vm4, %v2504_v17, %v2500_v52  ;;  %vm2514_vm9 = vmor %vm2512_vm6, %vm2513_vm5 }
 0x8f3   : > { %v2424_v34 = vmul.f32 %v3571_v10, %v4957_v9  ;;  %v2506_v55 = vmul.f32 %v2505_v60, %v4884_v42  ;;  %v2509_v47 = vsub.f32 1.0, %v2508_v13  ;;  %v2416_v7 = vmul.f32 %v3567_v59, %v2415_v62 }
 0x8f5   : > { %v2425_v2 = vmul.f32 %v3571_v10, %v2424_v34  ;;  %v2573_v19 = vmul.f32 %v4935_v27, %v2506_v55  ;;  %v2510_v6 = vmul.f32 %v3569_v35, %v2509_v47  ;;  %v2417_v41 = vmul.f32 %v2416_v7, %v4953_v15 }
 0x8f7   : > { %v2426_v38 = vmul.f32 0.5, %v2425_v2  ;;  %v2584_v42 = vadd.f32 %v4941_v22, %v2573_v19  ;;  %v2511_v44 = vadd.f32 %v3569_v35, %v2510_v6  ;;  %v2419_v3 = vsel %vm2418_vm7, %v4953_v15, %v2417_v41 }
 0x8f8   : > { %v2422_v24 = vsel %vm2420_vm8, %v2421_v11, %v2419_v3  ;;  %v2433_v15 = vand.u32 2147483648, %v4957_v9 }
 0x8f9   : > { %v2427_v30 = vsub.f32 1.5, %v2426_v38  ;;  %3262 = vmatmul.msk.f32.gmra.mxu1 %vm478_vm0, %v2584_v42  ;;  %v2515_v31 = vsel %vm2514_vm9, %v3569_v35, %v2511_v44  ;;  %3572 = vrcp.f32 %v2422_v24  ;;  %v2533_v53 = vand.u32 2147483648, %v2422_v24 }
 0x8fa   : > { %v2520_v45 = vsel %vm2517_vm10, %v2519_v61, %v2515_v31  ;;  %v2531_v51 = vand.u32 2147483647, %v2422_v24  ;;  %vm2527_vm14 = vweird.f32 %v2422_v24 }
 0x8fb   : > { %v2521_v8 = vmul.f32 %v2520_v45, %v4891_v58  ;;  %v2428_v43 = vmul.f32 %v3571_v10, %v2427_v30  ;;  %v2534_v57 = vor.u32 1.1754944e-38, %v2533_v53  ;;  %v2996_v53 = vld [vmem:[%s5202_s12 + $0x70] sm:$0xff] }
 0x8fc   : > { %vm2532_vm1 = vcmp.eq.f32.partialorder %v2531_v51, 8.507059e+37  ;;  %v2995_v51 = vld [vmem:[%s5202_s12 + $0x68] sm:$0xff] }
 0x8fd   : > { %v2574_v56 = vmul.f32 %v4935_v27, %v2521_v8  ;;  %v2429_v50 = vmul.f32 %v2428_v43, %v4957_v9  ;;  %v4997_v43 = vld [vmem:[%s5201_s11] ss:$0 sm:$0xff] }
 0x8ff   : > { %v3573_v5 = vpop.eup %3572  ;;  %v2585_v21 = vadd.f32 %v4941_v22, %v2574_v56  ;;  %v2431_v33 = vsel %vm2430_vm11, %v4957_v9, %v2429_v50 }
 0x900   : > { %v2523_v59 = vmul.f32 %v3573_v5, %v2422_v24  ;;  %v2434_v39 = vsel %vm2432_vm12, %v2433_v15, %v2431_v33  ;;  %vm2528_vm13 = vweird.f32 %v3573_v5 }
 0x901   : > { %3263 = vmatmul.msk.f32.gmra.mxu1 %vm478_vm0, %v2585_v21  ;;  %3574 = vrcp.f32 %v2434_v39  ;;  %vm2529_vm15 = vmor %vm2527_vm14, %vm2528_vm13  ;;  %v2548_v37 = vand.u32 2147483648, %v2434_v39  ;;  %v2546_v62 = vand.u32 2147483647, %v2434_v39  ;;  %vm2542_vm3 = vweird.f32 %v2434_v39 }
 0x902   : > { %v2524_v58 = vsub.f32 1.0, %v2523_v59  ;;  %v2997_v59 = vld [vmem:[%s5202_s12 + $0x78] sm:$0xff] }
 0x903   : > { %v2549_v10 = vor.u32 1.1754944e-38, %v2548_v37  ;;  %vm2547_vm5 = vcmp.eq.f32.partialorder %v2546_v62, 8.507059e+37  ;;  %3002 = vmatpush.msra.mxu3 %v2997_v59 }
 0x904   : > { %v2525_v54 = vmul.f32 %v3573_v5, %v2524_v58 }
 0x905   : > { %3003 = vmatpush.msra.mxu3 %v2996_v53 }
 0x906   : > { %v2526_v36 = vadd.f32 %v3573_v5, %v2525_v54 }
 0x907   : > { %v3575_v26 = vpop.eup %3574  ;;  %3004 = vmatpush.msra.mxu3 %v2995_v51 }
 0x908   : > { %v2530_v12 = vsel %vm2529_vm15, %v3573_v5, %v2526_v36  ;;  %v2538_v25 = vmul.f32 %v3575_v26, %v2434_v39  ;;  %vm2543_vm2 = vweird.f32 %v3575_v26  ;;  %v2994_v36 = vld [vmem:[%s5202_s12 + $0x60] sm:$0xff] }
 0x909   : > { %v2535_v0 = vsel %vm2532_vm1, %v2534_v57, %v2530_v12  ;;  %vm2544_vm4 = vmor %vm2542_vm3, %vm2543_vm2  ;;  %3005 = vmatpush.msra.mxu3 %v2994_v36  ;;  %v2992_v57 = vld [vmem:[%s5202_s12 + $0x50] sm:$0xff] }
 0x90a   : > { %v2536_v9 = vmul.f32 %v2535_v0, %v4898_v28  ;;  %v2539_v63 = vsub.f32 1.0, %v2538_v25  ;;  %v2991_v0 = vld [vmem:[%s5202_s12 + $0x48] sm:$0xff] }
 0x90c   : > { %v2575_v35 = vmul.f32 %v4935_v27, %v2536_v9  ;;  %v2540_v17 = vmul.f32 %v3575_v26, %v2539_v63  ;;  %v2990_v63 = vld [vmem:[%s5202_s12 + $0x40] sm:$0xff] }
 0x90e   : > { %v2586_v52 = vadd.f32 %v4941_v22, %v2575_v35  ;;  %v2541_v13 = vadd.f32 %v3575_v26, %v2540_v17  ;;  %v2989_v17 = vld [vmem:[%s5202_s12 + $0x38] sm:$0xff] }
 0x910   : > { %3264 = vmatmul.msk.f32.gmra.mxu1 %vm478_vm0, %v2586_v52  ;;  %v2545_v60 = vsel %vm2544_vm4, %v3575_v26, %v2541_v13  ;;  %v2988_v13 = vld [vmem:[%s5202_s12 + $0x30] sm:$0xff] }
 0x911   : > { %v2550_v34 = vsel %vm2547_vm5, %v2549_v10, %v2545_v60 }
 0x912   : > { %v2551_v28 = vmul.f32 %v2550_v34, %v4905_v40 }
 0x914   : > { %v2576_v55 = vmul.f32 %v4935_v27, %v2551_v28  ;;  %v2987_v28 = vld [vmem:[%s5202_s12 + $0x28] sm:$0xff] }
 0x916   : > { %v2587_v47 = vadd.f32 %v4941_v22, %v2576_v55 }
 0x918   : > { %3265 = vmatmul.msk.f32.gmra.mxu1 %vm478_vm0, %v2587_v47 }
 0x91d   : > { %v2334_v7 = vpop.xlane.xlu1 %2333 }
 0x91e   : > { %v2342_v4 = vmul.f32 %v2334_v7, %v3750_v20  ;;  %v2986_v7 = vld [vmem:[%s5202_s12 + $0x20] sm:$0xff] }
 0x920   : > { %v2350_v29 = vadd.f32 1e-05, %v2342_v4 }
 0x922   : > { %3576 = vrsqrt.f32 %v2350_v29  ;;  %vm2442_vm6 = vcmp.eq.f32.partialorder %v2350_v29, inf  ;;  %v2445_v40 = vand.u32 2147483648, %v2350_v29  ;;  %vm2444_vm7 = vcmp.eq.f32.partialorder %v2350_v29, 0.0 }
 0x928   : > { %v3577_v2 = vpop.eup %3576 }
 0x929   : > { %v2436_v19 = vmul.f32 %v3577_v2, %v2350_v29 }
 0x92b   : > { %v2437_v6 = vmul.f32 %v3577_v2, %v2436_v19 }
 0x92d   : > { %v2438_v41 = vmul.f32 0.5, %v2437_v6 }
 0x92f   : > { %v2439_v11 = vsub.f32 1.5, %v2438_v41 }
 0x931   : > { %v2440_v38 = vmul.f32 %v3577_v2, %v2439_v11  ;;  %v2985_v2 = vld [vmem:[%s5202_s12 + $0x18] sm:$0xff]  ;;  %v2984_v11 = vld [vmem:[%s5202_s12 + $0x10] sm:$0xff] }
 0x933   : > { %v2441_v42 = vmul.f32 %v2440_v38, %v2350_v29 }
 0x935   : > { %v2443_v44 = vsel %vm2442_vm6, %v2350_v29, %v2441_v42 }
 0x936   : > { %v2446_v3 = vsel %vm2444_vm7, %v2445_v40, %v2443_v44  ;;  %v2983_v40 = vld [vmem:[%s5202_s12 + $0x8] sm:$0xff] }
 0x937   : > { %3578 = vrcp.f32 %v2446_v3  ;;  %v2563_v31 = vand.u32 2147483648, %v2446_v3  ;;  %v2561_v45 = vand.u32 2147483647, %v2446_v3  ;;  %vm2557_vm9 = vweird.f32 %v2446_v3 }
 0x939   : > { %v2564_v56 = vor.u32 1.1754944e-38, %v2563_v31  ;;  %vm2562_vm11 = vcmp.eq.f32.partialorder %v2561_v45, 8.507059e+37 }
 0x93d   : > { %v3579_v61 = vpop.eup %3578 }
 0x93e   : > { %v2553_v24 = vmul.f32 %v3579_v61, %v2446_v3  ;;  %vm2558_vm8 = vweird.f32 %v3579_v61 }
 0x93f   : > { %vm2559_vm10 = vmor %vm2557_vm9, %vm2558_vm8 }
 0x940   : > { %v2554_v30 = vsub.f32 1.0, %v2553_v24  ;;  %v2982_v24 = vld [vmem:[%s5202_s12] sm:$0xff] }
 0x942   : > { %v2555_v20 = vmul.f32 %v3579_v61, %v2554_v30 }
 0x944   : > { %v2556_v8 = vadd.f32 %v3579_v61, %v2555_v20 }
 0x946   : > { %v2560_v50 = vsel %vm2559_vm10, %v3579_v61, %v2556_v8 }
 0x947   : > { %v2565_v15 = vsel %vm2562_vm11, %v2564_v56, %v2560_v50 }
 0x948   : > { %v2638_v5 = vpop.f32.mrf.mxu0  ;;  %v2566_v21 = vmul.f32 %v2565_v15, %v4913_v32 }
 0x949   : > { %v5001_v33 = vadd.f32 %v4997_v43, %v2638_v5 }
 0x94a   : > { %v2577_v39 = vmul.f32 %v4935_v27, %v2566_v21 }
 0x94b   : > { %v5008_v58 = vmul.f32 0.70710677, %v5001_v33 }
 0x94c   : > { %v2588_v54 = vadd.f32 %v4941_v22, %v2577_v39  ;;  %v2993_v22 = vld [vmem:[%s5202_s12 + $0x58] sm:$0xff] }
 0x94d   : > { %v2678_v32 = vand.u32 2147483647, %v5008_v58  ;;  %3006 = vmatpush.msra.mxu3 %v2993_v22  ;;  %vm2942_vm5 = vcmp.ge.f32.partialorder %v5008_v58, 0.0 }
 0x94e   : > { %3266 = vmatmul.msk.f32.gmra.mxu1 %vm478_vm0, %v2588_v54 }
 0x94f   : > { %v2686_v27 = vmul.f32 0.3275911, %v2678_v32  ;;  %3007 = vmatpush.msra.mxu3 %v2992_v57  ;;  %v2894_v41 = vmul.f32 %v2678_v32, %v2678_v32 }
 0x951   : > { %v2694_v26 = vadd.f32 1.0, %v2686_v27  ;;  %3008 = vmatpush.msra.mxu3 %v2991_v0  ;;  %v2902_v61 = vsub.f32 0.0, %v2894_v41 }
 0x953   : > { %3580 = vrcp.f32 %v2694_v26  ;;  %3009 = vmatpush.msra.mxu3 %v2990_v63  ;;  %v2713_v60 = vand.u32 2147483648, %v2694_v26  ;;  %v2711_v47 = vand.u32 2147483647, %v2694_v26  ;;  %vm2707_vm13 = vweird.f32 %v2694_v26 }
 0x954   : > { %v2641_v12 = vpop.f32.mrf.mxu1  ;;  %v2910_v50 = vmul.f32 1.442695, %v2902_v61 }
 0x955   : > { %v5029_v25 = vadd.f32 %v4997_v43, %v2641_v12  ;;  %3010 = vmatpush.msra.mxu3 %v2989_v17  ;;  %v2714_v29 = vor.u32 1.1754944e-38, %v2713_v60  ;;  %vm2712_vm15 = vcmp.eq.f32.partialorder %v2711_v47, 8.507059e+37 }
 0x957   : > { %v5035_v9 = vmul.f32 0.70710677, %v5029_v25  ;;  %3011 = vmatpush.msra.mxu3 %v2988_v13 }
 0x959   : > { %v3581_v37 = vpop.eup %3580  ;;  %v2679_v35 = vand.u32 2147483647, %v5035_v9  ;;  %3012 = vmatpush.msra.mxu3 %v2987_v28  ;;  %vm2943_vm9 = vcmp.ge.f32.partialorder %v5035_v9, 0.0 }
 0x95a   : > { %v2703_v62 = vmul.f32 %v3581_v37, %v2694_v26  ;;  %vm2708_vm12 = vweird.f32 %v3581_v37 }
 0x95b   : > { %v2687_v52 = vmul.f32 0.3275911, %v2679_v35  ;;  %3013 = vmatpush.msra.mxu3 %v2986_v7  ;;  %vm2709_vm14 = vmor %vm2707_vm13, %vm2708_vm12  ;;  %v2895_v36 = vmul.f32 %v2679_v35, %v2679_v35 }
 0x95c   : > { %v2704_v10 = vsub.f32 1.0, %v2703_v62 }
 0x95d   : > { %v2695_v34 = vadd.f32 1.0, %v2687_v52  ;;  %3014 = vmatpush.msra.mxu3 %v2985_v2  ;;  %v2903_v17 = vsub.f32 0.0, %v2895_v36 }
 0x95e   : > { %v2705_v55 = vmul.f32 %v3581_v37, %v2704_v10 }
 0x95f   : > { %3582 = vrcp.f32 %v2695_v34  ;;  %3015 = vmatpush.msra.mxu3 %v2984_v11  ;;  %v2728_v20 = vand.u32 2147483648, %v2695_v34  ;;  %v2726_v56 = vand.u32 2147483647, %v2695_v34  ;;  %vm2722_vm2 = vweird.f32 %v2695_v34 }
 0x960   : > { %v2706_v4 = vadd.f32 %v3581_v37, %v2705_v55  ;;  %3584 = vpow2.f32 %v2910_v50  ;;  %v2912_v55 = vmul.f32 1.442695, %v2903_v17 }
 0x961   : > { %3016 = vmatpush.msra.mxu3 %v2983_v40  ;;  %v2729_v21 = vor.u32 1.1754944e-38, %v2728_v20  ;;  %vm2727_vm4 = vcmp.eq.f32.partialorder %v2726_v56, 8.507059e+37 }
 0x962   : > { %v2710_v19 = vsel %vm2709_vm14, %v3581_v37, %v2706_v4 }
 0x963   : > { %v2715_v6 = vsel %vm2712_vm15, %v2714_v29, %v2710_v19  ;;  %3017 = vmatpush.msra.mxu3 %v2982_v24  ;;  %v2662_v19 = vmul.f32 0.5, %v5001_v33 }
 0x964   : > { %v2822_v38 = vmul.f32 1.0614054, %v2715_v6 }
 0x965   : > { %v3583_v42 = vpop.eup %3582 }
 0x966   : > { %v2830_v44 = vadd.f32 -1.4531521, %v2822_v38  ;;  %v2718_v3 = vmul.f32 %v3583_v42, %v2695_v34  ;;  %vm2723_vm1 = vweird.f32 %v3583_v42  ;;  %v3585_v37 = vpop.eup %3584 }
 0x967   : > { %vm2724_vm3 = vmor %vm2722_vm2, %vm2723_vm1 }
 0x968   : > { %v2838_v30 = vmul.f32 %v2830_v44, %v2715_v6  ;;  %v2719_v31 = vsub.f32 1.0, %v2718_v3 }
 0x96a   : > { %v2846_v45 = vadd.f32 1.4214138, %v2838_v30  ;;  %v2720_v8 = vmul.f32 %v3583_v42, %v2719_v31 }
 0x96c   : > { %v2854_v15 = vmul.f32 %v2846_v45, %v2715_v6  ;;  %v2721_v5 = vadd.f32 %v3583_v42, %v2720_v8 }
 0x96e   : > { %v2862_v59 = vadd.f32 -0.28449672, %v2854_v15  ;;  %v2644_v39 = vpop.f32.mrf.mxu1  ;;  %v2725_v53 = vsel %vm2724_vm3, %v3583_v42, %v2721_v5 }
 0x96f   : > { %v5066_v54 = vadd.f32 %v4997_v43, %v2644_v39  ;;  %v2730_v32 = vsel %vm2727_vm4, %v2729_v21, %v2725_v53 }
 0x970   : > { %v2870_v51 = vmul.f32 %v2862_v59, %v2715_v6  ;;  %v2823_v27 = vmul.f32 1.0614054, %v2730_v32 }
 0x971   : > { %v5069_v26 = vmul.f32 0.70710677, %v5066_v54 }
 0x972   : > { %v2878_v22 = vadd.f32 0.2548296, %v2870_v51  ;;  %v2831_v57 = vadd.f32 -1.4531521, %v2823_v27 }
 0x973   : > { %v5072_v12 = vand.u32 2147483647, %v5069_v26 }
 0x974   : > { %v2886_v0 = vmul.f32 %v2878_v22, %v2715_v6  ;;  %v2839_v63 = vmul.f32 %v2831_v57, %v2730_v32  ;;  %v2663_v22 = vmul.f32 0.5, %v5029_v25 }
 0x975   : > { %v2688_v62 = vmul.f32 0.3275911, %v5072_v12 }
 0x976   : > { %v2926_v52 = vmul.f32 %v3585_v37, %v2886_v0  ;;  %v2647_v13 = vpop.f32.mrf.mxu1  ;;  %v2847_v10 = vadd.f32 1.4214138, %v2839_v63  ;;  %v2896_v37 = vmul.f32 %v5072_v12, %v5072_v12 }
 0x977   : > { %v2696_v60 = vadd.f32 1.0, %v2688_v62  ;;  %v5076_v35 = vadd.f32 %v4997_v43, %v2647_v13 }
 0x978   : > { %v2934_v34 = vsub.f32 1.0, %v2926_v52  ;;  %v2855_v28 = vmul.f32 %v2847_v10, %v2730_v32 }
 0x979   : > { %3586 = vrcp.f32 %v2696_v60  ;;  %v5079_v7 = vmul.f32 0.70710677, %v5076_v35  ;;  %v2743_v56 = vand.u32 2147483648, %v2696_v60  ;;  %vm2737_vm7 = vweird.f32 %v2696_v60 }
 0x97a   : > { %v2950_v47 = vsub.f32 0.0, %v2934_v34  ;;  %v2863_v4 = vadd.f32 -0.28449672, %v2855_v28  ;;  %3588 = vpow2.f32 %v2912_v55  ;;  %v2741_v15 = vand.u32 2147483647, %v2696_v60 }
 0x97b   : > { %v2681_v2 = vand.u32 2147483647, %v5079_v7  ;;  %v2744_v51 = vor.u32 1.1754944e-38, %v2743_v56  ;;  %v2904_v55 = vsub.f32 0.0, %v2896_v37 }
 0x97c   : > { %v2958_v29 = vsel %vm2942_vm5, %v2934_v34, %v2950_v47  ;;  %v2871_v41 = vmul.f32 %v2863_v4, %v2730_v32  ;;  %vm2742_vm10 = vcmp.eq.f32.partialorder %v2741_v15, 8.507059e+37  ;;  %vm2944_vm5 = vcmp.ge.f32.partialorder %v5069_v26, 0.0 }
 0x97d   : > { %v2966_v6 = vadd.f32 1.0, %v2958_v29  ;;  %v2689_v11 = vmul.f32 0.3275911, %v2681_v2  ;;  %v2897_v29 = vmul.f32 %v2681_v2, %v2681_v2 }
 0x97e   : > { %v2650_v38 = vpop.f32.mrf.mxu1  ;;  %v2879_v3 = vadd.f32 0.2548296, %v2871_v41 }
 0x97f   : > { %v3587_v42 = vpop.eup %3586  ;;  %v2974_v40 = vmul.f32 %v2966_v6, %v2662_v19  ;;  %v5085_v44 = vadd.f32 %v4997_v43, %v2650_v38  ;;  %v2697_v24 = vadd.f32 1.0, %v2689_v11 }
 0x980   : > { %v2733_v61 = vmul.f32 %v3587_v42, %v2696_v60  ;;  %v2887_v30 = vmul.f32 %v2879_v3, %v2730_v32  ;;  %v3589_v33 = vpop.eup %3588  ;;  %vm2738_vm6 = vweird.f32 %v3587_v42  ;;  %v2914_v3 = vmul.f32 1.442695, %v2904_v55 }
 0x981   : > { %v5088_v58 = vmul.f32 0.70710677, %v5085_v44  ;;  %3018 = vmatmul.f32.vlgmr.msra.gmra.mxu3 %v2974_v40  ;;  %3590 = vrcp.f32 %v2697_v24  ;;  %vm2739_vm8 = vmor %vm2737_vm7, %vm2738_vm6  ;;  %v2758_v17 = vand.u32 2147483648, %v2697_v24  ;;  %v2756_v13 = vand.u32 2147483647, %v2697_v24 }
 0x982   : > { %v2734_v31 = vsub.f32 1.0, %v2733_v61  ;;  %v2927_v8 = vmul.f32 %v3589_v33, %v2887_v30  ;;  %vm2752_vm12 = vweird.f32 %v2697_v24  ;;  %v2905_v30 = vsub.f32 0.0, %v2897_v29 }
 0x983   : > { %v5091_v20 = vand.u32 2147483647, %v5088_v58  ;;  %v2759_v47 = vor.u32 1.1754944e-38, %v2758_v17  ;;  %vm2757_vm14 = vcmp.eq.f32.partialorder %v2756_v13, 8.507059e+37 }
 0x984   : > { %v2735_v45 = vmul.f32 %v3587_v42, %v2734_v31  ;;  %v2935_v5 = vsub.f32 1.0, %v2927_v8 }
 0x985   : > { %v2690_v50 = vmul.f32 0.3275911, %v5091_v20 }
 0x986   : > { %v2736_v21 = vadd.f32 %v3587_v42, %v2735_v45  ;;  %v2951_v53 = vsub.f32 0.0, %v2935_v5 }
 0x987   : > { %v5094_v59 = vadd.f32 1.0, %v2690_v50  ;;  %v3591_v39 = vpop.eup %3590 }
 0x988   : > { %v2740_v32 = vsel %vm2739_vm8, %v3587_v42, %v2736_v21  ;;  %v2748_v27 = vmul.f32 %v3591_v39, %v2697_v24  ;;  %v2959_v36 = vsel %vm2943_vm9, %v2935_v5, %v2951_v53  ;;  %vm2753_vm11 = vweird.f32 %v3591_v39 }
 0x989   : > { %3592 = vrcp.f32 %v5094_v59  ;;  %v2967_v0 = vadd.f32 1.0, %v2959_v36  ;;  %v2745_v63 = vsel %vm2742_vm10, %v2744_v51, %v2740_v32  ;;  %vm2754_vm13 = vmor %vm2752_vm12, %vm2753_vm11  ;;  %v2773_v31 = vand.u32 2147483648, %v5094_v59 }
 0x98a   : > { %v2749_v57 = vsub.f32 1.0, %v2748_v27  ;;  %v2824_v62 = vmul.f32 1.0614054, %v2745_v63  ;;  %v2771_v15 = vand.u32 2147483647, %v5094_v59  ;;  %vm2767_vm1 = vweird.f32 %v5094_v59 }
 0x98b   : > { %v2975_v10 = vmul.f32 %v2967_v0, %v2663_v22  ;;  %v2916_v32 = vmul.f32 1.442695, %v2905_v30  ;;  %v2774_v51 = vor.u32 1.1754944e-38, %v2773_v31  ;;  %vm2945_vm9 = vcmp.ge.f32.partialorder %v5079_v7, 0.0 }
 0x98c   : > { %v2750_v52 = vmul.f32 %v3591_v39, %v2749_v57  ;;  %v2832_v34 = vadd.f32 -1.4531521, %v2824_v62  ;;  %vm2772_vm3 = vcmp.eq.f32.partialorder %v2771_v15, 8.507059e+37 }
 0x98d   : > { %v2653_v9 = vpop.f32.mrf.mxu1  ;;  %3021 = vmatmul.f32.gmra.mxu3 %v2975_v10 }
 0x98e   : > { %v5102_v60 = vadd.f32 %v4997_v43, %v2653_v9  ;;  %v2751_v25 = vadd.f32 %v3591_v39, %v2750_v52  ;;  %v2840_v19 = vmul.f32 %v2832_v34, %v2745_v63 }
 0x98f   : > { %v3593_v28 = vpop.eup %3592 }
 0x990   : > { %v2763_v12 = vmul.f32 %v3593_v28, %v5094_v59  ;;  %v5106_v4 = vmul.f32 0.70710677, %v5102_v60  ;;  %v2755_v6 = vsel %vm2754_vm13, %v3591_v39, %v2751_v25  ;;  %v2848_v42 = vadd.f32 1.4214138, %v2840_v19 }
 0x991   : > { %v2760_v38 = vsel %vm2757_vm14, %v2759_v47, %v2755_v6  ;;  %vm2768_vm15 = vweird.f32 %v3593_v28  ;;  %v2898_v59 = vmul.f32 %v5091_v20, %v5091_v20  ;;  %vm2946_vm14 = vcmp.ge.f32.partialorder %v5088_v58, 0.0 }
 0x992   : > { %v2764_v41 = vsub.f32 1.0, %v2763_v12  ;;  %v5109_v11 = vand.u32 2147483647, %v5106_v4  ;;  %v2825_v40 = vmul.f32 1.0614054, %v2760_v38  ;;  %v2856_v45 = vmul.f32 %v2848_v42, %v2745_v63  ;;  %vm2769_vm2 = vmor %vm2767_vm1, %vm2768_vm15 }
 0x993   : > { %v2906_v12 = vsub.f32 0.0, %v2898_v59  ;;  %vm2947_vm15 = vcmp.ge.f32.partialorder %v5106_v4, 0.0 }
 0x994   : > { %v2765_v61 = vmul.f32 %v3593_v28, %v2764_v41  ;;  %v2691_v24 = vmul.f32 0.3275911, %v5109_v11  ;;  %v2833_v2 = vadd.f32 -1.4531521, %v2825_v40  ;;  %v2864_v5 = vadd.f32 -0.28449672, %v2856_v45 }
 0x995   : > { %v2656_v33 = vpop.f32.mrf.mxu1  ;;  %v2664_v40 = vmul.f32 0.5, %v5066_v54  ;;  %v2918_v30 = vmul.f32 1.442695, %v2906_v12 }
 0x996   : > { %v5113_v8 = vadd.f32 1.0, %v2691_v24  ;;  %v5116_v56 = vadd.f32 %v4997_v43, %v2656_v33  ;;  %v2766_v50 = vadd.f32 %v3593_v28, %v2765_v61  ;;  %v2841_v21 = vmul.f32 %v2833_v2, %v2760_v38 }
 0x997   : > { %v2872_v53 = vmul.f32 %v2864_v5, %v2745_v63  ;;  %v2899_v2 = vmul.f32 %v5109_v11, %v5109_v11 }
 0x998   : > { %3594 = vrcp.f32 %v5113_v8  ;;  %v5122_v39 = vmul.f32 0.70710677, %v5116_v56  ;;  %v2849_v27 = vadd.f32 1.4214138, %v2841_v21  ;;  %v2770_v36 = vsel %vm2769_vm2, %v3593_v28, %v2766_v50 }
 0x999   : > { %3596 = vpow2.f32 %v2914_v3  ;;  %v2880_v57 = vadd.f32 0.2548296, %v2872_v53  ;;  %v5127_v37 = vsel %vm2772_vm3, %v2774_v51, %v2770_v36  ;;  %v2788_v20 = vand.u32 2147483648, %v5113_v8 }
 0x99a   : > { %v5125_v22 = vand.u32 2147483647, %v5122_v39  ;;  %v2857_v0 = vmul.f32 %v2849_v27, %v2760_v38  ;;  %v2826_v52 = vmul.f32 1.0614054, %v5127_v37  ;;  %3598 = vpow2.f32 %v2916_v32 }
 0x99b   : > { %v2888_v62 = vmul.f32 %v2880_v57, %v2745_v63  ;;  %v2786_v41 = vand.u32 2147483647, %v5113_v8  ;;  %vm2782_vm6 = vweird.f32 %v5113_v8  ;;  %v2789_v45 = vor.u32 1.1754944e-38, %v2788_v20 }
 0x99c   : > { %v2692_v17 = vmul.f32 0.3275911, %v5125_v22  ;;  %v2865_v9 = vadd.f32 -0.28449672, %v2857_v0  ;;  %v2834_v47 = vadd.f32 -1.4531521, %v2826_v52 }
 0x99d   : > { %vm2787_vm8 = vcmp.eq.f32.partialorder %v2786_v41, 8.507059e+37  ;;  %v2907_v57 = vsub.f32 0.0, %v2899_v2  ;;  %v2666_v2 = vmul.f32 0.5, %v5085_v44  ;;  %v2667_v44 = vmul.f32 0.5, %v5102_v60 }
 0x99e   : > { %v3595_v13 = vpop.eup %3594  ;;  %v5134_v28 = vadd.f32 1.0, %v2692_v17  ;;  %v2873_v55 = vmul.f32 %v2865_v9, %v2760_v38  ;;  %v2842_v42 = vmul.f32 %v2834_v47, %v5127_v37  ;;  %v2665_v9 = vmul.f32 0.5, %v5076_v35 }
 0x99f   : > { %v3597_v10 = vpop.eup %3596  ;;  %v2778_v34 = vmul.f32 %v3595_v13, %v5113_v8  ;;  %vm2783_vm4 = vweird.f32 %v3595_v13  ;;  %vm2948_vm1 = vcmp.ge.f32.partialorder %v5122_v39, 0.0 }
 0x9a0   : > { %v2928_v25 = vmul.f32 %v3597_v10, %v2888_v62  ;;  %3600 = vrcp.f32 %v5134_v28  ;;  %v2881_v19 = vadd.f32 0.2548296, %v2873_v55  ;;  %v3599_v24 = vpop.eup %3598  ;;  %v2850_v31 = vadd.f32 1.4214138, %v2842_v42  ;;  %vm2784_vm7 = vmor %vm2782_vm6, %vm2783_vm4 }
 0x9a1   : > { %v2779_v29 = vsub.f32 1.0, %v2778_v34  ;;  %3602 = vpow2.f32 %v2918_v30  ;;  %v2803_v0 = vand.u32 2147483648, %v5134_v28  ;;  %v2801_v52 = vand.u32 2147483647, %v5134_v28 }
 0x9a2   : > { %v2936_v63 = vsub.f32 1.0, %v2928_v25  ;;  %v2889_v61 = vmul.f32 %v2881_v19, %v2760_v38  ;;  %v2858_v54 = vmul.f32 %v2850_v31, %v5127_v37  ;;  %vm2797_vm11 = vweird.f32 %v5134_v28 }
 0x9a3   : > { %v2780_v6 = vmul.f32 %v3595_v13, %v2779_v29  ;;  %v2804_v55 = vor.u32 1.1754944e-38, %v2803_v0  ;;  %vm2802_vm13 = vcmp.eq.f32.partialorder %v2801_v52, 8.507059e+37 }
 0x9a4   : > { %v2952_v3 = vsub.f32 0.0, %v2936_v63  ;;  %v2929_v15 = vmul.f32 %v3599_v24, %v2889_v61  ;;  %v2866_v51 = vadd.f32 -0.28449672, %v2858_v54 }
 0x9a5   : > { %v2781_v33 = vadd.f32 %v3595_v13, %v2780_v6  ;;  %v2900_v6 = vmul.f32 %v5125_v22, %v5125_v22 }
 0x9a6   : > { %v2960_v50 = vsel %vm2944_vm5, %v2936_v63, %v2952_v3  ;;  %v3601_v5 = vpop.eup %3600  ;;  %v2937_v53 = vsub.f32 1.0, %v2929_v15  ;;  %v2874_v59 = vmul.f32 %v2866_v51, %v5127_v37  ;;  %v2920_v63 = vmul.f32 1.442695, %v2907_v57 }
 0x9a7   : > { %v2968_v21 = vadd.f32 1.0, %v2960_v50  ;;  %v2785_v26 = vsel %vm2784_vm7, %v3595_v13, %v2781_v33  ;;  %v2793_v38 = vmul.f32 %v3601_v5, %v5134_v28  ;;  %vm2798_vm10 = vweird.f32 %v3601_v5  ;;  %v3603_v20 = vpop.eup %3602 }
 0x9a8   : > { %v2790_v32 = vsel %vm2787_vm8, %v2789_v45, %v2785_v26  ;;  %v2953_v11 = vsub.f32 0.0, %v2937_v53  ;;  %v2882_v34 = vadd.f32 0.2548296, %v2874_v59  ;;  %vm2799_vm12 = vmor %vm2797_vm11, %vm2798_vm10  ;;  %3604 = vpow2.f32 %v2920_v63 }
 0x9a9   : > { %v2976_v8 = vmul.f32 %v2968_v21, %v2664_v40  ;;  %v2827_v27 = vmul.f32 1.0614054, %v2790_v32  ;;  %v2794_v36 = vsub.f32 1.0, %v2793_v38  ;;  %v2908_v24 = vsub.f32 0.0, %v2900_v6 }
 0x9aa   : > { %v2961_v13 = vsel %vm2945_vm9, %v2937_v53, %v2953_v11  ;;  %v2890_v12 = vmul.f32 %v2882_v34, %v5127_v37 }
 0x9ab   : > { %3024 = vmatmul.f32.gmra.mxu3 %v2976_v8  ;;  %v2835_v17 = vadd.f32 -1.4531521, %v2827_v27  ;;  %v2795_v62 = vmul.f32 %v3601_v5, %v2794_v36  ;;  %v2969_v10 = vadd.f32 1.0, %v2961_v13  ;;  %v2922_v15 = vmul.f32 1.442695, %v2908_v24 }
 0x9ac   : > { %v2930_v35 = vmul.f32 %v3603_v20, %v2890_v12  ;;  %v2668_v13 = vmul.f32 0.5, %v5116_v56 }
 0x9ad   : > { %v2843_v7 = vmul.f32 %v2835_v17, %v2790_v32  ;;  %v2796_v25 = vadd.f32 %v3601_v5, %v2795_v62  ;;  %v2977_v47 = vmul.f32 %v2969_v10, %v2665_v9  ;;  %3606 = vpow2.f32 %v2922_v15 }
 0x9ae   : > { %v2938_v28 = vsub.f32 1.0, %v2930_v35  ;;  %v3605_v21 = vpop.eup %3604 }
 0x9af   : > { %v2851_v29 = vadd.f32 1.4214138, %v2843_v7  ;;  %v2800_v19 = vsel %vm2799_vm12, %v3601_v5, %v2796_v25 }
 0x9b0   : > { %v2805_v42 = vsel %vm2802_vm13, %v2804_v55, %v2800_v19  ;;  %v2954_v30 = vsub.f32 0.0, %v2938_v28 }
 0x9b1   : > { %v2859_v41 = vmul.f32 %v2851_v29, %v2790_v32  ;;  %v2828_v40 = vmul.f32 1.0614054, %v2805_v42 }
 0x9b2   : > { %v2962_v33 = vsel %vm2946_vm14, %v2938_v28, %v2954_v30 }
 0x9b3   : > { %3027 = vmatmul.f32.gmra.mxu3 %v2977_v47  ;;  %v2867_v3 = vadd.f32 -0.28449672, %v2859_v41  ;;  %v2836_v61 = vadd.f32 -1.4531521, %v2828_v40  ;;  %v2970_v22 = vadd.f32 1.0, %v2962_v33  ;;  %v3607_v0 = vpop.eup %3606 }
 0x9b5   : > { %v2875_v37 = vmul.f32 %v2867_v3, %v2790_v32  ;;  %v2844_v31 = vmul.f32 %v2836_v61, %v2805_v42  ;;  %v2978_v54 = vmul.f32 %v2970_v22, %v2666_v2 }
 0x9b7   : > { %v2883_v45 = vadd.f32 0.2548296, %v2875_v37  ;;  %v2852_v50 = vadd.f32 1.4214138, %v2844_v31 }
 0x9b9   : > { %v2891_v5 = vmul.f32 %v2883_v45, %v2790_v32  ;;  %v2860_v26 = vmul.f32 %v2852_v50, %v2805_v42 }
 0x9bb   : > { %v2931_v38 = vmul.f32 %v3605_v21, %v2891_v5  ;;  %3030 = vmatmul.f32.gmra.mxu3 %v2978_v54  ;;  %v2868_v53 = vadd.f32 -0.28449672, %v2860_v26  ;;  %v3385_v54 = vld [vmem:[%s5203_s13] ss:$0 sm:$0xff] }
 0x9bd   : > { %v2939_v8 = vsub.f32 1.0, %v2931_v38  ;;  %v2876_v51 = vmul.f32 %v2868_v53, %v2805_v42 }
 0x9bf   : > { %v2955_v27 = vsub.f32 0.0, %v2939_v8  ;;  %v2884_v58 = vadd.f32 0.2548296, %v2876_v51 }
 0x9c1   : > { %v2963_v36 = vsel %vm2947_vm15, %v2939_v8, %v2955_v27  ;;  %v2892_v57 = vmul.f32 %v2884_v58, %v2805_v42 }
 0x9c2   : > { %v2971_v11 = vadd.f32 1.0, %v2963_v36 }
 0x9c3   : > { %v2932_v59 = vmul.f32 %v3607_v0, %v2892_v57 }
 0x9c4   : > { %v2979_v32 = vmul.f32 %v2971_v11, %v2667_v44 }
 0x9c5   : > { %v2940_v17 = vsub.f32 1.0, %v2932_v59 }
 0x9c6   : > { %3033 = vmatmul.f32.gmra.mxu3 %v2979_v32 }
 0x9c7   : > { %v2956_v62 = vsub.f32 0.0, %v2940_v17 }
 0x9c9   : > { %v2964_v52 = vsel %vm2948_vm1, %v2940_v17, %v2956_v62 }
 0x9ca   : > { %v2972_v10 = vadd.f32 1.0, %v2964_v52 }
 0x9cb   : > { %v2659_v9 = vpop.f32.mrf.mxu1 }
 0x9cc   : > { %v2660_v4 = vadd.f32 %v4997_v43, %v2659_v9  ;;  %v2980_v34 = vmul.f32 %v2972_v10, %v2668_v13 }
 0x9ce   : > { %v2677_v7 = vmul.f32 0.70710677, %v2660_v4  ;;  %3036 = vmatmul.f32.gmra.mxu3 %v2980_v34  ;;  %v2669_v5 = vmul.f32 0.5, %v2660_v4 }
 0x9d0   : > { %v2685_v60 = vand.u32 2147483647, %v2677_v7  ;;  %vm2949_vm6 = vcmp.ge.f32.partialorder %v2677_v7, 0.0 }
 0x9d2   : > { %v2693_v25 = vmul.f32 0.3275911, %v2685_v60  ;;  %v2901_v43 = vmul.f32 %v2685_v60, %v2685_v60 }
 0x9d4   : > { %v2701_v55 = vadd.f32 1.0, %v2693_v25  ;;  %v2909_v40 = vsub.f32 0.0, %v2901_v43 }
 0x9d6   : > { %3608 = vrcp.f32 %v2701_v55  ;;  %v2818_v20 = vand.u32 2147483648, %v2701_v55  ;;  %v2816_v39 = vand.u32 2147483647, %v2701_v55  ;;  %vm2812_vm3 = vweird.f32 %v2701_v55 }
 0x9d7   : > { %v2924_v61 = vmul.f32 1.442695, %v2909_v40 }
 0x9d8   : > { %v2819_v19 = vor.u32 1.1754944e-38, %v2818_v20  ;;  %vm2817_vm5 = vcmp.eq.f32.partialorder %v2816_v39, 8.507059e+37 }
 0x9d9   : > { %3610 = vpow2.f32 %v2924_v61 }
 0x9dc   : > { %v3609_v47 = vpop.eup %3608 }
 0x9dd   : > { %v2808_v12 = vmul.f32 %v3609_v47, %v2701_v55  ;;  %vm2813_vm2 = vweird.f32 %v3609_v47 }
 0x9de   : > { %vm2814_vm4 = vmor %vm2812_vm3, %vm2813_vm2 }
 0x9df   : > { %v2809_v29 = vsub.f32 1.0, %v2808_v12  ;;  %v3611_v45 = vpop.eup %3610 }
 0x9e1   : > { %v2810_v63 = vmul.f32 %v3609_v47, %v2809_v29 }
 0x9e3   : > { %v2811_v56 = vadd.f32 %v3609_v47, %v2810_v63 }
 0x9e5   : > { %v2815_v6 = vsel %vm2814_vm4, %v3609_v47, %v2811_v56 }
 0x9e6   : > { %v2820_v35 = vsel %vm2817_vm5, %v2819_v19, %v2815_v6 }
 0x9e7   : > { %v2829_v41 = vmul.f32 1.0614054, %v2820_v35 }
 0x9e9   : > { %v2837_v42 = vadd.f32 -1.4531521, %v2829_v41 }
 0x9eb   : > { %v2845_v28 = vmul.f32 %v2837_v42, %v2820_v35 }
 0x9ed   : > { %v2853_v3 = vadd.f32 1.4214138, %v2845_v28 }
 0x9ef   : > { %v2861_v24 = vmul.f32 %v2853_v3, %v2820_v35 }
 0x9f1   : > { %v2869_v30 = vadd.f32 -0.28449672, %v2861_v24 }
 0x9f3   : > { %v2877_v37 = vmul.f32 %v2869_v30, %v2820_v35 }
 0x9f5   : > { %v2885_v31 = vadd.f32 0.2548296, %v2877_v37 }
 0x9f7   : > { %v2893_v33 = vmul.f32 %v2885_v31, %v2820_v35 }
 0x9f9   : > { %v2933_v2 = vmul.f32 %v3611_v45, %v2893_v33 }
 0x9fb   : > { %v2941_v22 = vsub.f32 1.0, %v2933_v2 }
 0x9fd   : > { %v2957_v50 = vsub.f32 0.0, %v2941_v22 }
 0x9ff   : > { %v2965_v15 = vsel %vm2949_vm6, %v2941_v22, %v2957_v50 }
 0xa00   : > { %v2973_v21 = vadd.f32 1.0, %v2965_v15 }
 0xa02   : > { %v2981_v26 = vmul.f32 %v2973_v21, %v2669_v5 }
 0xa04   : > { %v3019_v38 = vpop.f32.mrf.mxu3  ;;  %3039 = vmatmul.f32.gmra.mxu3 %v2981_v26 }
 0xa05   : > { %v3020_v53 = vadd.f32 %v3385_v54, %v3019_v38 }
 0xa07   : > { %v3043_v8 = vadd.f32 %v3020_v53, %v4822_v48 }
 0xa09   : > { %3051 = vst.msk [vmem:[%s467_s19] sm:$0xff] %vm478_vm0, %v3043_v8 }
 0xa10   : > { %v3022_v51 = vpop.f32.mrf.mxu3 }
 0xa11   : > { %v3023_v27 = vadd.f32 %v3385_v54, %v3022_v51 }
 0xa13   : > { %v3044_v58 = vadd.f32 %v3023_v27, %v4827_v18 }
 0xa15   : > { %3052 = vst.msk [vmem:[%s467_s19 + $0x8] sm:$0xff] %vm478_vm0, %v3044_v58 }
 0xa2e   : > { %v3025_v36 = vpop.f32.mrf.mxu3 }
 0xa2f   : > { %v3026_v44 = vadd.f32 %v3385_v54, %v3025_v36 }
 0xa31   : > { %v3045_v11 = vadd.f32 %v3026_v44, %v4832_v46 }
 0xa33   : > { %3053 = vst.msk [vmem:[%s467_s19 + $0x10] sm:$0xff] %vm478_vm0, %v3045_v11 }
 0xa36   : > { %v3028_v57 = vpop.f32.mrf.mxu3 }
 0xa37   : > { %v3029_v0 = vadd.f32 %v3385_v54, %v3028_v57 }
 0xa39   : > { %v3046_v32 = vadd.f32 %v3029_v0, %v4837_v1 }
 0xa3b   : > { %3054 = vst.msk [vmem:[%s467_s19 + $0x18] sm:$0xff] %vm478_vm0, %v3046_v32 }
 0xa3e   : > { %v3031_v48 = vpop.f32.mrf.mxu3 }
 0xa3f   : > { %v3032_v59 = vadd.f32 %v3385_v54, %v3031_v48 }
 0xa41   : > { %v3047_v17 = vadd.f32 %v3032_v59, %v4842_v16 }
 0xa43   : > { %3055 = vst.msk [vmem:[%s467_s19 + $0x20] sm:$0xff] %vm478_vm0, %v3047_v17 }
 0xa49   : > { %v3034_v18 = vpop.f32.mrf.mxu3 }
 0xa4a   : > { %v3035_v62 = vadd.f32 %v3385_v54, %v3034_v18 }
 0xa4c   : > { %v3048_v52 = vadd.f32 %v3035_v62, %v4847_v14 }
 0xa4e   : > { %3056 = vst.msk [vmem:[%s467_s19 + $0x28] sm:$0xff] %vm478_vm0, %v3048_v52 }
 0xa51   : > { %v3037_v46 = vpop.f32.mrf.mxu3 }
 0xa52   : > { %v3038_v13 = vadd.f32 %v3385_v54, %v3037_v46 }
 0xa54   : > { %v3049_v9 = vadd.f32 %v3038_v13, %v4852_v49 }
 0xa56   : > { %3057 = vst.msk [vmem:[%s467_s19 + $0x30] sm:$0xff] %vm478_vm0, %v3049_v9 }
 0xa87   : > { %v3040_v1 = vpop.f32.mrf.mxu3 }
 0xa88   : > { %v3041_v10 = vadd.f32 %v3385_v54, %v3040_v1 }
 0xa8a   : > { %v3050_v4 = vadd.f32 %v3041_v10, %v4864_v23 }
 0xa8c   : > { %3058 = vst.msk [vmem:[%s467_s19 + $0x38] sm:$0xff] %vm478_vm0, %v3050_v4 }
 0xa8d PF: > { %s24_s29 = sadd.s32 1, %s3626_s29  }
 0xa8e   : > { %p21_p4 = scmp.ge.s32.totalorder %s24_s29, 4  }
 0xa90   :  { %23 = sbr.rel (!%p21_p4) target bundleno = 1 (0x1), region = 109 }

</bundles_post_ra>
